<compile_context>
chip_gen: v5e
topology: v5e:2x2
jax: 0.10.0
libtpu: 0.0.40
codegen_flags: <defaults>
</compile_context>

<pallas_src>
import jax
import jax.numpy as jnp
from jax.experimental import pallas as pl
from jax.experimental.pallas import tpu as pltpu

BN_EPS = 1e-3
LEAKY = 0.1


def _leaky(v):
    # max(v, 0.1*v) == LeakyReLU(0.1)(v) for 0 < slope < 1.
    return jnp.maximum(v, LEAKY * v)


# --------------------------------------------------------------------------
# Phase 1: 1x1 conv (bf16 MXU matmul) + per-stripe BN1 partial stats.
#          Output activation stored in bf16; stats taken from the f32 result.
# --------------------------------------------------------------------------
def _conv1_kernel(x_ref, w1_ref, t_ref, s1_ref):
    _, Hs, W, C = x_ref.shape
    Cmid = w1_ref.shape[1]
    M = Hs * W

    xb = x_ref[...].reshape(M, C).astype(jnp.bfloat16)
    t = jnp.dot(xb, w1_ref[...], preferred_element_type=jnp.float32)  # (M, Cmid) f32

    s1_ref[...] = jnp.concatenate(
        [jnp.sum(t, axis=0, keepdims=True),
         jnp.sum(t * t, axis=0, keepdims=True)], axis=0).reshape(1, 1, 2, Cmid)
    t_ref[...] = t.astype(jnp.bfloat16).reshape(1, Hs, W, Cmid)


# --------------------------------------------------------------------------
# Phase 2: fused BN1 affine + leaky, 3x3 conv as accumulating MXU matmuls on a
#          bf16 value-space padded activation, per-image BN2 partial stats.
# --------------------------------------------------------------------------
def _conv2_kernel(t_ref, sc1_ref, sh1_ref, w2_ref, y_ref, s2_ref):
    _, H, W, Cmid = t_ref.shape
    C = w2_ref.shape[1]
    HW = H * W

    # BN1 scale/shift + leaky in f32, single cast to bf16 for the MXU.
    t = t_ref[...].reshape(HW, Cmid).astype(jnp.float32)
    t = _leaky(t * sc1_ref[...] + sh1_ref[...]).astype(jnp.bfloat16)
    t = t.reshape(H, W, Cmid)

    # 1-pixel zero halo built in value space (no scratch, no masked ref stores).
    zrow = jnp.zeros((1, W, Cmid), jnp.bfloat16)
    zcol = jnp.zeros((H + 2, 1, Cmid), jnp.bfloat16)
    tp = jnp.concatenate([zrow, t, zrow], axis=0)          # (H+2, W,   Cmid)
    tp = jnp.concatenate([zcol, tp, zcol], axis=1)         # (H+2, W+2, Cmid)

    # Tap grouping: keep per-matmul K reasonably large without materializing
    # the full 9*Cmid im2col slab for realistic channel counts.
    if Cmid >= 128:
        gsz = 1          # 9 matmuls, K = Cmid
    elif Cmid >= 32:
        gsz = 3          # 3 matmuls, K = 3*Cmid
    else:
        gsz = 9          # tiny channels: one matmul, K = 9*Cmid

    acc = jnp.zeros((HW, C), jnp.float32)
    for g0 in range(0, 9, gsz):
        taps = []
        for k in range(g0, g0 + gsz):
            dy, dx = divmod(k, 3)
            taps.append(tp[dy:dy + H, dx:dx + W, :].reshape(HW, Cmid))
        lhs = taps[0] if gsz == 1 else jnp.concatenate(taps, axis=1)
        w_blk = w2_ref[g0 * Cmid:(g0 + gsz) * Cmid, :]
        acc = acc + jnp.dot(lhs, w_blk, preferred_element_type=jnp.float32)

    s2_ref[...] = jnp.concatenate(
        [jnp.sum(acc, axis=0, keepdims=True),
         jnp.sum(acc * acc, axis=0, keepdims=True)], axis=0).reshape(1, 2, C)
    y_ref[...] = acc.astype(jnp.bfloat16).reshape(1, H, W, C)


# --------------------------------------------------------------------------
# Phase 3: fused BN2 affine + leaky + residual add (striped, memory-bound).
# --------------------------------------------------------------------------
def _epilogue_kernel(x_ref, y_ref, sc2_ref, sh2_ref, o_ref):
    _, Hs, W, C = x_ref.shape
    M = Hs * W
    y = y_ref[...].reshape(M, C).astype(jnp.float32)
    y = _leaky(y * sc2_ref[...] + sh2_ref[...])
    o_ref[...] = x_ref[...] + y.reshape(1, Hs, W, C)


# --------------------------------------------------------------------------
# Wrapper helpers
# --------------------------------------------------------------------------
def _bn_affine(stats, count, gamma, beta):
    """Fold batch-stat BN into per-channel scale/shift (one-pass mean/var)."""
    s = jnp.sum(stats.reshape(-1, 2, stats.shape[-1]), axis=0)   # (2, Cc)
    mean = s[0] / count
    var = jnp.maximum(s[1] / count - mean * mean, 0.0)
    scale = gamma * jax.lax.rsqrt(var + BN_EPS)
    shift = beta - mean * scale
    return scale.reshape(1, -1), shift.reshape(1, -1)


def _vmem_limit_bytes():
    """Use most of the device's VMEM (v5e/v6e: 128 MiB, v7x: 64 MiB)."""
    try:
        cap = int(pltpu.get_tpu_info().vmem_capacity_bytes)
    except Exception:
        cap = 64 * 1024 * 1024
    return max(32 * 1024 * 1024, min(96 * 1024 * 1024, cap - 16 * 1024 * 1024))


def _cparams(dim_sem):
    return pltpu.CompilerParams(
        dimension_semantics=dim_sem,
        vmem_limit_bytes=_vmem_limit_bytes(),
    )


def _pick_stripe(H, row_bytes, target_bytes=6 << 20):
    """Largest divisor of H whose stripe stays under target_bytes."""
    best = 1
    for d in range(1, H + 1):
        if H % d == 0 and d * row_bytes <= target_bytes:
            best = d
    return best


# --------------------------------------------------------------------------
# Full residual unit (NHWC)
# --------------------------------------------------------------------------
@jax.jit
def res_unit_nhwc(x, w1_bf16, w2_bf16, g1, be1, g2, be2):
    N, H, W, C = x.shape
    Cmid = w1_bf16.shape[1]
    count = float(N * H * W)

    # Stripe size for the streaming phases (1 and 3).
    Hs = _pick_stripe(H, W * C * (4 + 4 + 2))
    S = H // Hs

    stripe4 = lambda n, h: (n, h, 0, 0)
    full2_2d = lambda n, h: (0, 0)

    # ----- Phase 1: 1x1 conv + BN1 partial stats -----
    t_pre, s1 = pl.pallas_call(
        _conv1_kernel,
        grid=(N, S),
        in_specs=[pl.BlockSpec((1, Hs, W, C), stripe4),
                  pl.BlockSpec((C, Cmid), full2_2d)],
        out_specs=[pl.BlockSpec((1, Hs, W, Cmid), stripe4),
                   pl.BlockSpec((1, 1, 2, Cmid), lambda n, h: (n, h, 0, 0))],
        out_shape=[jax.ShapeDtypeStruct((N, H, W, Cmid), jnp.bfloat16),
                   jax.ShapeDtypeStruct((N, S, 2, Cmid), jnp.float32)],
        compiler_params=_cparams(("parallel", "parallel")),
    )(x, w1_bf16)

    sc1, sh1 = _bn_affine(s1, count, g1, be1)

    # ----- Phase 2: BN1 affine + leaky + 3x3 conv + BN2 partial stats -----
    img4 = lambda n: (n, 0, 0, 0)
    full2_1d = lambda n: (0, 0)
    y_pre, s2 = pl.pallas_call(
        _conv2_kernel,
        grid=(N,),
        in_specs=[pl.BlockSpec((1, H, W, Cmid), img4),
                  pl.BlockSpec((1, Cmid), full2_1d),
                  pl.BlockSpec((1, Cmid), full2_1d),
                  pl.BlockSpec((9 * Cmid, C), full2_1d)],
        out_specs=[pl.BlockSpec((1, H, W, C), img4),
                   pl.BlockSpec((1, 2, C), lambda n: (n, 0, 0))],
        out_shape=[jax.ShapeDtypeStruct((N, H, W, C), jnp.bfloat16),
                   jax.ShapeDtypeStruct((N, 2, C), jnp.float32)],
        compiler_params=_cparams(("parallel",)),
    )(t_pre, sc1, sh1, w2_bf16)

    sc2, sh2 = _bn_affine(s2, count, g2, be2)

    # ----- Phase 3: BN2 affine + leaky + residual add -----
    out = pl.pallas_call(
        _epilogue_kernel,
        grid=(N, S),
        in_specs=[pl.BlockSpec((1, Hs, W, C), stripe4),
                  pl.BlockSpec((1, Hs, W, C), stripe4),
                  pl.BlockSpec((1, C), full2_2d),
                  pl.BlockSpec((1, C), full2_2d)],
        out_specs=pl.BlockSpec((1, Hs, W, C), stripe4),
        out_shape=jax.ShapeDtypeStruct((N, H, W, C), jnp.float32),
        compiler_params=_cparams(("parallel", "parallel")),
    )(x, y_pre, sc2, sh2)
    return out


def res_unit_nchw(x_nchw, params):
    w1, w2, g1, be1, g2, be2 = params
    x_nhwc = jnp.transpose(x_nchw, (0, 2, 3, 1))
    out_nhwc = res_unit_nhwc(x_nhwc, w1.astype(jnp.bfloat16),
                             w2.astype(jnp.bfloat16), g1, be1, g2, be2)
    return jnp.transpose(out_nhwc, (0, 3, 1, 2))


# --------------------------------------------------------------------------
# Pure-JAX reference (f32) for correctness checking.
# --------------------------------------------------------------------------
def ref_res_unit_nchw(x_nchw, params):
    w1, w2, g1, be1, g2, be2 = params
    x = jnp.transpose(x_nchw, (0, 2, 3, 1))
    N, H, W, C = x.shape
    Cmid = w1.shape[1]

    t = x.reshape(-1, C) @ w1
    mu, var = t.mean(0), ((t - t.mean(0)) ** 2).mean(0)
    t = (t - mu) * jax.lax.rsqrt(var + BN_EPS) * g1 + be1
    t = jnp.where(t >= 0, t, LEAKY * t).reshape(N, H, W, Cmid)

    tp = jnp.pad(t, ((0, 0), (1, 1), (1, 1), (0, 0)))
    cols = jnp.concatenate([tp[:, dy:dy + H, dx:dx + W, :]
                            for dy in range(3) for dx in range(3)], axis=-1)
    y = cols.reshape(-1, 9 * Cmid) @ w2
    mu2, var2 = y.mean(0), ((y - y.mean(0)) ** 2).mean(0)
    y = (y - mu2) * jax.lax.rsqrt(var2 + BN_EPS) * g2 + be2
    y = jnp.where(y >= 0, y, LEAKY * y).reshape(N, H, W, C)

    return jnp.transpose(x + y, (0, 3, 1, 2))


if __name__ == "__main__":
    # Small shapes consistent with the module (input_channels must be even).
    N, C, H, W = 2, 8, 16, 16
    Cmid = C // 2

    key = jax.random.PRNGKey(0)
    kx, k1, k2 = jax.random.split(key, 3)

    # Synthetic parameters.  w2 is in matmul layout (9*Cmid, C) with row index
    # (dy*3 + dx)*Cmid + ci  <->  torch weight[co, ci, dy, dx].
    # Round-trip through bf16 so kernel (bf16 MXU) and f32 reference share the
    # exact same weight/input values.
    w1 = (jax.random.normal(k1, (C, Cmid), jnp.float32) * 0.1
          ).astype(jnp.bfloat16).astype(jnp.float32)
    w2 = (jax.random.normal(k2, (9 * Cmid, C), jnp.float32) * 0.1
          ).astype(jnp.bfloat16).astype(jnp.float32)
    # BatchNorm affine params (torch default init: weight=1, bias=0).
    g1, be1 = jnp.ones((Cmid,), jnp.float32), jnp.zeros((Cmid,), jnp.float32)
    g2, be2 = jnp.ones((C,), jnp.float32), jnp.zeros((C,), jnp.float32)
    # Conv biases are intentionally absent: they cancel exactly in batch-stat BN.

    x_nchw = jax.random.normal(kx, (N, C, H, W), jnp.float32
                               ).astype(jnp.bfloat16).astype(jnp.float32)

    params = (w1, w2, g1, be1, g2, be2)
    out = jax.block_until_ready(res_unit_nchw(x_nchw, params))
    ref = ref_res_unit_nchw(x_nchw, params)

    assert out.shape == (N, C, H, W)
    assert bool(jnp.all(jnp.isfinite(out)))
    max_err = float(jnp.max(jnp.abs(out - ref)))
    assert max_err < 0.2, f"max abs error vs reference: {max_err}"
    print("KERNEL_OK")
</pallas_src>

<mosaic_0001>
module attributes {stable_mosaic.version = 11 : i64} {
  func.func @_conv1_kernel(%arg0: i32, %arg1: i32, %arg2: memref<1x16x16x8xf32, #tpu.memory_space<vmem>>, %arg3: memref<8x4xbf16, #tpu.memory_space<vmem>>, %arg4: memref<1x16x16x4xbf16, #tpu.memory_space<vmem>>, %arg5: memref<1x1x2x4xf32, #tpu.memory_space<vmem>>) attributes {dimension_semantics = [#tpu.dimension_semantics<parallel>, #tpu.dimension_semantics<parallel>], iteration_bounds = array<i64: 2, 1>, scalar_prefetch = 0 : i64, scratch_operands = 0 : i64, tpu.core_type = #tpu.core_type<tc>, window_params = [{transform_indices = @transform_0, window_bounds = array<i64: 1, 16, 16, 8>}, {pipeline_mode = #tpu.pipeline_mode<synchronous>, transform_indices = @transform_1, window_bounds = array<i64: 8, 4>}, {transform_indices = @transform_2, window_bounds = array<i64: 1, 16, 16, 4>}, {transform_indices = @transform_3, window_bounds = array<i64: 1, 1, 2, 4>}]} {
    %c0 = arith.constant 0 : index
    %c0_0 = arith.constant 0 : index
    %c0_1 = arith.constant 0 : index
    %c0_2 = arith.constant 0 : index
    %0 = vector.load %arg2[%c0, %c0_0, %c0_1, %c0_2] : memref<1x16x16x8xf32, #tpu.memory_space<vmem>>, vector<1x16x16x8xf32>
    %1 = vector.shape_cast %0 : vector<1x16x16x8xf32> to vector<256x8xf32>
    %2 = arith.truncf %1 : vector<256x8xf32> to vector<256x8xbf16>
    %c0_3 = arith.constant 0 : index
    %c0_4 = arith.constant 0 : index
    %3 = vector.load %arg3[%c0_3, %c0_4] : memref<8x4xbf16, #tpu.memory_space<vmem>>, vector<8x4xbf16>
    %cst = arith.constant dense<0.000000e+00> : vector<256x4xf32>
    %4 = tpu.matmul %2, %3, %cst {dimension_numbers = #tpu.dot_dimension_numbers<[1], [0], [0], [1], [0, 0, 1, 1], [], []>} : vector<256x8xbf16>, vector<8x4xbf16>, vector<256x4xf32> -> vector<256x4xf32>
    %cst_5 = arith.constant dense<0.000000e+00> : vector<4xf32>
    %5 = vector.multi_reduction <add>, %4, %cst_5 [0] : vector<256x4xf32> to vector<4xf32>
    %6 = vector.shape_cast %5 : vector<4xf32> to vector<1x4xf32>
    %7 = arith.mulf %4, %4 : vector<256x4xf32>
    %cst_6 = arith.constant dense<0.000000e+00> : vector<4xf32>
    %8 = vector.multi_reduction <add>, %7, %cst_6 [0] : vector<256x4xf32> to vector<4xf32>
    %9 = vector.shape_cast %8 : vector<4xf32> to vector<1x4xf32>
    %10 = tpu.concatenate %6, %9 in 0 : vector<1x4xf32>, vector<1x4xf32> -> vector<2x4xf32>
    %11 = vector.shape_cast %10 : vector<2x4xf32> to vector<1x1x2x4xf32>
    %c0_7 = arith.constant 0 : index
    %c0_8 = arith.constant 0 : index
    %c0_9 = arith.constant 0 : index
    %c0_10 = arith.constant 0 : index
    %12 = vector.load %arg5[%c0_7, %c0_8, %c0_9, %c0_10] : memref<1x1x2x4xf32, #tpu.memory_space<vmem>>, vector<1x1x2x4xf32>
    tpu.vector_store %arg5[%c0_7, %c0_8, %c0_9, %c0_10], %11 {strides = array<i32>} : memref<1x1x2x4xf32, #tpu.memory_space<vmem>>, vector<1x1x2x4xf32>,
    %13 = arith.truncf %4 : vector<256x4xf32> to vector<256x4xbf16>
    %14 = vector.shape_cast %13 : vector<256x4xbf16> to vector<1x16x16x4xbf16>
    %c0_11 = arith.constant 0 : index
    %c0_12 = arith.constant 0 : index
    %c0_13 = arith.constant 0 : index
    %c0_14 = arith.constant 0 : index
    %15 = vector.load %arg4[%c0_11, %c0_12, %c0_13, %c0_14] : memref<1x16x16x4xbf16, #tpu.memory_space<vmem>>, vector<1x16x16x4xbf16>
    tpu.vector_store %arg4[%c0_11, %c0_12, %c0_13, %c0_14], %14 {strides = array<i32>} : memref<1x16x16x4xbf16, #tpu.memory_space<vmem>>, vector<1x16x16x4xbf16>,
    return
  }
  func.func @transform_0(%arg0: i32, %arg1: i32) -> (i32, i32, i32, i32) {
    %c0_i32 = arith.constant 0 : i32
    %c0_i32_0 = arith.constant 0 : i32
    %c0_i32_1 = arith.constant 0 : i32
    return %arg0, %arg1, %c0_i32, %c0_i32_0 : i32, i32, i32, i32
  }
  func.func @transform_1(%arg0: i32, %arg1: i32) -> (i32, i32) {
    %c0_i32 = arith.constant 0 : i32
    %c0_i32_0 = arith.constant 0 : i32
    %c0_i32_1 = arith.constant 0 : i32
    return %c0_i32, %c0_i32_0 : i32, i32
  }
  func.func @transform_2(%arg0: i32, %arg1: i32) -> (i32, i32, i32, i32) {
    %c0_i32 = arith.constant 0 : i32
    %c0_i32_0 = arith.constant 0 : i32
    %c0_i32_1 = arith.constant 0 : i32
    return %arg0, %arg1, %c0_i32, %c0_i32_0 : i32, i32, i32, i32
  }
  func.func @transform_3(%arg0: i32, %arg1: i32) -> (i32, i32, i32, i32) {
    %c0_i32 = arith.constant 0 : i32
    %c0_i32_0 = arith.constant 0 : i32
    %c0_i32_1 = arith.constant 0 : i32
    return %arg0, %arg1, %c0_i32, %c0_i32_0 : i32, i32, i32, i32
  }
}

module attributes {stable_mosaic.version = 11 : i64} {
  func.func @_conv2_kernel(%arg0: i32, %arg1: memref<1x16x16x4xbf16, #tpu.memory_space<vmem>>, %arg2: memref<1x4xf32, #tpu.memory_space<vmem>>, %arg3: memref<1x4xf32, #tpu.memory_space<vmem>>, %arg4: memref<36x8xbf16, #tpu.memory_space<vmem>>, %arg5: memref<1x16x16x8xbf16, #tpu.memory_space<vmem>>, %arg6: memref<1x2x8xf32, #tpu.memory_space<vmem>>) attributes {dimension_semantics = [#tpu.dimension_semantics<parallel>], iteration_bounds = array<i64: 2>, scalar_prefetch = 0 : i64, scratch_operands = 0 : i64, tpu.core_type = #tpu.core_type<tc>, window_params = [{transform_indices = @transform_0, window_bounds = array<i64: 1, 16, 16, 4>}, {pipeline_mode = #tpu.pipeline_mode<synchronous>, transform_indices = @transform_1, window_bounds = array<i64: 1, 4>}, {pipeline_mode = #tpu.pipeline_mode<synchronous>, transform_indices = @transform_2, window_bounds = array<i64: 1, 4>}, {pipeline_mode = #tpu.pipeline_mode<synchronous>, transform_indices = @transform_3, window_bounds = array<i64: 36, 8>}, {transform_indices = @transform_4, window_bounds = array<i64: 1, 16, 16, 8>}, {transform_indices = @transform_5, window_bounds = array<i64: 1, 2, 8>}]} {
    %c0 = arith.constant 0 : index
    %c0_0 = arith.constant 0 : index
    %c0_1 = arith.constant 0 : index
    %c0_2 = arith.constant 0 : index
    %0 = vector.load %arg1[%c0, %c0_0, %c0_1, %c0_2] : memref<1x16x16x4xbf16, #tpu.memory_space<vmem>>, vector<1x16x16x4xbf16>
    %1 = vector.shape_cast %0 : vector<1x16x16x4xbf16> to vector<256x4xbf16>
    %2 = arith.extf %1 : vector<256x4xbf16> to vector<256x4xf32>
    %c0_3 = arith.constant 0 : index
    %c0_4 = arith.constant 0 : index
    %3 = vector.load %arg2[%c0_3, %c0_4] : memref<1x4xf32, #tpu.memory_space<vmem>>, vector<1x4xf32>
    %4 = vector.broadcast %3 : vector<1x4xf32> to vector<256x4xf32>
    %5 = arith.mulf %2, %4 : vector<256x4xf32>
    %c0_5 = arith.constant 0 : index
    %c0_6 = arith.constant 0 : index
    %6 = vector.load %arg3[%c0_5, %c0_6] : memref<1x4xf32, #tpu.memory_space<vmem>>, vector<1x4xf32>
    %7 = vector.broadcast %6 : vector<1x4xf32> to vector<256x4xf32>
    %8 = arith.addf %5, %7 : vector<256x4xf32>
    %cst = arith.constant 1.000000e-01 : f32
    %9 = vector.broadcast %cst : f32 to vector<256x4xf32>
    %10 = arith.mulf %9, %8 : vector<256x4xf32>
    %11 = arith.maximumf %8, %10 : vector<256x4xf32>
    %12 = arith.truncf %11 : vector<256x4xf32> to vector<256x4xbf16>
    %13 = vector.shape_cast %12 : vector<256x4xbf16> to vector<16x16x4xbf16>
    %cst_7 = arith.constant 0.000000e+00 : bf16
    %14 = vector.broadcast %cst_7 : bf16 to vector<1x16x4xbf16>
    %cst_8 = arith.constant 0.000000e+00 : bf16
    %15 = vector.broadcast %cst_8 : bf16 to vector<18x1x4xbf16>
    %16 = tpu.concatenate %14, %13, %14 in 0 : vector<1x16x4xbf16>, vector<16x16x4xbf16>, vector<1x16x4xbf16> -> vector<18x16x4xbf16>
    %17 = tpu.concatenate %15, %16, %15 in 1 : vector<18x1x4xbf16>, vector<18x16x4xbf16>, vector<18x1x4xbf16> -> vector<18x18x4xbf16>
    %cst_9 = arith.constant 0.000000e+00 : f32
    %18 = vector.broadcast %cst_9 : f32 to vector<256x8xf32>
    %19 = vector.extract_strided_slice %17 {offsets = [0, 0, 0], sizes = [16, 16, 4], strides = [1, 1, 1]} : vector<18x18x4xbf16> to vector<16x16x4xbf16>
    %20 = vector.shape_cast %19 : vector<16x16x4xbf16> to vector<256x4xbf16>
    %21 = vector.extract_strided_slice %17 {offsets = [0, 1, 0], sizes = [16, 16, 4], strides = [1, 1, 1]} : vector<18x18x4xbf16> to vector<16x16x4xbf16>
    %22 = vector.shape_cast %21 : vector<16x16x4xbf16> to vector<256x4xbf16>
    %23 = vector.extract_strided_slice %17 {offsets = [0, 2, 0], sizes = [16, 16, 4], strides = [1, 1, 1]} : vector<18x18x4xbf16> to vector<16x16x4xbf16>
    %24 = vector.shape_cast %23 : vector<16x16x4xbf16> to vector<256x4xbf16>
    %25 = vector.extract_strided_slice %17 {offsets = [1, 0, 0], sizes = [16, 16, 4], strides = [1, 1, 1]} : vector<18x18x4xbf16> to vector<16x16x4xbf16>
    %26 = vector.shape_cast %25 : vector<16x16x4xbf16> to vector<256x4xbf16>
    %27 = vector.extract_strided_slice %17 {offsets = [1, 1, 0], sizes = [16, 16, 4], strides = [1, 1, 1]} : vector<18x18x4xbf16> to vector<16x16x4xbf16>
    %28 = vector.shape_cast %27 : vector<16x16x4xbf16> to vector<256x4xbf16>
    %29 = vector.extract_strided_slice %17 {offsets = [1, 2, 0], sizes = [16, 16, 4], strides = [1, 1, 1]} : vector<18x18x4xbf16> to vector<16x16x4xbf16>
    %30 = vector.shape_cast %29 : vector<16x16x4xbf16> to vector<256x4xbf16>
    %31 = vector.extract_strided_slice %17 {offsets = [2, 0, 0], sizes = [16, 16, 4], strides = [1, 1, 1]} : vector<18x18x4xbf16> to vector<16x16x4xbf16>
    %32 = vector.shape_cast %31 : vector<16x16x4xbf16> to vector<256x4xbf16>
    %33 = vector.extract_strided_slice %17 {offsets = [2, 1, 0], sizes = [16, 16, 4], strides = [1, 1, 1]} : vector<18x18x4xbf16> to vector<16x16x4xbf16>
    %34 = vector.shape_cast %33 : vector<16x16x4xbf16> to vector<256x4xbf16>
    %35 = vector.extract_strided_slice %17 {offsets = [2, 2, 0], sizes = [16, 16, 4], strides = [1, 1, 1]} : vector<18x18x4xbf16> to vector<16x16x4xbf16>
    %36 = vector.shape_cast %35 : vector<16x16x4xbf16> to vector<256x4xbf16>
    %37 = tpu.concatenate %20, %22, %24, %26, %28, %30, %32, %34, %36 in 1 : vector<256x4xbf16>, vector<256x4xbf16>, vector<256x4xbf16>, vector<256x4xbf16>, vector<256x4xbf16>, vector<256x4xbf16>, vector<256x4xbf16>, vector<256x4xbf16>, vector<256x4xbf16> -> vector<256x36xbf16>
    %c0_10 = arith.constant 0 : index
    %c0_11 = arith.constant 0 : index
    %38 = vector.load %arg4[%c0_10, %c0_11] : memref<36x8xbf16, #tpu.memory_space<vmem>>, vector<36x8xbf16>
    %cst_12 = arith.constant dense<0.000000e+00> : vector<256x8xf32>
    %39 = tpu.matmul %37, %38, %cst_12 {dimension_numbers = #tpu.dot_dimension_numbers<[1], [0], [0], [1], [0, 0, 1, 1], [], []>} : vector<256x36xbf16>, vector<36x8xbf16>, vector<256x8xf32> -> vector<256x8xf32>
    %40 = arith.addf %18, %39 : vector<256x8xf32>
    %cst_13 = arith.constant dense<0.000000e+00> : vector<8xf32>
    %41 = vector.multi_reduction <add>, %40, %cst_13 [0] : vector<256x8xf32> to vector<8xf32>
    %42 = vector.shape_cast %41 : vector<8xf32> to vector<1x8xf32>
    %43 = arith.mulf %40, %40 : vector<256x8xf32>
    %cst_14 = arith.constant dense<0.000000e+00> : vector<8xf32>
    %44 = vector.multi_reduction <add>, %43, %cst_14 [0] : vector<256x8xf32> to vector<8xf32>
    %45 = vector.shape_cast %44 : vector<8xf32> to vector<1x8xf32>
    %46 = tpu.concatenate %42, %45 in 0 : vector<1x8xf32>, vector<1x8xf32> -> vector<2x8xf32>
    %47 = vector.shape_cast %46 : vector<2x8xf32> to vector<1x2x8xf32>
    %c0_15 = arith.constant 0 : index
    %c0_16 = arith.constant 0 : index
    %c0_17 = arith.constant 0 : index
    %48 = vector.load %arg6[%c0_15, %c0_16, %c0_17] : memref<1x2x8xf32, #tpu.memory_space<vmem>>, vector<1x2x8xf32>
    tpu.vector_store %arg6[%c0_15, %c0_16, %c0_17], %47 {strides = array<i32>} : memref<1x2x8xf32, #tpu.memory_space<vmem>>, vector<1x2x8xf32>,
    %49 = arith.truncf %40 : vector<256x8xf32> to vector<256x8xbf16>
    %50 = vector.shape_cast %49 : vector<256x8xbf16> to vector<1x16x16x8xbf16>
    %c0_18 = arith.constant 0 : index
    %c0_19 = arith.constant 0 : index
    %c0_20 = arith.constant 0 : index
    %c0_21 = arith.constant 0 : index
    %51 = vector.load %arg5[%c0_18, %c0_19, %c0_20, %c0_21] : memref<1x16x16x8xbf16, #tpu.memory_space<vmem>>, vector<1x16x16x8xbf16>
    tpu.vector_store %arg5[%c0_18, %c0_19, %c0_20, %c0_21], %50 {strides = array<i32>} : memref<1x16x16x8xbf16, #tpu.memory_space<vmem>>, vector<1x16x16x8xbf16>,
    return
  }
  func.func @transform_0(%arg0: i32) -> (i32, i32, i32, i32) {
    %c0_i32 = arith.constant 0 : i32
    %c0_i32_0 = arith.constant 0 : i32
    %c0_i32_1 = arith.constant 0 : i32
    %c0_i32_2 = arith.constant 0 : i32
    return %arg0, %c0_i32, %c0_i32_0, %c0_i32_1 : i32, i32, i32, i32
  }
  func.func @transform_1(%arg0: i32) -> (i32, i32) {
    %c0_i32 = arith.constant 0 : i32
    %c0_i32_0 = arith.constant 0 : i32
    %c0_i32_1 = arith.constant 0 : i32
    return %c0_i32, %c0_i32_0 : i32, i32
  }
  func.func @transform_2(%arg0: i32) -> (i32, i32) {
    %c0_i32 = arith.constant 0 : i32
    %c0_i32_0 = arith.constant 0 : i32
    %c0_i32_1 = arith.constant 0 : i32
    return %c0_i32, %c0_i32_0 : i32, i32
  }
  func.func @transform_3(%arg0: i32) -> (i32, i32) {
    %c0_i32 = arith.constant 0 : i32
    %c0_i32_0 = arith.constant 0 : i32
    %c0_i32_1 = arith.constant 0 : i32
    return %c0_i32, %c0_i32_0 : i32, i32
  }
  func.func @transform_4(%arg0: i32) -> (i32, i32, i32, i32) {
    %c0_i32 = arith.constant 0 : i32
    %c0_i32_0 = arith.constant 0 : i32
    %c0_i32_1 = arith.constant 0 : i32
    %c0_i32_2 = arith.constant 0 : i32
    return %arg0, %c0_i32, %c0_i32_0, %c0_i32_1 : i32, i32, i32, i32
  }
  func.func @transform_5(%arg0: i32) -> (i32, i32, i32) {
    %c0_i32 = arith.constant 0 : i32
    %c0_i32_0 = arith.constant 0 : i32
    %c0_i32_1 = arith.constant 0 : i32
    return %arg0, %c0_i32, %c0_i32_0 : i32, i32, i32
  }
}

module attributes {stable_mosaic.version = 11 : i64} {
  func.func @_epilogue_kernel(%arg0: i32, %arg1: i32, %arg2: memref<1x16x16x8xf32, #tpu.memory_space<vmem>>, %arg3: memref<1x16x16x8xbf16, #tpu.memory_space<vmem>>, %arg4: memref<1x8xf32, #tpu.memory_space<vmem>>, %arg5: memref<1x8xf32, #tpu.memory_space<vmem>>, %arg6: memref<1x16x16x8xf32, #tpu.memory_space<vmem>>) attributes {dimension_semantics = [#tpu.dimension_semantics<parallel>, #tpu.dimension_semantics<parallel>], iteration_bounds = array<i64: 2, 1>, scalar_prefetch = 0 : i64, scratch_operands = 0 : i64, tpu.core_type = #tpu.core_type<tc>, window_params = [{transform_indices = @transform_0, window_bounds = array<i64: 1, 16, 16, 8>}, {transform_indices = @transform_1, window_bounds = array<i64: 1, 16, 16, 8>}, {pipeline_mode = #tpu.pipeline_mode<synchronous>, transform_indices = @transform_2, window_bounds = array<i64: 1, 8>}, {pipeline_mode = #tpu.pipeline_mode<synchronous>, transform_indices = @transform_3, window_bounds = array<i64: 1, 8>}, {transform_indices = @transform_4, window_bounds = array<i64: 1, 16, 16, 8>}]} {
    %c0 = arith.constant 0 : index
    %c0_0 = arith.constant 0 : index
    %c0_1 = arith.constant 0 : index
    %c0_2 = arith.constant 0 : index
    %0 = vector.load %arg3[%c0, %c0_0, %c0_1, %c0_2] : memref<1x16x16x8xbf16, #tpu.memory_space<vmem>>, vector<1x16x16x8xbf16>
    %1 = vector.shape_cast %0 : vector<1x16x16x8xbf16> to vector<256x8xbf16>
    %2 = arith.extf %1 : vector<256x8xbf16> to vector<256x8xf32>
    %c0_3 = arith.constant 0 : index
    %c0_4 = arith.constant 0 : index
    %3 = vector.load %arg4[%c0_3, %c0_4] : memref<1x8xf32, #tpu.memory_space<vmem>>, vector<1x8xf32>
    %4 = vector.broadcast %3 : vector<1x8xf32> to vector<256x8xf32>
    %5 = arith.mulf %2, %4 : vector<256x8xf32>
    %c0_5 = arith.constant 0 : index
    %c0_6 = arith.constant 0 : index
    %6 = vector.load %arg5[%c0_5, %c0_6] : memref<1x8xf32, #tpu.memory_space<vmem>>, vector<1x8xf32>
    %7 = vector.broadcast %6 : vector<1x8xf32> to vector<256x8xf32>
    %8 = arith.addf %5, %7 : vector<256x8xf32>
    %cst = arith.constant 1.000000e-01 : f32
    %9 = vector.broadcast %cst : f32 to vector<256x8xf32>
    %10 = arith.mulf %9, %8 : vector<256x8xf32>
    %11 = arith.maximumf %8, %10 : vector<256x8xf32>
    %c0_7 = arith.constant 0 : index
    %c0_8 = arith.constant 0 : index
    %c0_9 = arith.constant 0 : index
    %c0_10 = arith.constant 0 : index
    %12 = vector.load %arg2[%c0_7, %c0_8, %c0_9, %c0_10] : memref<1x16x16x8xf32, #tpu.memory_space<vmem>>, vector<1x16x16x8xf32>
    %13 = vector.shape_cast %11 : vector<256x8xf32> to vector<1x16x16x8xf32>
    %14 = arith.addf %12, %13 : vector<1x16x16x8xf32>
    %c0_11 = arith.constant 0 : index
    %c0_12 = arith.constant 0 : index
    %c0_13 = arith.constant 0 : index
    %c0_14 = arith.constant 0 : index
    %15 = vector.load %arg6[%c0_11, %c0_12, %c0_13, %c0_14] : memref<1x16x16x8xf32, #tpu.memory_space<vmem>>, vector<1x16x16x8xf32>
    tpu.vector_store %arg6[%c0_11, %c0_12, %c0_13, %c0_14], %14 {strides = array<i32>} : memref<1x16x16x8xf32, #tpu.memory_space<vmem>>, vector<1x16x16x8xf32>,
    return
  }
  func.func @transform_0(%arg0: i32, %arg1: i32) -> (i32, i32, i32, i32) {
    %c0_i32 = arith.constant 0 : i32
    %c0_i32_0 = arith.constant 0 : i32
    %c0_i32_1 = arith.constant 0 : i32
    return %arg0, %arg1, %c0_i32, %c0_i32_0 : i32, i32, i32, i32
  }
  func.func @transform_1(%arg0: i32, %arg1: i32) -> (i32, i32, i32, i32) {
    %c0_i32 = arith.constant 0 : i32
    %c0_i32_0 = arith.constant 0 : i32
    %c0_i32_1 = arith.constant 0 : i32
    return %arg0, %arg1, %c0_i32, %c0_i32_0 : i32, i32, i32, i32
  }
  func.func @transform_2(%arg0: i32, %arg1: i32) -> (i32, i32) {
    %c0_i32 = arith.constant 0 : i32
    %c0_i32_0 = arith.constant 0 : i32
    %c0_i32_1 = arith.constant 0 : i32
    return %c0_i32, %c0_i32_0 : i32, i32
  }
  func.func @transform_3(%arg0: i32, %arg1: i32) -> (i32, i32) {
    %c0_i32 = arith.constant 0 : i32
    %c0_i32_0 = arith.constant 0 : i32
    %c0_i32_1 = arith.constant 0 : i32
    return %c0_i32, %c0_i32_0 : i32, i32
  }
  func.func @transform_4(%arg0: i32, %arg1: i32) -> (i32, i32, i32, i32) {
    %c0_i32 = arith.constant 0 : i32
    %c0_i32_0 = arith.constant 0 : i32
    %c0_i32_1 = arith.constant 0 : i32
    return %arg0, %arg1, %c0_i32, %c0_i32_0 : i32, i32, i32, i32
  }
}

</mosaic_0001>

<bundles_post_ra>
// kernel: res_unit_nhwc.3
= control target key start
LH: loop header
LB: loop body
LE: loop exit
PB: predicated region body
PF: predicated region fallthrough
CT: control target
= control target key end

     0   :  { %s904_s12 = smov 0   ;;  %s906_s13 = smov 0   ;;  %s1296_s0 = inlined_call_operand.vmem [shape: f32[2,16,16,8], index: 0, kind: input, shape index: {}]   ;;  %s1297_s1 = inlined_call_operand.vmem [shape: bf16[8,4], index: 1, kind: input, shape index: {}]   ;;  %s1298_s2 = inlined_call_operand.vmem [shape: bf16[2,16,16,4], index: 2, kind: output, shape index: {0}]   ;;  %s1299_s3 = inlined_call_operand.vmem [shape: f32[2,1,2,4], index: 3, kind: output, shape index: {1}]  }
   0x1   :  { %s908_s14 = smov 0  }
   0x2 LB: > { %s26_s15 = sadd.s32 1, %s878_s13  ;;  %p807_p0 = scmp.ge.s32.totalorder %s882_s14, 1  ;;  %s882_s14 = sphi %s908_s14, %s14_s14   ;;  %s878_s13 = sphi %s906_s13, %s1301_s13   ;;  %s874_s12 = sphi %s904_s12, %s1300_s12  }
   0x3   : > { %p28_p1 = scmp.ge.s32.totalorder %s26_s15, 2  ;;  %p164_p2 = scmp.lt.s32.totalorder %s882_s14, 3 }
   0x5   : > { %s1303_s15 = smov (%p28_p1, %s26_s15), 0  ;;  %p165_p3 = pnand %p807_p0, %p164_p2 }
   0x6   : > { %p206_p4 = scmp.lt.s32.totalorder (!%p165_p3), %s874_s12, 1 }
   0x7   : > { %168 = sbr.rel (%p165_p3) target bundleno = 267 (0x10b), region = 28 }
   0xc   : > { %v283_v0 = vld [vmem:[%s1297_s1] sm:$0xf]  ;;  %vm333_vm0 = vcmask 1043456   ;;  %s1305_s12 = smov (!%p206_p4, %s874_s12), 1  ;;  %vm284_vm1 = vcmask 64512   ;;  %vm633_vm2 = vcmask 27648  }
   0xd   : > { %v335_v1 = vsel %vm333_vm0, %v283_v0, 0  ;;  %s831_s18 = sshll.u32 %s1305_s12, 8  ;;  %s832_s22 = sshll.u32 %s1305_s12, 7  ;;  %vm426_vm3 = vcmask 31744   ;;  %vm597_vm4 = vcmask 1040384   ;;  %vm599_vm5 = vcmask 25600  }
   0xe   : > { %344 = vmatpush.bf16.msra.mxu0 %v335_v1  ;;  %833 = vmatpush.bf16.msra.mxu1 %v335_v1  ;;  %s931_s21 = scalar_lea.vmem %s1296_s0, %s831_s18  ;;  %s985_s25 = scalar_lea.vmem %s1298_s2, %s832_s22 }
   0xf   : > { %834 = vmatpush.bf16.msra.mxu2 %v335_v1  ;;  %835 = vmatpush.bf16.msra.mxu3 %v335_v1  ;;  %v235_v2 = vld [vmem:[%s931_s21] sm:$0xff]  ;;  %v236_v3 = vld [vmem:[%s931_s21 + $0x8] sm:$0xff]  ;;  %v237_v14 = vld [vmem:[%s931_s21 + $0x10] sm:$0xff]  ;;  %s812_s26 = sshll.u32 %s1305_s12, 1 }
  0x10   : > { %v243_v4 = vld [vmem:[%s931_s21 + $0x40] sm:$0xff]  ;;  %v267_v5 = vpack.c.bf16 %v236_v3, %v235_v2  ;;  %v244_v6 = vld [vmem:[%s931_s21 + $0x48] sm:$0xff]  ;;  %v238_v15 = vld [vmem:[%s931_s21 + $0x18] sm:$0xff]  ;;  %s233_s29 = scalar_lea.vmem %s1299_s3, %s812_s26 }
  0x11   : > { %v271_v7 = vpack.c.bf16 %v244_v6, %v243_v4  ;;  %v251_v8 = vld [vmem:[%s931_s21 + $0x80] sm:$0xff]  ;;  %v252_v9 = vld [vmem:[%s931_s21 + $0x88] sm:$0xff]  ;;  %v245_v16 = vld [vmem:[%s931_s21 + $0x50] sm:$0xff]  ;;  %v268_v20 = vpack.c.bf16 %v238_v15, %v237_v14 }
  0x12   : > { %813 = vmatmul.msk.bf16.vlgmr.msra.gmra.mxu0 %vm284_vm1, %v267_v5  ;;  %v275_v10 = vpack.c.bf16 %v252_v9, %v251_v8  ;;  %v259_v11 = vld [vmem:[%s931_s21 + $0xc0] sm:$0xff]  ;;  %v260_v12 = vld [vmem:[%s931_s21 + $0xc8] sm:$0xff]  ;;  %v246_v17 = vld [vmem:[%s931_s21 + $0x58] sm:$0xff] }
  0x13   : > { %817 = vmatmul.msk.bf16.vlgmr.msra.gmra.mxu1 %vm284_vm1, %v271_v7  ;;  %v279_v13 = vpack.c.bf16 %v260_v12, %v259_v11  ;;  %v253_v18 = vld [vmem:[%s931_s21 + $0x90] sm:$0xff]  ;;  %v254_v19 = vld [vmem:[%s931_s21 + $0x98] sm:$0xff]  ;;  %v272_v21 = vpack.c.bf16 %v246_v17, %v245_v16  ;;  %v239_v26 = vld [vmem:[%s931_s21 + $0x20] sm:$0xff] }
  0x14   : > { %821 = vmatmul.msk.bf16.vlgmr.msra.gmra.mxu2 %vm284_vm1, %v275_v10  ;;  %v276_v22 = vpack.c.bf16 %v254_v19, %v253_v18  ;;  %v261_v23 = vld [vmem:[%s931_s21 + $0xd0] sm:$0xff]  ;;  %v262_v24 = vld [vmem:[%s931_s21 + $0xd8] sm:$0xff]  ;;  %v240_v27 = vld [vmem:[%s931_s21 + $0x28] sm:$0xff] }
  0x15   : > { %825 = vmatmul.msk.bf16.vlgmr.msra.gmra.mxu3 %vm284_vm1, %v279_v13  ;;  %v280_v25 = vpack.c.bf16 %v262_v24, %v261_v23  ;;  %v247_v28 = vld [vmem:[%s931_s21 + $0x60] sm:$0xff]  ;;  %v248_v29 = vld [vmem:[%s931_s21 + $0x68] sm:$0xff]  ;;  %v269_v32 = vpack.c.bf16 %v240_v27, %v239_v26  ;;  %v241_v38 = vld [vmem:[%s931_s21 + $0x30] sm:$0xff] }
  0x16   : > { %v255_v30 = vld [vmem:[%s931_s21 + $0xa0] sm:$0xff]  ;;  %v256_v31 = vld [vmem:[%s931_s21 + $0xa8] sm:$0xff]  ;;  %v273_v33 = vpack.c.bf16 %v248_v29, %v247_v28  ;;  %v242_v39 = vld [vmem:[%s931_s21 + $0x38] sm:$0xff] }
  0x17   : > { %v277_v34 = vpack.c.bf16 %v256_v31, %v255_v30  ;;  %v263_v35 = vld [vmem:[%s931_s21 + $0xe0] sm:$0xff]  ;;  %v264_v36 = vld [vmem:[%s931_s21 + $0xe8] sm:$0xff]  ;;  %v249_v40 = vld [vmem:[%s931_s21 + $0x70] sm:$0xff]  ;;  %v270_v44 = vpack.c.bf16 %v242_v39, %v241_v38 }
  0x18   : > { %v281_v37 = vpack.c.bf16 %v264_v36, %v263_v35  ;;  %v250_v41 = vld [vmem:[%s931_s21 + $0x78] sm:$0xff]  ;;  %v257_v42 = vld [vmem:[%s931_s21 + $0xb0] sm:$0xff] }
  0x19   : > { %v258_v43 = vld [vmem:[%s931_s21 + $0xb8] sm:$0xff]  ;;  %v274_v45 = vpack.c.bf16 %v250_v41, %v249_v40  ;;  %v265_v47 = vld [vmem:[%s931_s21 + $0xf0] sm:$0xff] }
  0x1a   : > { %v278_v46 = vpack.c.bf16 %v258_v43, %v257_v42  ;;  %v266_v48 = vld [vmem:[%s931_s21 + $0xf8] sm:$0xff] }
  0x1b   : > { %v282_v49 = vpack.c.bf16 %v266_v48, %v265_v47 }
  0x22   : > { %814 = vmatmul.msk.bf16.gmra.mxu0 %vm284_vm1, %v268_v20 }
  0x23   : > { %818 = vmatmul.msk.bf16.gmra.mxu1 %vm284_vm1, %v272_v21 }
  0x24   : > { %822 = vmatmul.msk.bf16.gmra.mxu2 %vm284_vm1, %v276_v22 }
  0x25   : > { %826 = vmatmul.msk.bf16.gmra.mxu3 %vm284_vm1, %v280_v25 }
  0x32   : > { %815 = vmatmul.msk.bf16.gmra.mxu0 %vm284_vm1, %v269_v32 }
  0x33   : > { %819 = vmatmul.msk.bf16.gmra.mxu1 %vm284_vm1, %v273_v33 }
  0x34   : > { %823 = vmatmul.msk.bf16.gmra.mxu2 %vm284_vm1, %v277_v34 }
  0x35   : > { %827 = vmatmul.msk.bf16.gmra.mxu3 %vm284_vm1, %v281_v37 }
  0x42   : > { %816 = vmatmul.msk.bf16.gmra.mxu0 %vm284_vm1, %v270_v44 }
  0x43   : > { %820 = vmatmul.msk.bf16.gmra.mxu1 %vm284_vm1, %v274_v45 }
  0x44   : > { %824 = vmatmul.msk.bf16.gmra.mxu2 %vm284_vm1, %v278_v46 }
  0x45   : > { %828 = vmatmul.msk.bf16.gmra.mxu3 %vm284_vm1, %v282_v49 }
  0x8f   : > { %v987_v50 = vpop.f32.mrf.mxu0 }
  0x90   : > { %v601_v51 = vpack.c.bf16 %v987_v50, %v987_v50  ;;  %v991_v52 = vpop.f32.mrf.mxu1  ;;  %v496_v28 = vmul.f32 %v987_v50, %v987_v50  ;;  %v427_v33 = vsel %vm426_vm3, %v987_v50, 0.0 }
  0x91   : > { %v609_v53 = vpack.c.bf16 %v991_v52, %v991_v52 }
  0x92   : > { %634 = vst.msk [vmem:[%s985_s25] sm:$0xf] %vm633_vm2, %v601_v51  ;;  %v528_v38 = vsel %vm426_vm3, %v496_v28, 0.0 }
  0x93   : > { %642 = vst.msk [vmem:[%s985_s25 + $0x20] sm:$0xf] %vm633_vm2, %v609_v53 }
  0x97   : > { %v348_v54 = vpop.f32.mrf.mxu0  ;;  %v999_v55 = vpop.f32.mrf.mxu2 }
  0x98   : > { %v602_v56 = vpack.c.bf16 %v348_v54, %v348_v54  ;;  %v1001_v57 = vpop.f32.mrf.mxu1  ;;  %v617_v59 = vpack.c.bf16 %v999_v55, %v999_v55  ;;  %v1009_v60 = vpop.f32.mrf.mxu3  ;;  %v497_v24 = vmul.f32 %v348_v54, %v348_v54  ;;  %v428_v29 = vsel %vm426_vm3, %v348_v54, 0.0 }
  0x99   : > { %v610_v58 = vpack.c.bf16 %v1001_v57, %v1001_v57  ;;  %v625_v61 = vpack.c.bf16 %v1009_v60, %v1009_v60  ;;  %v429_v37 = vadd.f32 %v428_v29, %v427_v33  ;;  %v505_v33 = vmul.f32 %v1001_v57, %v1001_v57 }
  0x9a   : > { %635 = vst.msk [vmem:[%s985_s25 + $0x4] sm:$0xf] %vm633_vm2, %v602_v56  ;;  %v529_v34 = vsel %vm426_vm3, %v497_v24, 0.0 }
  0x9b   : > { %643 = vst.msk [vmem:[%s985_s25 + $0x24] sm:$0xf] %vm633_vm2, %v610_v58  ;;  %v530_v42 = vadd.f32 %v529_v34, %v528_v38 }
  0x9c   : > { %650 = vst.msk [vmem:[%s985_s25 + $0x40] sm:$0xf] %vm633_vm2, %v617_v59 }
  0x9d   : > { %658 = vst.msk [vmem:[%s985_s25 + $0x60] sm:$0xf] %vm633_vm2, %v625_v61 }
  0x9f   : > { %v351_v62 = vpop.f32.mrf.mxu0  ;;  %v1019_v63 = vpop.f32.mrf.mxu2 }
  0xa0   : > { %v603_v0 = vpack.c.bf16 %v351_v62, %v351_v62  ;;  %v1021_v1 = vpop.f32.mrf.mxu1  ;;  %v618_v3 = vpack.c.bf16 %v1019_v63, %v1019_v63  ;;  %v1029_v4 = vpop.f32.mrf.mxu3  ;;  %v498_v30 = vmul.f32 %v351_v62, %v351_v62  ;;  %v430_v35 = vsel %vm426_vm3, %v351_v62, 0.0 }
  0xa1   : > { %v611_v2 = vpack.c.bf16 %v1021_v1, %v1021_v1  ;;  %v626_v5 = vpack.c.bf16 %v1029_v4, %v1029_v4  ;;  %v431_v43 = vadd.f32 %v430_v35, %v429_v37 }
  0xa2   : > { %636 = vst.msk [vmem:[%s985_s25 + $0x8] sm:$0xf] %vm633_vm2, %v603_v0  ;;  %v531_v39 = vsel %vm426_vm3, %v498_v30, 0.0 }
  0xa3   : > { %644 = vst.msk [vmem:[%s985_s25 + $0x28] sm:$0xf] %vm633_vm2, %v611_v2  ;;  %v532_v51 = vadd.f32 %v531_v39, %v530_v42 }
  0xa4   : > { %651 = vst.msk [vmem:[%s985_s25 + $0x44] sm:$0xf] %vm633_vm2, %v618_v3 }
  0xa5   : > { %659 = vst.msk [vmem:[%s985_s25 + $0x64] sm:$0xf] %vm633_vm2, %v626_v5 }
  0xa7   : > { %v353_v6 = vpop.f32.mrf.mxu0  ;;  %v1039_v7 = vpop.f32.mrf.mxu2 }
  0xa8   : > { %v604_v8 = vpack.c.bf16 %v353_v6, %v353_v6  ;;  %v1041_v9 = vpop.f32.mrf.mxu1  ;;  %v619_v11 = vpack.c.bf16 %v1039_v7, %v1039_v7  ;;  %v1049_v12 = vpop.f32.mrf.mxu3  ;;  %v499_v36 = vmul.f32 %v353_v6, %v353_v6  ;;  %v432_v40 = vsel %vm426_vm3, %v353_v6, 0.0 }
  0xa9   : > { %v612_v10 = vpack.c.bf16 %v1041_v9, %v1041_v9  ;;  %v627_v20 = vpack.c.bf16 %v1049_v12, %v1049_v12  ;;  %v433_v53 = vadd.f32 %v432_v40, %v431_v43  ;;  %v506_v40 = vmul.f32 %v1021_v1, %v1021_v1 }
  0xaa   : > { %637 = vst.msk [vmem:[%s985_s25 + $0xc] sm:$0xf] %vm633_vm2, %v604_v8  ;;  %v533_v46 = vsel %vm426_vm3, %v499_v36, 0.0  ;;  %v545_v43 = vsel %vm426_vm3, %v505_v33, 0.0 }
  0xab   : > { %645 = vst.msk [vmem:[%s985_s25 + $0x2c] sm:$0xf] %vm633_vm2, %v612_v10  ;;  %v534_v0 = vadd.f32 %v533_v46, %v532_v51  ;;  %v507_v46 = vmul.f32 %v1041_v9, %v1041_v9  ;;  %v448_v51 = vsel %vm426_vm3, %v1041_v9, 0.0 }
  0xac   : > { %652 = vst.msk [vmem:[%s985_s25 + $0x48] sm:$0xf] %vm633_vm2, %v619_v11 }
  0xad   : > { %660 = vst.msk [vmem:[%s985_s25 + $0x68] sm:$0xf] %vm633_vm2, %v627_v20 }
  0xaf   : > { %v356_v13 = vpop.f32.mrf.mxu0  ;;  %v1055_v14 = vpop.f32.mrf.mxu2 }
  0xb0   : > { %v605_v15 = vpack.c.bf16 %v356_v13, %v356_v13  ;;  %v1057_v16 = vpop.f32.mrf.mxu1  ;;  %v620_v18 = vpack.c.bf16 %v1055_v14, %v1055_v14  ;;  %v1065_v19 = vpop.f32.mrf.mxu3  ;;  %v500_v41 = vmul.f32 %v356_v13, %v356_v13  ;;  %v434_v47 = vsel %vm426_vm3, %v356_v13, 0.0 }
  0xb1   : > { %v613_v17 = vpack.c.bf16 %v1057_v16, %v1057_v16  ;;  %v628_v21 = vpack.c.bf16 %v1065_v19, %v1065_v19  ;;  %v435_v2 = vadd.f32 %v434_v47, %v433_v53  ;;  %v508_v53 = vmul.f32 %v1057_v16, %v1057_v16 }
  0xb2   : > { %638 = vst.msk [vmem:[%s985_s25 + $0x10] sm:$0xf] %vm633_vm2, %v605_v15  ;;  %v535_v56 = vsel %vm426_vm3, %v500_v41, 0.0 }
  0xb3   : > { %646 = vst.msk [vmem:[%s985_s25 + $0x30] sm:$0xf] %vm633_vm2, %v613_v17  ;;  %v536_v10 = vadd.f32 %v535_v56, %v534_v0 }
  0xb4   : > { %653 = vst.msk [vmem:[%s985_s25 + $0x4c] sm:$0xf] %vm633_vm2, %v620_v18 }
  0xb5   : > { %661 = vst.msk [vmem:[%s985_s25 + $0x6c] sm:$0xf] %vm633_vm2, %v628_v21  ;;  %v504_v21 = vmul.f32 %v991_v52, %v991_v52 }
  0xb7   : > { %v358_v22 = vpop.f32.mrf.mxu0  ;;  %v1079_v23 = vpop.f32.mrf.mxu2  ;;  %v543_v39 = vsel %vm426_vm3, %v504_v21, 0.0 }
  0xb8   : > { %v606_v25 = vpack.c.bf16 %v358_v22, %v358_v22  ;;  %v1081_v26 = vpop.f32.mrf.mxu1  ;;  %v621_v31 = vpack.c.bf16 %v1079_v23, %v1079_v23  ;;  %v1092_v32 = vpop.f32.mrf.mxu3  ;;  %v501_v48 = vmul.f32 %v358_v22, %v358_v22  ;;  %v436_v58 = vsel %vm426_vm3, %v358_v22, 0.0 }
  0xb9   : > { %v614_v27 = vpack.c.bf16 %v1081_v26, %v1081_v26  ;;  %v629_v3 = vpack.c.bf16 %v1092_v32, %v1092_v32  ;;  %v437_v11 = vadd.f32 %v436_v58, %v435_v2  ;;  %v509_v9 = vmul.f32 %v1081_v26, %v1081_v26 }
  0xba   : > { %639 = vst.msk [vmem:[%s985_s25 + $0x14] sm:$0xf] %vm633_vm2, %v606_v25  ;;  %v537_v5 = vsel %vm426_vm3, %v501_v48, 0.0 }
  0xbb   : > { %647 = vst.msk [vmem:[%s985_s25 + $0x34] sm:$0xf] %vm633_vm2, %v614_v27  ;;  %v538_v15 = vadd.f32 %v537_v5, %v536_v10  ;;  %v551_v5 = vsel %vm426_vm3, %v508_v53, 0.0 }
  0xbc   : > { %654 = vst.msk [vmem:[%s985_s25 + $0x50] sm:$0xf] %vm633_vm2, %v621_v31  ;;  %v442_v31 = vsel %vm426_vm3, %v991_v52, 0.0  ;;  %v444_v52 = vsel %vm426_vm3, %v1001_v57, 0.0 }
  0xbd   : > { %662 = vst.msk [vmem:[%s985_s25 + $0x70] sm:$0xf] %vm633_vm2, %v629_v3 }
  0xbf   : > { %v361_v44 = vpop.f32.mrf.mxu0  ;;  %v1105_v45 = vpop.f32.mrf.mxu2 }
  0xc0   : > { %v607_v49 = vpack.c.bf16 %v361_v44, %v361_v44  ;;  %v1109_v50 = vpop.f32.mrf.mxu1  ;;  %v502_v59 = vmul.f32 %v361_v44, %v361_v44  ;;  %v622_v61 = vpack.c.bf16 %v1105_v45, %v1105_v45  ;;  %v1119_v62 = vpop.f32.mrf.mxu3  ;;  %v438_v6 = vsel %vm426_vm3, %v361_v44, 0.0 }
  0xc1   : > { %v615_v54 = vpack.c.bf16 %v1109_v50, %v1109_v50  ;;  %v630_v8 = vpack.c.bf16 %v1119_v62, %v1119_v62  ;;  %v439_v17 = vadd.f32 %v438_v6, %v437_v11  ;;  %v446_v44 = vsel %vm426_vm3, %v1021_v1, 0.0 }
  0xc2   : > { %640 = vst.msk [vmem:[%s985_s25 + $0x18] sm:$0xf] %vm633_vm2, %v607_v49  ;;  %v539_v13 = vsel %vm426_vm3, %v502_v59, 0.0  ;;  %v547_v49 = vsel %vm426_vm3, %v506_v40, 0.0  ;;  %v549_v59 = vsel %vm426_vm3, %v507_v46, 0.0  ;;  %v452_v6 = vsel %vm426_vm3, %v1081_v26, 0.0 }
  0xc3   : > { %648 = vst.msk [vmem:[%s985_s25 + $0x38] sm:$0xf] %vm633_vm2, %v615_v54  ;;  %v540_v28 = vadd.f32 %v539_v13, %v538_v15  ;;  %v553_v13 = vsel %vm426_vm3, %v509_v9, 0.0  ;;  %v454_v15 = vsel %vm426_vm3, %v1109_v50, 0.0  ;;  %v512_v26 = vmul.f32 %v999_v55, %v999_v55 }
  0xc4   : > { %655 = vst.msk [vmem:[%s985_s25 + $0x54] sm:$0xf] %vm633_vm2, %v622_v61  ;;  %v450_v61 = vsel %vm426_vm3, %v1057_v16, 0.0  ;;  %v510_v16 = vmul.f32 %v1109_v50, %v1109_v50  ;;  %v513_v50 = vmul.f32 %v1019_v63, %v1019_v63 }
  0xc5   : > { %663 = vst.msk [vmem:[%s985_s25 + $0x74] sm:$0xf] %vm633_vm2, %v630_v8 }
  0xc7   : > { %v363_v18 = vpop.f32.mrf.mxu0  ;;  %v1136_v20 = vpop.f32.mrf.mxu2 }
  0xc8   : > { %v440_v22 = vsel %vm426_vm3, %v363_v18, 0.0  ;;  %v503_v24 = vmul.f32 %v363_v18, %v363_v18  ;;  %v608_v25 = vpack.c.bf16 %v363_v18, %v363_v18  ;;  %v383_v27 = vpop.f32.mrf.mxu1  ;;  %v623_v35 = vpack.c.bf16 %v1136_v20, %v1136_v20  ;;  %v1150_v36 = vpop.f32.mrf.mxu3 }
  0xc9   : > { %v441_v29 = vadd.f32 %v440_v22, %v439_v17  ;;  %v616_v30 = vpack.c.bf16 %v383_v27, %v383_v27  ;;  %v631_v58 = vpack.c.bf16 %v1150_v36, %v1150_v36  ;;  %v511_v17 = vmul.f32 %v383_v27, %v383_v27 }
  0xca   : > { %v541_v34 = vsel %vm426_vm3, %v503_v24, 0.0  ;;  %641 = vst.msk [vmem:[%s985_s25 + $0x1c] sm:$0xf] %vm633_vm2, %v608_v25  ;;  %v555_v22 = vsel %vm426_vm3, %v510_v16, 0.0  ;;  %v456_v24 = vsel %vm426_vm3, %v383_v27, 0.0  ;;  %v514_v27 = vmul.f32 %v1039_v7, %v1039_v7 }
  0xcb   : > { %v443_v37 = vadd.f32 %v442_v31, %v441_v29  ;;  %v542_v38 = vadd.f32 %v541_v34, %v540_v28  ;;  %649 = vst.msk [vmem:[%s985_s25 + $0x3c] sm:$0xf] %vm633_vm2, %v616_v30  ;;  %v458_v29 = vsel %vm426_vm3, %v999_v55, 0.0  ;;  %v557_v30 = vsel %vm426_vm3, %v511_v17, 0.0 }
  0xcc   : > { %656 = vst.msk [vmem:[%s985_s25 + $0x58] sm:$0xf] %vm633_vm2, %v623_v35  ;;  %v559_v34 = vsel %vm426_vm3, %v512_v26, 0.0  ;;  %v460_v35 = vsel %vm426_vm3, %v1019_v63, 0.0  ;;  %v462_v55 = vsel %vm426_vm3, %v1039_v7, 0.0  ;;  %v464_v63 = vsel %vm426_vm3, %v1055_v14, 0.0 }
  0xcd   : > { %v445_v41 = vadd.f32 %v444_v52, %v443_v37  ;;  %v544_v42 = vadd.f32 %v543_v39, %v542_v38  ;;  %664 = vst.msk [vmem:[%s985_s25 + $0x78] sm:$0xf] %vm633_vm2, %v631_v58  ;;  %v561_v39 = vsel %vm426_vm3, %v513_v50, 0.0  ;;  %v515_v52 = vmul.f32 %v1055_v14, %v1055_v14 }
  0xce   : > { %v466_v7 = vsel %vm426_vm3, %v1079_v23, 0.0  ;;  %v468_v14 = vsel %vm426_vm3, %v1105_v45, 0.0  ;;  %v474_v16 = vsel %vm426_vm3, %v1009_v60, 0.0  ;;  %v523_v26 = vmul.f32 %v1065_v19, %v1065_v19 }
  0xcf   : > { %v447_v47 = vadd.f32 %v446_v44, %v445_v41  ;;  %v546_v48 = vadd.f32 %v545_v43, %v544_v42  ;;  %v1166_v57 = vpop.f32.mrf.mxu2  ;;  %v563_v42 = vsel %vm426_vm3, %v514_v27, 0.0  ;;  %v516_v43 = vmul.f32 %v1079_v23, %v1079_v23 }
  0xd0   : > { %v624_v54 = vpack.c.bf16 %v1166_v57, %v1166_v57  ;;  %v1184_v0 = vpop.f32.mrf.mxu3  ;;  %v470_v23 = vsel %vm426_vm3, %v1136_v20, 0.0  ;;  %v526_v27 = vmul.f32 %v1150_v36, %v1150_v36 }
  0xd1   : > { %v548_v1 = vadd.f32 %v547_v49, %v546_v48  ;;  %v449_v56 = vadd.f32 %v448_v51, %v447_v47  ;;  %v632_v8 = vpack.c.bf16 %v1184_v0, %v1184_v0  ;;  %v565_v47 = vsel %vm426_vm3, %v515_v52, 0.0 }
  0xd2   : > { %657 = vst.msk [vmem:[%s985_s25 + $0x5c] sm:$0xf] %vm633_vm2, %v624_v54  ;;  %v517_v48 = vmul.f32 %v1105_v45, %v1105_v45  ;;  %v567_v53 = vsel %vm426_vm3, %v516_v43, 0.0  ;;  %v518_v54 = vmul.f32 %v1136_v20, %v1136_v20  ;;  %v521_v20 = vmul.f32 %v1029_v4, %v1029_v4 }
  0xd3   : > { %v451_v2 = vadd.f32 %v450_v61, %v449_v56  ;;  %v550_v3 = vadd.f32 %v549_v59, %v548_v1  ;;  %665 = vst.msk [vmem:[%s985_s25 + $0x7c] sm:$0xf] %vm633_vm2, %v632_v8  ;;  %v519_v59 = vmul.f32 %v1166_v57, %v1166_v57 }
  0xd4   : > { %v569_v58 = vsel %vm426_vm3, %v517_v48, 0.0  ;;  %v571_v45 = vsel %vm426_vm3, %v518_v54, 0.0 }
  0xd5   : > { %v453_v10 = vadd.f32 %v452_v6, %v451_v2  ;;  %v552_v11 = vadd.f32 %v551_v5, %v550_v3  ;;  %v520_v2 = vmul.f32 %v1009_v60, %v1009_v60  ;;  %v472_v3 = vsel %vm426_vm3, %v1166_v57, 0.0 }
  0xd6   : > { %v573_v8 = vsel %vm426_vm3, %v519_v59, 0.0  ;;  %v522_v57 = vmul.f32 %v1049_v12, %v1049_v12  ;;  %v478_v60 = vsel %vm426_vm3, %v1049_v12, 0.0  ;;  %v482_v12 = vsel %vm426_vm3, %v1092_v32, 0.0 }
  0xd7   : > { %v455_v18 = vadd.f32 %v454_v15, %v453_v10  ;;  %v554_v21 = vadd.f32 %v553_v13, %v552_v11  ;;  %v575_v13 = vsel %vm426_vm3, %v520_v2, 0.0  ;;  %v476_v15 = vsel %vm426_vm3, %v1029_v4, 0.0 }
  0xd8   : > { %v480_v4 = vsel %vm426_vm3, %v1065_v19, 0.0  ;;  %v484_v19 = vsel %vm426_vm3, %v1119_v62, 0.0 }
  0xd9   : > { %v556_v25 = vadd.f32 %v555_v22, %v554_v21  ;;  %v457_v28 = vadd.f32 %v456_v24, %v455_v18  ;;  %v577_v21 = vsel %vm426_vm3, %v521_v20, 0.0 }
  0xdb   : > { %v459_v31 = vadd.f32 %v458_v29, %v457_v28  ;;  %v558_v33 = vadd.f32 %v557_v30, %v556_v25  ;;  %v579_v25 = vsel %vm426_vm3, %v522_v57, 0.0  ;;  %v524_v28 = vmul.f32 %v1092_v32, %v1092_v32 }
  0xdc   : > { %v581_v30 = vsel %vm426_vm3, %v523_v26, 0.0  ;;  %v486_v32 = vsel %vm426_vm3, %v1150_v36, 0.0 }
  0xdd   : > { %v461_v37 = vadd.f32 %v460_v35, %v459_v31  ;;  %v560_v38 = vadd.f32 %v559_v34, %v558_v33  ;;  %v525_v31 = vmul.f32 %v1119_v62, %v1119_v62  ;;  %v583_v35 = vsel %vm426_vm3, %v524_v28, 0.0 }
  0xde   : > { %v488_v62 = vsel %vm426_vm3, %v1184_v0, 0.0 }
  0xdf   : > { %v463_v40 = vadd.f32 %v462_v55, %v461_v37  ;;  %v562_v41 = vadd.f32 %v561_v39, %v560_v38  ;;  %v585_v39 = vsel %vm426_vm3, %v525_v31, 0.0  ;;  %v527_v55 = vmul.f32 %v1184_v0, %v1184_v0 }
  0xe1   : > { %v564_v44 = vadd.f32 %v563_v42, %v562_v41  ;;  %v465_v46 = vadd.f32 %v464_v63, %v463_v40  ;;  %v587_v41 = vsel %vm426_vm3, %v526_v27, 0.0  ;;  %v589_v43 = vsel %vm426_vm3, %v527_v55, 0.0 }
  0xe3   : > { %v467_v49 = vadd.f32 %v466_v7, %v465_v46  ;;  %v566_v51 = vadd.f32 %v565_v47, %v564_v44 }
  0xe5   : > { %v469_v1 = vadd.f32 %v468_v14, %v467_v49  ;;  %v568_v56 = vadd.f32 %v567_v53, %v566_v51 }
  0xe7   : > { %v570_v61 = vadd.f32 %v569_v58, %v568_v56  ;;  %v471_v9 = vadd.f32 %v470_v23, %v469_v1 }
  0xe9   : > { %v572_v5 = vadd.f32 %v571_v45, %v570_v61  ;;  %v473_v6 = vadd.f32 %v472_v3, %v471_v9 }
  0xeb   : > { %v475_v10 = vadd.f32 %v474_v16, %v473_v6  ;;  %v574_v11 = vadd.f32 %v573_v8, %v572_v5 }
  0xed   : > { %v477_v17 = vadd.f32 %v476_v15, %v475_v10  ;;  %v576_v18 = vadd.f32 %v575_v13, %v574_v11 }
  0xef   : > { %v479_v22 = vadd.f32 %v478_v60, %v477_v17  ;;  %v578_v24 = vadd.f32 %v577_v21, %v576_v18 }
  0xf1   : > { %v580_v29 = vadd.f32 %v579_v25, %v578_v24  ;;  %v481_v50 = vadd.f32 %v480_v4, %v479_v22 }
  0xf3   : > { %v483_v33 = vadd.f32 %v482_v12, %v481_v50  ;;  %v582_v34 = vadd.f32 %v581_v30, %v580_v29 }
  0xf5   : > { %v485_v37 = vadd.f32 %v484_v19, %v483_v33  ;;  %v584_v38 = vadd.f32 %v583_v35, %v582_v34 }
  0xf7   : > { %v586_v52 = vadd.f32 %v585_v39, %v584_v38  ;;  %v487_v40 = vadd.f32 %v486_v32, %v485_v37 }
  0xf9   : > { %v588_v42 = vadd.f32 %v587_v41, %v586_v52  ;;  %v489_v63 = vadd.f32 %v488_v62, %v487_v40 }
  0xfb   : > { %v490_v44 = vrot.slane %v489_v63, 4  ;;  %v590_v46 = vadd.f32 %v589_v43, %v588_v42 }
  0xfd   : > { %v491_v47 = vadd.f32 %v490_v44, %v489_v63  ;;  %v591_v7 = vrot.slane %v590_v46, 4 }
  0xff   : > { %v492_v36 = vrot.slane %v491_v47, 2  ;;  %v592_v48 = vadd.f32 %v591_v7, %v590_v46 }
 0x101   : > { %v493_v49 = vadd.f32 %v492_v36, %v491_v47  ;;  %v593_v51 = vrot.slane %v592_v48, 2 }
 0x103   : > { %v494_v53 = vrot.slane %v493_v49, 1  ;;  %v594_v14 = vadd.f32 %v593_v51, %v592_v48 }
 0x105   : > { %v595_v54 = vrot.slane %v594_v14, 1  ;;  %v495_v0 = vadd.f32 %v494_v53, %v493_v49 }
 0x107   : > { %v596_v1 = vadd.f32 %v595_v54, %v594_v14 }
 0x109   : > { %v598_v56 = vsel %vm597_vm4, %v495_v0, %v596_v1 }
 0x10a   : > { %600 = vst.msk [vmem:[%s233_s29] sm:$0x3] %vm599_vm5, %v598_v56 }
 0x10b PF: > { %s14_s14 = sadd.s32 1, %s882_s14   ;;  %s1300_s12 = smov %s878_s13 }
 0x10c   : > { %p11_p5 = scmp.ge.s32.totalorder %s14_s14, 4   ;;  %s1301_s13 = smov %s1303_s15 }
 0x10e   :  { %13 = sbr.rel (!%p11_p5) target bundleno = 2 (0x2), region = 70 }

// kernel: res_unit_nhwc.5
= control target key start
LH: loop header
LB: loop body
LE: loop exit
PB: predicated region body
PF: predicated region fallthrough
CT: control target
= control target key end

     0   :  { %s865_s15 = smov 0   ;;  %s867_s16 = smov 0   ;;  %s1101_s0 = inlined_call_operand.vmem [shape: f32[2,16,16,8], index: 0, kind: input, shape index: {}]   ;;  %s1102_s1 = inlined_call_operand.vmem [shape: bf16[2,16,16,8], index: 1, kind: input, shape index: {}]   ;;  %s1103_s2 = inlined_call_operand.vmem [shape: f32[1,8], index: 2, kind: input, shape index: {}]   ;;  %s1104_s3 = inlined_call_operand.vmem [shape: f32[1,8], index: 3, kind: input, shape index: {}]   ;;  %s1105_s4 = inlined_call_operand.vmem [shape: f32[2,16,16,8], index: 4, kind: output, shape index: {}]  }
   0x1   :  { %s869_s17 = smov 0  }
   0x2 LB: > { %s26_s18 = sadd.s32 1, %s834_s16  ;;  %p699_p0 = scmp.ge.s32.totalorder %s838_s17, 1  ;;  %s838_s17 = sphi %s869_s17, %s14_s17   ;;  %s834_s16 = sphi %s867_s16, %s1107_s16   ;;  %s830_s15 = sphi %s865_s15, %s1106_s15  }
   0x3   : > { %p28_p1 = scmp.ge.s32.totalorder %s26_s18, 2  ;;  %p202_p2 = scmp.lt.s32.totalorder %s838_s17, 3 }
   0x5   : > { %s1109_s18 = smov (%p28_p1, %s26_s18), 0  ;;  %p203_p3 = pnand %p699_p0, %p202_p2 }
   0x6   : > { %p249_p4 = scmp.lt.s32.totalorder (!%p203_p3), %s830_s15, 1 }
   0x7   : > { %206 = sbr.rel (%p203_p3) target bundleno = 71 (0x47), region = 36 }
   0xc   : > { %s1111_s15 = smov (!%p249_p4, %s830_s15), 1  ;;  %v894_v0 = vld [vmem:[%s1103_s2] ss:$0 sm:$0xff]  ;;  %vm545_vm0 = vcmask 64512  }
   0xd   : > { %s709_s19 = sshll.u32 %s1111_s15, 7  ;;  %s708_s25 = sshll.u32 %s1111_s15, 8  ;;  %v901_v3 = vld [vmem:[%s1104_s3] ss:$0 sm:$0xff] }
   0xe   : > { %s889_s22 = scalar_lea.vmem %s1102_s1, %s709_s19  ;;  %s913_s30 = scalar_lea.vmem %s1101_s0, %s708_s25 }
   0xf   : > { %v712_v1 = vld [vmem:[%s889_s22] sm:$0xff]   ;;  %v775_v5 = vld [vmem:[%s889_s22 + $0x8] sm:$0xff]   ;;  %v776_v8 = vld [vmem:[%s889_s22 + $0x10] sm:$0xff]   ;;  %s939_s7 = scalar_lea.vmem %s1105_s4, %s708_s25 }
  0x10   : > { %v713_v2 = vunpack.c.l.bf16 %v712_v1  ;;  %v714_v4 = vunpack.c.h.bf16 %v712_v1  ;;  %v717_v6 = vunpack.c.l.bf16 %v775_v5  ;;  %v718_v7 = vunpack.c.h.bf16 %v775_v5  ;;  %v777_v13 = vld [vmem:[%s889_s22 + $0x18] sm:$0xff]   ;;  %v481_v27 = vld [vmem:[%s913_s30] sm:$0xff]  ;;  %v482_v31 = vld [vmem:[%s913_s30 + $0x8] sm:$0xff] }
  0x11   : > { %v721_v11 = vunpack.c.l.bf16 %v776_v8  ;;  %v722_v12 = vunpack.c.h.bf16 %v776_v8  ;;  %v725_v16 = vunpack.c.l.bf16 %v777_v13  ;;  %v726_v17 = vunpack.c.h.bf16 %v777_v13  ;;  %v483_v33 = vld [vmem:[%s913_s30 + $0x10] sm:$0xff]  ;;  %v484_v39 = vld [vmem:[%s913_s30 + $0x18] sm:$0xff]  ;;  %v485_v41 = vld [vmem:[%s913_s30 + $0x20] sm:$0xff] }
  0x12   : > { %v349_v9 = vmul.f32 %v894_v0, %v713_v2  ;;  %v350_v10 = vmul.f32 %v894_v0, %v714_v4  ;;  %v351_v14 = vmul.f32 %v894_v0, %v717_v6  ;;  %v352_v15 = vmul.f32 %v894_v0, %v718_v7  ;;  %v486_v45 = vld [vmem:[%s913_s30 + $0x28] sm:$0xff]  ;;  %v778_v48 = vld [vmem:[%s889_s22 + $0x20] sm:$0xff]   ;;  %v487_v53 = vld [vmem:[%s913_s30 + $0x30] sm:$0xff] }
  0x13   : > { %v353_v20 = vmul.f32 %v894_v0, %v721_v11  ;;  %v354_v21 = vmul.f32 %v894_v0, %v722_v12  ;;  %v355_v24 = vmul.f32 %v894_v0, %v725_v16  ;;  %v356_v25 = vmul.f32 %v894_v0, %v726_v17  ;;  %v488_v54 = vld [vmem:[%s913_s30 + $0x38] sm:$0xff]  ;;  %v779_v55 = vld [vmem:[%s889_s22 + $0x28] sm:$0xff]   ;;  %v780_v60 = vld [vmem:[%s889_s22 + $0x30] sm:$0xff]  }
  0x14   : > { %v385_v18 = vadd.f32 %v901_v3, %v349_v9  ;;  %v386_v19 = vadd.f32 %v901_v3, %v350_v10  ;;  %v387_v22 = vadd.f32 %v901_v3, %v351_v14  ;;  %v388_v23 = vadd.f32 %v901_v3, %v352_v15  ;;  %v781_v2 = vld [vmem:[%s889_s22 + $0x38] sm:$0xff]  }
  0x15   : > { %v389_v29 = vadd.f32 %v901_v3, %v353_v20  ;;  %v390_v30 = vadd.f32 %v901_v3, %v354_v21  ;;  %v391_v35 = vadd.f32 %v901_v3, %v355_v24  ;;  %v392_v36 = vadd.f32 %v901_v3, %v356_v25  ;;  %v489_v20 = vld [vmem:[%s913_s30 + $0x40] sm:$0xff] }
  0x16   : > { %v417_v26 = vmul.f32 0.1, %v385_v18  ;;  %v418_v28 = vmul.f32 0.1, %v386_v19  ;;  %v419_v32 = vmul.f32 0.1, %v387_v22  ;;  %v729_v63 = vunpack.c.l.bf16 %v778_v48 }
  0x17   : > { %v420_v34 = vmul.f32 0.1, %v388_v23  ;;  %v421_v40 = vmul.f32 0.1, %v389_v29  ;;  %v422_v42 = vmul.f32 0.1, %v390_v30  ;;  %v730_v1 = vunpack.c.h.bf16 %v778_v48 }
  0x18   : > { %v449_v37 = vmax.f32 %v385_v18, %v417_v26  ;;  %v450_v38 = vmax.f32 %v386_v19, %v418_v28  ;;  %v451_v43 = vmax.f32 %v387_v22, %v419_v32  ;;  %v423_v46 = vmul.f32 0.1, %v391_v35 }
  0x19   : > { %v452_v44 = vmax.f32 %v388_v23, %v420_v34  ;;  %v424_v47 = vmul.f32 0.1, %v392_v36  ;;  %v453_v51 = vmax.f32 %v389_v29, %v421_v40  ;;  %v454_v52 = vmax.f32 %v390_v30, %v422_v42 }
  0x1a   : > { %v513_v49 = vadd.f32 %v481_v27, %v449_v37  ;;  %v514_v50 = vadd.f32 %v482_v31, %v450_v38  ;;  %v515_v56 = vadd.f32 %v483_v33, %v451_v43  ;;  %v455_v58 = vmax.f32 %v391_v35, %v423_v46  ;;  %v490_v27 = vld [vmem:[%s913_s30 + $0x48] sm:$0xff]  ;;  %v491_v31 = vld [vmem:[%s913_s30 + $0x50] sm:$0xff]  ;;  %v492_v37 = vld [vmem:[%s913_s30 + $0x58] sm:$0xff] }
  0x1b   : > { %v516_v57 = vadd.f32 %v484_v39, %v452_v44  ;;  %v456_v59 = vmax.f32 %v392_v36, %v424_v47  ;;  %v517_v61 = vadd.f32 %v485_v41, %v453_v51  ;;  %v518_v62 = vadd.f32 %v486_v45, %v454_v52  ;;  %v493_v39 = vld [vmem:[%s913_s30 + $0x60] sm:$0xff]  ;;  %v494_v43 = vld [vmem:[%s913_s30 + $0x68] sm:$0xff]  ;;  %v495_v51 = vld [vmem:[%s913_s30 + $0x70] sm:$0xff] }
  0x1c   : > { %546 = vst.msk [vmem:[%s939_s7] sm:$0xff] %vm545_vm0, %v513_v49  ;;  %v519_v4 = vadd.f32 %v487_v53, %v455_v58  ;;  %v733_v6 = vunpack.c.l.bf16 %v779_v55  ;;  %v734_v7 = vunpack.c.h.bf16 %v779_v55  ;;  %v357_v8 = vmul.f32 %v894_v0, %v729_v63  ;;  %v782_v46 = vld [vmem:[%s889_s22 + $0x40] sm:$0xff]   ;;  %v496_v52 = vld [vmem:[%s913_s30 + $0x78] sm:$0xff]  ;;  %v783_v53 = vld [vmem:[%s889_s22 + $0x48] sm:$0xff]  }
  0x1d   : > { %547 = vst.msk [vmem:[%s939_s7 + $0x8] sm:$0xff] %vm545_vm0, %v514_v50  ;;  %v520_v5 = vadd.f32 %v488_v54, %v456_v59  ;;  %v358_v9 = vmul.f32 %v894_v0, %v730_v1  ;;  %v737_v10 = vunpack.c.l.bf16 %v780_v60  ;;  %v738_v11 = vunpack.c.h.bf16 %v780_v60  ;;  %v784_v58 = vld [vmem:[%s889_s22 + $0x50] sm:$0xff]   ;;  %v785_v63 = vld [vmem:[%s889_s22 + $0x58] sm:$0xff]  }
  0x1e   : > { %548 = vst.msk [vmem:[%s939_s7 + $0x10] sm:$0xff] %vm545_vm0, %v515_v56  ;;  %v359_v12 = vmul.f32 %v894_v0, %v733_v6  ;;  %v360_v13 = vmul.f32 %v894_v0, %v734_v7  ;;  %v741_v14 = vunpack.c.l.bf16 %v781_v2  ;;  %v742_v15 = vunpack.c.h.bf16 %v781_v2 }
  0x1f   : > { %549 = vst.msk [vmem:[%s939_s7 + $0x18] sm:$0xff] %vm545_vm0, %v516_v57  ;;  %v393_v16 = vadd.f32 %v901_v3, %v357_v8  ;;  %v394_v17 = vadd.f32 %v901_v3, %v358_v9  ;;  %v361_v18 = vmul.f32 %v894_v0, %v737_v10  ;;  %v362_v19 = vmul.f32 %v894_v0, %v738_v11 }
  0x20   : > { %550 = vst.msk [vmem:[%s939_s7 + $0x20] sm:$0xff] %vm545_vm0, %v517_v61  ;;  %v395_v21 = vadd.f32 %v901_v3, %v359_v12  ;;  %v396_v22 = vadd.f32 %v901_v3, %v360_v13  ;;  %v363_v23 = vmul.f32 %v894_v0, %v741_v14  ;;  %v364_v24 = vmul.f32 %v894_v0, %v742_v15 }
  0x21   : > { %551 = vst.msk [vmem:[%s939_s7 + $0x28] sm:$0xff] %vm545_vm0, %v518_v62  ;;  %v425_v25 = vmul.f32 0.1, %v393_v16  ;;  %v426_v26 = vmul.f32 0.1, %v394_v17  ;;  %v397_v28 = vadd.f32 %v901_v3, %v361_v18  ;;  %v398_v29 = vadd.f32 %v901_v3, %v362_v19  ;;  %v497_v18 = vld [vmem:[%s913_s30 + $0x80] sm:$0xff] }
  0x22   : > { %552 = vst.msk [vmem:[%s939_s7 + $0x30] sm:$0xff] %vm545_vm0, %v519_v4  ;;  %v427_v30 = vmul.f32 0.1, %v395_v21  ;;  %v428_v32 = vmul.f32 0.1, %v396_v22  ;;  %v399_v33 = vadd.f32 %v901_v3, %v363_v23  ;;  %v400_v34 = vadd.f32 %v901_v3, %v364_v24 }
  0x23   : > { %553 = vst.msk [vmem:[%s939_s7 + $0x38] sm:$0xff] %vm545_vm0, %v520_v5  ;;  %v457_v35 = vmax.f32 %v393_v16, %v425_v25  ;;  %v458_v36 = vmax.f32 %v394_v17, %v426_v26  ;;  %v429_v38 = vmul.f32 0.1, %v397_v28  ;;  %v430_v40 = vmul.f32 0.1, %v398_v29  ;;  %v498_v25 = vld [vmem:[%s913_s30 + $0x88] sm:$0xff] }
  0x24   : > { %v459_v41 = vmax.f32 %v395_v21, %v427_v30  ;;  %v460_v42 = vmax.f32 %v396_v22, %v428_v32  ;;  %v431_v44 = vmul.f32 0.1, %v399_v33  ;;  %v432_v45 = vmul.f32 0.1, %v400_v34 }
  0x25   : > { %v521_v47 = vadd.f32 %v489_v20, %v457_v35  ;;  %v522_v48 = vadd.f32 %v490_v27, %v458_v36  ;;  %v461_v49 = vmax.f32 %v397_v28, %v429_v38  ;;  %v462_v50 = vmax.f32 %v398_v29, %v430_v40  ;;  %v499_v29 = vld [vmem:[%s913_s30 + $0x90] sm:$0xff]  ;;  %v500_v35 = vld [vmem:[%s913_s30 + $0x98] sm:$0xff] }
  0x26   : > { %v523_v54 = vadd.f32 %v491_v31, %v459_v41  ;;  %v524_v55 = vadd.f32 %v492_v37, %v460_v42  ;;  %v463_v56 = vmax.f32 %v399_v33, %v431_v44  ;;  %v464_v57 = vmax.f32 %v400_v34, %v432_v45  ;;  %v501_v37 = vld [vmem:[%s913_s30 + $0xa0] sm:$0xff]  ;;  %v502_v41 = vld [vmem:[%s913_s30 + $0xa8] sm:$0xff] }
  0x27   : > { %554 = vst.msk [vmem:[%s939_s7 + $0x40] sm:$0xff] %vm545_vm0, %v521_v47  ;;  %v525_v59 = vadd.f32 %v493_v39, %v461_v49  ;;  %v526_v60 = vadd.f32 %v494_v43, %v462_v50  ;;  %v745_v61 = vunpack.c.l.bf16 %v782_v46  ;;  %v746_v62 = vunpack.c.h.bf16 %v782_v46  ;;  %v786_v44 = vld [vmem:[%s889_s22 + $0x60] sm:$0xff]   ;;  %v503_v49 = vld [vmem:[%s913_s30 + $0xb0] sm:$0xff]  ;;  %v504_v50 = vld [vmem:[%s913_s30 + $0xb8] sm:$0xff] }
  0x28   : > { %555 = vst.msk [vmem:[%s939_s7 + $0x48] sm:$0xff] %vm545_vm0, %v522_v48  ;;  %v527_v1 = vadd.f32 %v495_v51, %v463_v56  ;;  %v528_v2 = vadd.f32 %v496_v52, %v464_v57  ;;  %v749_v4 = vunpack.c.l.bf16 %v783_v53  ;;  %v750_v5 = vunpack.c.h.bf16 %v783_v53  ;;  %v787_v51 = vld [vmem:[%s889_s22 + $0x68] sm:$0xff]   ;;  %v788_v56 = vld [vmem:[%s889_s22 + $0x70] sm:$0xff]  }
  0x29   : > { %556 = vst.msk [vmem:[%s939_s7 + $0x50] sm:$0xff] %vm545_vm0, %v523_v54  ;;  %v365_v6 = vmul.f32 %v894_v0, %v745_v61  ;;  %v366_v7 = vmul.f32 %v894_v0, %v746_v62  ;;  %v753_v8 = vunpack.c.l.bf16 %v784_v58  ;;  %v754_v9 = vunpack.c.h.bf16 %v784_v58  ;;  %v789_v61 = vld [vmem:[%s889_s22 + $0x78] sm:$0xff]  }
  0x2a   : > { %557 = vst.msk [vmem:[%s939_s7 + $0x58] sm:$0xff] %vm545_vm0, %v524_v55  ;;  %v367_v10 = vmul.f32 %v894_v0, %v749_v4  ;;  %v368_v11 = vmul.f32 %v894_v0, %v750_v5  ;;  %v757_v12 = vunpack.c.l.bf16 %v785_v63  ;;  %v758_v13 = vunpack.c.h.bf16 %v785_v63 }
  0x2b   : > { %558 = vst.msk [vmem:[%s939_s7 + $0x60] sm:$0xff] %vm545_vm0, %v525_v59  ;;  %v401_v14 = vadd.f32 %v901_v3, %v365_v6  ;;  %v402_v15 = vadd.f32 %v901_v3, %v366_v7  ;;  %v369_v16 = vmul.f32 %v894_v0, %v753_v8  ;;  %v370_v17 = vmul.f32 %v894_v0, %v754_v9 }
  0x2c   : > { %559 = vst.msk [vmem:[%s939_s7 + $0x68] sm:$0xff] %vm545_vm0, %v526_v60  ;;  %v403_v19 = vadd.f32 %v901_v3, %v367_v10  ;;  %v404_v20 = vadd.f32 %v901_v3, %v368_v11  ;;  %v371_v21 = vmul.f32 %v894_v0, %v757_v12  ;;  %v372_v22 = vmul.f32 %v894_v0, %v758_v13 }
  0x2d   : > { %560 = vst.msk [vmem:[%s939_s7 + $0x70] sm:$0xff] %vm545_vm0, %v527_v1  ;;  %v433_v23 = vmul.f32 0.1, %v401_v14  ;;  %v434_v24 = vmul.f32 0.1, %v402_v15  ;;  %v405_v26 = vadd.f32 %v901_v3, %v369_v16  ;;  %v406_v27 = vadd.f32 %v901_v3, %v370_v17 }
  0x2e   : > { %561 = vst.msk [vmem:[%s939_s7 + $0x78] sm:$0xff] %vm545_vm0, %v528_v2  ;;  %v435_v28 = vmul.f32 0.1, %v403_v19  ;;  %v436_v30 = vmul.f32 0.1, %v404_v20  ;;  %v407_v31 = vadd.f32 %v901_v3, %v371_v21  ;;  %v408_v32 = vadd.f32 %v901_v3, %v372_v22  ;;  %v505_v21 = vld [vmem:[%s913_s30 + $0xc0] sm:$0xff] }
  0x2f   : > { %v465_v33 = vmax.f32 %v401_v14, %v433_v23  ;;  %v466_v34 = vmax.f32 %v402_v15, %v434_v24  ;;  %v437_v36 = vmul.f32 0.1, %v405_v26  ;;  %v438_v38 = vmul.f32 0.1, %v406_v27 }
  0x30   : > { %v467_v39 = vmax.f32 %v403_v19, %v435_v28  ;;  %v468_v40 = vmax.f32 %v404_v20, %v436_v30  ;;  %v439_v42 = vmul.f32 0.1, %v407_v31  ;;  %v440_v43 = vmul.f32 0.1, %v408_v32 }
  0x31   : > { %v529_v45 = vadd.f32 %v497_v18, %v465_v33  ;;  %v530_v46 = vadd.f32 %v498_v25, %v466_v34  ;;  %v469_v47 = vmax.f32 %v405_v26, %v437_v36  ;;  %v470_v48 = vmax.f32 %v406_v27, %v438_v38  ;;  %v506_v25 = vld [vmem:[%s913_s30 + $0xc8] sm:$0xff] }
  0x32   : > { %v531_v52 = vadd.f32 %v499_v29, %v467_v39  ;;  %v532_v53 = vadd.f32 %v500_v35, %v468_v40  ;;  %v471_v54 = vmax.f32 %v407_v31, %v439_v42  ;;  %v472_v55 = vmax.f32 %v408_v32, %v440_v43  ;;  %v507_v31 = vld [vmem:[%s913_s30 + $0xd0] sm:$0xff]  ;;  %v508_v32 = vld [vmem:[%s913_s30 + $0xd8] sm:$0xff]  ;;  %v510_v43 = vld [vmem:[%s913_s30 + $0xe8] sm:$0xff] }
  0x33   : > { %562 = vst.msk [vmem:[%s939_s7 + $0x80] sm:$0xff] %vm545_vm0, %v529_v45  ;;  %v533_v57 = vadd.f32 %v501_v37, %v469_v47  ;;  %v534_v58 = vadd.f32 %v502_v41, %v470_v48  ;;  %v761_v59 = vunpack.c.l.bf16 %v786_v44  ;;  %v762_v60 = vunpack.c.h.bf16 %v786_v44  ;;  %v509_v37 = vld [vmem:[%s913_s30 + $0xe0] sm:$0xff]  ;;  %v511_v47 = vld [vmem:[%s913_s30 + $0xf0] sm:$0xff] }
  0x34   : > { %563 = vst.msk [vmem:[%s939_s7 + $0x88] sm:$0xff] %vm545_vm0, %v530_v46  ;;  %v535_v62 = vadd.f32 %v503_v49, %v471_v54  ;;  %v536_v63 = vadd.f32 %v504_v50, %v472_v55  ;;  %v765_v1 = vunpack.c.l.bf16 %v787_v51  ;;  %v766_v2 = vunpack.c.h.bf16 %v787_v51  ;;  %v512_v50 = vld [vmem:[%s913_s30 + $0xf8] sm:$0xff] }
  0x35   : > { %564 = vst.msk [vmem:[%s939_s7 + $0x90] sm:$0xff] %vm545_vm0, %v531_v52  ;;  %v373_v4 = vmul.f32 %v894_v0, %v761_v59  ;;  %v374_v5 = vmul.f32 %v894_v0, %v762_v60  ;;  %v769_v6 = vunpack.c.l.bf16 %v788_v56  ;;  %v770_v7 = vunpack.c.h.bf16 %v788_v56 }
  0x36   : > { %565 = vst.msk [vmem:[%s939_s7 + $0x98] sm:$0xff] %vm545_vm0, %v532_v53  ;;  %v375_v8 = vmul.f32 %v894_v0, %v765_v1  ;;  %v376_v9 = vmul.f32 %v894_v0, %v766_v2  ;;  %v773_v10 = vunpack.c.l.bf16 %v789_v61  ;;  %v774_v11 = vunpack.c.h.bf16 %v789_v61 }
  0x37   : > { %566 = vst.msk [vmem:[%s939_s7 + $0xa0] sm:$0xff] %vm545_vm0, %v533_v57  ;;  %v409_v12 = vadd.f32 %v901_v3, %v373_v4  ;;  %v410_v13 = vadd.f32 %v901_v3, %v374_v5  ;;  %v377_v14 = vmul.f32 %v894_v0, %v769_v6  ;;  %v378_v15 = vmul.f32 %v894_v0, %v770_v7 }
  0x38   : > { %567 = vst.msk [vmem:[%s939_s7 + $0xa8] sm:$0xff] %vm545_vm0, %v534_v58  ;;  %v411_v16 = vadd.f32 %v901_v3, %v375_v8  ;;  %v412_v17 = vadd.f32 %v901_v3, %v376_v9  ;;  %v379_v18 = vmul.f32 %v894_v0, %v773_v10  ;;  %v380_v19 = vmul.f32 %v894_v0, %v774_v11 }
  0x39   : > { %568 = vst.msk [vmem:[%s939_s7 + $0xb0] sm:$0xff] %vm545_vm0, %v535_v62  ;;  %v441_v20 = vmul.f32 0.1, %v409_v12  ;;  %v442_v22 = vmul.f32 0.1, %v410_v13  ;;  %v413_v23 = vadd.f32 %v901_v3, %v377_v14  ;;  %v414_v24 = vadd.f32 %v901_v3, %v378_v15 }
  0x3a   : > { %569 = vst.msk [vmem:[%s939_s7 + $0xb8] sm:$0xff] %vm545_vm0, %v536_v63  ;;  %v443_v26 = vmul.f32 0.1, %v411_v16  ;;  %v444_v27 = vmul.f32 0.1, %v412_v17  ;;  %v415_v28 = vadd.f32 %v901_v3, %v379_v18  ;;  %v416_v0 = vadd.f32 %v901_v3, %v380_v19 }
  0x3b   : > { %v473_v29 = vmax.f32 %v409_v12, %v441_v20  ;;  %v474_v30 = vmax.f32 %v410_v13, %v442_v22  ;;  %v445_v33 = vmul.f32 0.1, %v413_v23  ;;  %v446_v34 = vmul.f32 0.1, %v414_v24 }
  0x3c   : > { %v475_v35 = vmax.f32 %v411_v16, %v443_v26  ;;  %v476_v36 = vmax.f32 %v412_v17, %v444_v27  ;;  %v447_v38 = vmul.f32 0.1, %v415_v28  ;;  %v448_v39 = vmul.f32 0.1, %v416_v0 }
  0x3d   : > { %v537_v40 = vadd.f32 %v505_v21, %v473_v29  ;;  %v538_v41 = vadd.f32 %v506_v25, %v474_v30  ;;  %v477_v3 = vmax.f32 %v413_v23, %v445_v33  ;;  %v478_v42 = vmax.f32 %v414_v24, %v446_v34 }
  0x3e   : > { %v539_v44 = vadd.f32 %v507_v31, %v475_v35  ;;  %v540_v45 = vadd.f32 %v508_v32, %v476_v36  ;;  %v479_v46 = vmax.f32 %v415_v28, %v447_v38  ;;  %v480_v48 = vmax.f32 %v416_v0, %v448_v39 }
  0x3f   : > { %570 = vst.msk [vmem:[%s939_s7 + $0xc0] sm:$0xff] %vm545_vm0, %v537_v40  ;;  %v541_v49 = vadd.f32 %v509_v37, %v477_v3  ;;  %v542_v51 = vadd.f32 %v510_v43, %v478_v42 }
  0x40   : > { %571 = vst.msk [vmem:[%s939_s7 + $0xc8] sm:$0xff] %vm545_vm0, %v538_v41  ;;  %v543_v52 = vadd.f32 %v511_v47, %v479_v46  ;;  %v544_v53 = vadd.f32 %v512_v50, %v480_v48 }
  0x41   : > { %572 = vst.msk [vmem:[%s939_s7 + $0xd0] sm:$0xff] %vm545_vm0, %v539_v44 }
  0x42   : > { %573 = vst.msk [vmem:[%s939_s7 + $0xd8] sm:$0xff] %vm545_vm0, %v540_v45 }
  0x43   : > { %574 = vst.msk [vmem:[%s939_s7 + $0xe0] sm:$0xff] %vm545_vm0, %v541_v49 }
  0x44   : > { %575 = vst.msk [vmem:[%s939_s7 + $0xe8] sm:$0xff] %vm545_vm0, %v542_v51 }
  0x45   : > { %576 = vst.msk [vmem:[%s939_s7 + $0xf0] sm:$0xff] %vm545_vm0, %v543_v52 }
  0x46   : > { %577 = vst.msk [vmem:[%s939_s7 + $0xf8] sm:$0xff] %vm545_vm0, %v544_v53 }
  0x47 PF: > { %s14_s17 = sadd.s32 1, %s838_s17   ;;  %s1106_s15 = smov %s834_s16 }
  0x48   : > { %p11_p5 = scmp.ge.s32.totalorder %s14_s17, 4   ;;  %s1107_s16 = smov %s1109_s18 }
  0x4a   :  { %13 = sbr.rel (!%p11_p5) target bundleno = 2 (0x2), region = 69 }

// kernel: res_unit_nhwc.4
= control target key start
LH: loop header
LB: loop body
LE: loop exit
PB: predicated region body
PF: predicated region fallthrough
CT: control target
= control target key end

     0   :  { %s2217_s18 = smov 0   ;;  %s3392_s0 = inlined_call_operand.vmem [shape: bf16[2,16,16,4], index: 0, kind: input, shape index: {}]   ;;  %s3393_s1 = inlined_call_operand.vmem [shape: f32[1,4], index: 1, kind: input, shape index: {}]   ;;  %s3394_s2 = inlined_call_operand.vmem [shape: f32[1,4], index: 2, kind: input, shape index: {}]   ;;  %s3395_s3 = inlined_call_operand.vmem [shape: bf16[36,8], index: 3, kind: input, shape index: {}]   ;;  %s3396_s4 = inlined_call_operand.vmem [shape: bf16[2,16,16,8], index: 4, kind: output, shape index: {0}]   ;;  %s3397_s5 = inlined_call_operand.vmem [shape: f32[2,2,8], index: 5, kind: output, shape index: {1}]  }
   0x1 LB: > { %s2021_s19 = sadd.s32 4294967295, %s2176_s18   ;;  %p2025_p0 = scmp.ge.s32.totalorder %s2176_s18, 1  ;;  %s2176_s18 = sphi %s2217_s18, %s16_s18  }
   0x2   : > { %p190_p1 = scmp.lt.s32.totalorder %s2176_s18, 3 }
   0x4   : > { %p191_p2 = pnand %p2025_p0, %p190_p1 }
   0x6   : > { %194 = sbr.rel (%p191_p2) target bundleno = 711 (0x2c7), region = 36 }
   0xb   : > { %vm702_vm0 = vcmask 1040384   ;;  %vm703_vm1 = vsmask.f32 256  ;;  %v2178_v0 = vmov 0   ;;  %p222_p3 = scmp.lt.s32.totalorder %s2021_s19, 1  ;;  %s2179_s28 = smov 4  }
   0xc   : > { %v552_v1 = vrot.slane %v2178_v0, 7  ;;  %vm2226_vm2 = vmand %vm702_vm0, %vm703_vm1  ;;  %v2254_v10 = vld [vmem:[%s3393_s1] ss:$0 sm:$0xff]  ;;  %vm739_vm3 = vsmask.f32 7424  ;;  %vm964_vm4 = vcmask 1046528  }
   0xd   : > { %s3408_s19 = smov (!%p222_p3, %s2021_s19), 1  ;;  %v2262_v17 = vld [vmem:[%s3394_s2] ss:$0 sm:$0xff]  ;;  %s2180_s29 = smov 8   ;;  %vm1319_vm5 = vcmask 64512   ;;  %vm1286_vm6 = vcmask 31744  }
   0xe   : > { %v2232_v3 = vsel %vm2226_vm2, 0, %v552_v1  ;;  %v2236_v4 = vsel %vm2226_vm2, %v552_v1, 0  ;;  %s2057_s20 = sshll.u32 %s3408_s19, 7  ;;  %s2181_s30 = smov 16   ;;  %vm1603_vm7 = vcmask 1041408   ;;  %vm1352_vm8 = vcmask 97280  }
   0xf   : > { %v741_v5 = vshrl.u32 %v2232_v3, 16  ;;  %v743_v6 = vshll.u32 %v2232_v3, 16  ;;  %v748_v7 = vshll.u32 %v2236_v4, 16  ;;  %s2249_s23 = scalar_lea.vmem %s3392_s0, %s2057_s20  ;;  %s2182_s6 = smov 28   ;;  %vm1385_vm9 = vcmask 130048  }
  0x10   : > { %v2127_v11 = vld [vmem:[%s2249_s23 + $0x18] sm:$0xff]   ;;  %v2125_v12 = vld [vmem:[%s2249_s23 + $0x8] sm:$0xff]   ;;  %v2062_v13 = vld [vmem:[%s2249_s23] sm:$0xff]   ;;  %s2183_s7 = smov 12   ;;  %s2184_s8 = smov 24   ;;  %vm1418_vm10 = vcmask 162816  }
  0x11   : > { %v745_v8 = vrot.slane %v743_v6, 1  ;;  %v750_v9 = vrot.slane %v748_v7, 1  ;;  %v2075_v15 = vunpack.c.l.bf16 %v2127_v11  ;;  %v2076_v16 = vunpack.c.h.bf16 %v2127_v11  ;;  %v2128_v19 = vld [vmem:[%s2249_s23 + $0x20] sm:$0xff]   ;;  %v2126_v0 = vld [vmem:[%s2249_s23 + $0x10] sm:$0xff]   ;;  %s2185_s9 = smov 20   ;;  %s2186_s10 = smov 32  }
  0x12   : > { %v2067_v18 = vunpack.c.l.bf16 %v2125_v12  ;;  %v2068_v20 = vunpack.c.h.bf16 %v2125_v12  ;;  %v2063_v21 = vunpack.c.l.bf16 %v2062_v13  ;;  %v2064_v22 = vunpack.c.h.bf16 %v2062_v13  ;;  %s3101_s26 = scalar_lea.vmem %s3396_s4, %s2057_s20  ;;  %s2030_s20 = sshll.u32 %s3408_s19, 1 }
  0x13   : > { %v746_v14 = vor.u32 %v745_v8, %v741_v5  ;;  %v2079_v23 = vunpack.c.l.bf16 %v2128_v19  ;;  %v311_v25 = vmul.f32 %v2254_v10, %v2075_v15  ;;  %v312_v26 = vmul.f32 %v2254_v10, %v2076_v16  ;;  %v2288_v8 = vld [vmem:[%s2249_s23 + $0x28] sm:$0xff]  }
  0x14   : > { %v307_v27 = vmul.f32 %v2254_v10, %v2067_v18  ;;  %v308_v28 = vmul.f32 %v2254_v10, %v2068_v20  ;;  %v305_v29 = vmul.f32 %v2254_v10, %v2063_v21  ;;  %v306_v30 = vmul.f32 %v2254_v10, %v2064_v22 }
  0x15   : > { %v2266_v24 = vsel %vm739_vm3, %v746_v14, %v750_v9  ;;  %v2080_v31 = vunpack.c.h.bf16 %v2128_v19  ;;  %v347_v32 = vadd.f32 %v2262_v17, %v311_v25  ;;  %v348_v33 = vadd.f32 %v2262_v17, %v312_v26 }
  0x16   : > { %3403 = vst [vmem:[#allocation2_spill] sm:$0xff] %v2266_v24  ;;  %1030 = vrot.lane.b32.xlu0 %v2266_v24, %s2179_s28  ;;  %v343_v34 = vadd.f32 %v2262_v17, %v307_v27  ;;  %v313_v35 = vmul.f32 %v2254_v10, %v2079_v23  ;;  %v344_v36 = vadd.f32 %v2262_v17, %v308_v28  ;;  %v2071_v16 = vunpack.c.l.bf16 %v2126_v0 }
  0x17   : > { %v341_v37 = vadd.f32 %v2262_v17, %v305_v29  ;;  %v342_v38 = vadd.f32 %v2262_v17, %v306_v30  ;;  %v314_v39 = vmul.f32 %v2254_v10, %v2080_v31  ;;  %v379_v40 = vmul.f32 0.1, %v347_v32 }
  0x18   : > { %v380_v41 = vmul.f32 0.1, %v348_v33  ;;  %v375_v42 = vmul.f32 0.1, %v343_v34  ;;  %v349_v43 = vadd.f32 %v2262_v17, %v313_v35  ;;  %v376_v44 = vmul.f32 0.1, %v344_v36 }
  0x19   : > { %v373_v45 = vmul.f32 0.1, %v341_v37  ;;  %v374_v46 = vmul.f32 0.1, %v342_v38  ;;  %v350_v47 = vadd.f32 %v2262_v17, %v314_v39  ;;  %v411_v48 = vmax.f32 %v347_v32, %v379_v40 }
  0x1a   : > { %v412_v49 = vmax.f32 %v348_v33, %v380_v41  ;;  %v407_v50 = vmax.f32 %v343_v34, %v375_v42  ;;  %v381_v51 = vmul.f32 0.1, %v349_v43  ;;  %v408_v52 = vmax.f32 %v344_v36, %v376_v44 }
  0x1b   : > { %v405_v53 = vmax.f32 %v341_v37, %v373_v45  ;;  %v406_v54 = vmax.f32 %v342_v38, %v374_v46  ;;  %v382_v55 = vmul.f32 0.1, %v350_v47  ;;  %v443_v56 = vpack.c.bf16 %v411_v48, %v411_v48 }
  0x1c   : > { %v444_v57 = vpack.c.bf16 %v412_v49, %v412_v49  ;;  %v439_v58 = vpack.c.bf16 %v407_v50, %v407_v50  ;;  %v413_v59 = vmax.f32 %v349_v43, %v381_v51  ;;  %v440_v60 = vpack.c.bf16 %v408_v52, %v408_v52 }
  0x1d   : > { %v437_v61 = vpack.c.bf16 %v405_v53, %v405_v53  ;;  %v438_v62 = vpack.c.bf16 %v406_v54, %v406_v54  ;;  %v414_v63 = vmax.f32 %v350_v47, %v382_v55  ;;  %v507_v1 = vunpack.c.l.b16 %v443_v56 }
  0x1e   : > { %v508_v5 = vunpack.c.l.b16 %v444_v57  ;;  %v503_v6 = vunpack.c.l.b16 %v439_v58  ;;  %v445_v7 = vpack.c.bf16 %v413_v59, %v413_v59  ;;  %v504_v9 = vunpack.c.l.b16 %v440_v60 }
  0x1f   : > { %v501_v11 = vunpack.c.l.b16 %v437_v61  ;;  %v502_v12 = vunpack.c.l.b16 %v438_v62  ;;  %v446_v13 = vpack.c.bf16 %v414_v63, %v414_v63  ;;  %v2072_v18 = vunpack.c.h.bf16 %v2126_v0 }
  0x20   : > { %v536_v14 = vpack.c.b16 %v508_v5, %v507_v1  ;;  %v509_v15 = vunpack.c.l.b16 %v445_v7  ;;  %v534_v19 = vpack.c.b16 %v504_v9, %v503_v6  ;;  %v2083_v22 = vunpack.c.l.bf16 %v2288_v8 }
  0x21   : > { %v533_v20 = vpack.c.b16 %v502_v12, %v501_v11  ;;  %v510_v21 = vunpack.c.l.b16 %v446_v13  ;;  %v309_v26 = vmul.f32 %v2254_v10, %v2071_v16  ;;  %v310_v27 = vmul.f32 %v2254_v10, %v2072_v18 }
  0x22   : > { %v578_v23 = vshrl.u32 %v536_v14, 16  ;;  %v581_v25 = vshll.u32 %v536_v14, 16  ;;  %v564_v28 = vshrl.u32 %v534_v19, 16  ;;  %v567_v29 = vshll.u32 %v534_v19, 16 }
  0x23   : > { %v557_v30 = vshrl.u32 %v533_v20, 16  ;;  %v560_v31 = vshll.u32 %v533_v20, 16  ;;  %v537_v33 = vpack.c.b16 %v510_v21, %v509_v15  ;;  %v345_v34 = vadd.f32 %v2262_v17, %v309_v26  ;;  %v2131_v21 = vld [vmem:[%s2249_s23 + $0x38] sm:$0xff]  }
  0x24   : > { %v580_v32 = vrot.slane %v578_v23, 7  ;;  %v346_v35 = vadd.f32 %v2262_v17, %v310_v27  ;;  %v566_v36 = vrot.slane %v564_v28, 7  ;;  %v2084_v38 = vunpack.c.h.bf16 %v2288_v8  ;;  %v2130_v27 = vld [vmem:[%s2249_s23 + $0x30] sm:$0xff]  }
  0x25   : > { %v559_v37 = vrot.slane %v557_v30, 7  ;;  %v315_v39 = vmul.f32 %v2254_v10, %v2083_v22  ;;  %v585_v42 = vshrl.u32 %v537_v33, 16  ;;  %v588_v43 = vshll.u32 %v537_v33, 16 }
  0x26   : > { %v583_v40 = vor.u32 %v581_v25, %v580_v32  ;;  %v2299_v41 = vsel %vm2226_vm2, %v580_v32, 0  ;;  %v569_v45 = vor.u32 %v567_v29, %v566_v36  ;;  %v2304_v46 = vsel %vm2226_vm2, %v566_v36, 0 }
  0x27   : > { %v796_v44 = vshll.u32 %v2299_v41, 16  ;;  %v562_v47 = vor.u32 %v560_v31, %v559_v37  ;;  %v772_v49 = vshll.u32 %v2304_v46, 16  ;;  %v2313_v50 = vsel %vm2226_vm2, %v559_v37, 0 }
  0x28   : > { %v2308_v48 = vsel %vm2226_vm2, 0, %v583_v40  ;;  %v587_v51 = vrot.slane %v585_v42, 7  ;;  %v2319_v55 = vsel %vm2226_vm2, 0, %v569_v45  ;;  %v760_v63 = vshll.u32 %v2313_v50, 16 }
  0x29   : > { %v789_v52 = vshrl.u32 %v2308_v48, 16  ;;  %v791_v53 = vshll.u32 %v2308_v48, 16  ;;  %v798_v54 = vrot.slane %v796_v44, 1  ;;  %v765_v56 = vshrl.u32 %v2319_v55, 16 }
  0x2a   : > { %v767_v57 = vshll.u32 %v2319_v55, 16  ;;  %v774_v58 = vrot.slane %v772_v49, 1  ;;  %v2325_v59 = vsel %vm2226_vm2, 0, %v562_v47  ;;  %v590_v1 = vor.u32 %v588_v43, %v587_v51  ;;  %v2132_v47 = vld [vmem:[%s2249_s23 + $0x40] sm:$0xff]  }
  0x2b   : > { %v793_v60 = vrot.slane %v791_v53, 1  ;;  %v753_v61 = vshrl.u32 %v2325_v59, 16  ;;  %v755_v62 = vshll.u32 %v2325_v59, 16  ;;  %v2332_v5 = vsel %vm2226_vm2, %v587_v51, 0 }
  0x2c   : > { %v769_v0 = vrot.slane %v767_v57, 1  ;;  %v377_v6 = vmul.f32 0.1, %v345_v34  ;;  %v762_v9 = vrot.slane %v760_v63, 1  ;;  %v808_v11 = vshll.u32 %v2332_v5, 16 }
  0x2d   : > { %v794_v7 = vor.u32 %v793_v60, %v789_v52  ;;  %v757_v8 = vrot.slane %v755_v62, 1  ;;  %v2337_v13 = vsel %vm2226_vm2, 0, %v590_v1  ;;  %v378_v14 = vmul.f32 0.1, %v346_v35 }
  0x2e   : > { %v770_v12 = vor.u32 %v769_v0, %v765_v56  ;;  %v409_v15 = vmax.f32 %v345_v34, %v377_v6  ;;  %v801_v19 = vshrl.u32 %v2337_v13, 16  ;;  %v803_v20 = vshll.u32 %v2337_v13, 16 }
  0x2f   : > { %v2340_v16 = vsel %vm739_vm3, %v794_v7, %v798_v54  ;;  %v758_v18 = vor.u32 %v757_v8, %v753_v61  ;;  %v810_v23 = vrot.slane %v808_v11, 1  ;;  %v410_v25 = vmax.f32 %v346_v35, %v378_v14 }
  0x30   : > { %1038 = vrot.lane.b32.xlu2 %v2340_v16, %s2179_s28  ;;  %v2348_v22 = vsel %vm739_vm3, %v770_v12, %v774_v58  ;;  %v441_v26 = vpack.c.bf16 %v409_v15, %v409_v15  ;;  %v805_v29 = vrot.slane %v803_v20, 1  ;;  %v316_v30 = vmul.f32 %v2254_v10, %v2084_v38 }
  0x31   : > { %1034 = vrot.lane.b32.xlu1 %v2348_v22, %s2179_s28  ;;  %v2354_v28 = vsel %vm739_vm3, %v758_v18, %v762_v9  ;;  %v351_v31 = vadd.f32 %v2262_v17, %v315_v39  ;;  %v442_v32 = vpack.c.bf16 %v410_v25, %v410_v25  ;;  %v2091_v34 = vunpack.c.l.bf16 %v2131_v21 }
  0x32   : > { %1032 = vrot.lane.b32.xlu0 %v2354_v28, %s2179_s28  ;;  %v505_v33 = vunpack.c.l.b16 %v441_v26  ;;  %v2092_v35 = vunpack.c.h.bf16 %v2131_v21  ;;  %v806_v36 = vor.u32 %v805_v29, %v801_v19  ;;  %v352_v37 = vadd.f32 %v2262_v17, %v316_v30 }
  0x33   : > { %v383_v40 = vmul.f32 0.1, %v351_v31  ;;  %v2087_v42 = vunpack.c.l.bf16 %v2130_v27  ;;  %v506_v43 = vunpack.c.l.b16 %v442_v32  ;;  %v319_v44 = vmul.f32 %v2254_v10, %v2091_v34 }
  0x34   : > { %v320_v45 = vmul.f32 %v2254_v10, %v2092_v35  ;;  %v2088_v38 = vunpack.c.h.bf16 %v2130_v27  ;;  %v2365_v39 = vsel %vm739_vm3, %v806_v36, %v810_v23  ;;  %v384_v49 = vmul.f32 0.1, %v352_v37 }
  0x35   : > { %v415_v51 = vmax.f32 %v351_v31, %v383_v40  ;;  %v317_v52 = vmul.f32 %v2254_v10, %v2087_v42  ;;  %v535_v53 = vpack.c.b16 %v506_v43, %v505_v33  ;;  %v355_v54 = vadd.f32 %v2262_v17, %v319_v44 }
  0x36   : > { %v356_v56 = vadd.f32 %v2262_v17, %v320_v45  ;;  %v318_v57 = vmul.f32 %v2254_v10, %v2088_v38  ;;  %v416_v58 = vmax.f32 %v352_v37, %v384_v49  ;;  %v2095_v62 = vunpack.c.l.bf16 %v2132_v47  ;;  %v2134_v45 = vld [vmem:[%s2249_s23 + $0x50] sm:$0xff]  }
  0x37   : > { %v447_v60 = vpack.c.bf16 %v415_v51, %v415_v51  ;;  %v353_v61 = vadd.f32 %v2262_v17, %v317_v52  ;;  %v571_v63 = vshrl.u32 %v535_v53, 16  ;;  %v574_v0 = vshll.u32 %v535_v53, 16 }
  0x38   : > { %1040 = vrot.lane.b32.xlu2 %v2365_v39, %s2179_s28  ;;  %v387_v1 = vmul.f32 0.1, %v355_v54  ;;  %v388_v6 = vmul.f32 0.1, %v356_v56  ;;  %v448_v7 = vpack.c.bf16 %v416_v58, %v416_v58  ;;  %v354_v9 = vadd.f32 %v2262_v17, %v318_v57 }
  0x39   : > { %v511_v8 = vunpack.c.l.b16 %v447_v60  ;;  %v385_v11 = vmul.f32 0.1, %v353_v61  ;;  %v573_v12 = vrot.slane %v571_v63, 7  ;;  %v2096_v18 = vunpack.c.h.bf16 %v2132_v47 }
  0x3a   : > { %v419_v14 = vmax.f32 %v355_v54, %v387_v1  ;;  %v420_v15 = vmax.f32 %v356_v56, %v388_v6  ;;  %v512_v19 = vunpack.c.l.b16 %v448_v7  ;;  %v386_v20 = vmul.f32 0.1, %v354_v9 }
  0x3b   : > { %v417_v21 = vmax.f32 %v353_v61, %v385_v11  ;;  %v321_v23 = vmul.f32 %v2254_v10, %v2095_v62  ;;  %v576_v25 = vor.u32 %v574_v0, %v573_v12  ;;  %v2378_v26 = vsel %vm2226_vm2, %v573_v12, 0 }
  0x3c   : > { %v451_v27 = vpack.c.bf16 %v419_v14, %v419_v14  ;;  %v452_v29 = vpack.c.bf16 %v420_v15, %v420_v15  ;;  %v784_v30 = vshll.u32 %v2378_v26, 16  ;;  %v538_v31 = vpack.c.b16 %v512_v19, %v511_v8 }
  0x3d   : > { %v418_v32 = vmax.f32 %v354_v9, %v386_v20  ;;  %v449_v33 = vpack.c.bf16 %v417_v21, %v417_v21  ;;  %v2383_v34 = vsel %vm2226_vm2, 0, %v576_v25  ;;  %v322_v37 = vmul.f32 %v2254_v10, %v2096_v18 }
  0x3e   : > { %v515_v35 = vunpack.c.l.b16 %v451_v27  ;;  %v516_v36 = vunpack.c.l.b16 %v452_v29  ;;  %v777_v40 = vshrl.u32 %v2383_v34, 16  ;;  %v779_v42 = vshll.u32 %v2383_v34, 16 }
  0x3f   : > { %v786_v43 = vrot.slane %v784_v30, 1  ;;  %v592_v44 = vshrl.u32 %v538_v31, 16  ;;  %v595_v38 = vshll.u32 %v538_v31, 16  ;;  %v450_v49 = vpack.c.bf16 %v418_v32, %v418_v32 }
  0x40   : > { %v540_v47 = vpack.c.b16 %v516_v36, %v515_v35  ;;  %v513_v51 = vunpack.c.l.b16 %v449_v33  ;;  %v781_v52 = vrot.slane %v779_v42, 1  ;;  %v357_v54 = vadd.f32 %v2262_v17, %v321_v23 }
  0x41   : > { %v594_v53 = vrot.slane %v592_v44, 7  ;;  %v358_v56 = vadd.f32 %v2262_v17, %v322_v37  ;;  %v514_v60 = vunpack.c.l.b16 %v450_v49  ;;  %v2103_v61 = vunpack.c.l.bf16 %v2134_v45 }
  0x42   : > { %v606_v57 = vshrl.u32 %v540_v47, 16  ;;  %v609_v58 = vshll.u32 %v540_v47, 16  ;;  %v782_v62 = vor.u32 %v781_v52, %v777_v40  ;;  %v389_v1 = vmul.f32 0.1, %v357_v54 }
  0x43   : > { %v597_v63 = vor.u32 %v595_v38, %v594_v53  ;;  %v2393_v0 = vsel %vm2226_vm2, %v594_v53, 0  ;;  %v539_v8 = vpack.c.b16 %v514_v60, %v513_v51  ;;  %v390_v9 = vmul.f32 0.1, %v358_v56  ;;  %v2133_v38 = vld [vmem:[%s2249_s23 + $0x48] sm:$0xff]  }
  0x44   : > { %v820_v6 = vshll.u32 %v2393_v0, 16  ;;  %v608_v7 = vrot.slane %v606_v57, 7  ;;  %v2397_v11 = vsel %vm739_vm3, %v782_v62, %v786_v43  ;;  %v421_v14 = vmax.f32 %v357_v54, %v389_v1 }
  0x45   : > { %v2401_v12 = vsel %vm2226_vm2, 0, %v597_v63  ;;  %v2104_v15 = vunpack.c.h.bf16 %v2134_v45  ;;  %1036 = vrot.lane.b32.xlu1 %v2397_v11, %s2179_s28  ;;  %v599_v25 = vshrl.u32 %v539_v8, 16  ;;  %v602_v27 = vshll.u32 %v539_v8, 16  ;;  %v2135_v8 = vld [vmem:[%s2249_s23 + $0x58] sm:$0xff]  }
  0x46   : > { %v813_v18 = vshrl.u32 %v2401_v12, 16  ;;  %v815_v19 = vshll.u32 %v2401_v12, 16  ;;  %v822_v20 = vrot.slane %v820_v6, 1  ;;  %v611_v21 = vor.u32 %v609_v58, %v608_v7 }
  0x47   : > { %v2409_v23 = vsel %vm2226_vm2, %v608_v7, 0  ;;  %v422_v29 = vmax.f32 %v358_v56, %v390_v9  ;;  %v453_v33 = vpack.c.bf16 %v421_v14, %v421_v14  ;;  %v601_v37 = vrot.slane %v599_v25, 7 }
  0x48   : > { %v817_v30 = vrot.slane %v815_v19, 1  ;;  %v2413_v31 = vsel %vm2226_vm2, 0, %v611_v21  ;;  %v844_v32 = vshll.u32 %v2409_v23, 16  ;;  %v325_v45 = vmul.f32 %v2254_v10, %v2103_v61 }
  0x49   : > { %v837_v35 = vshrl.u32 %v2413_v31, 16  ;;  %v839_v36 = vshll.u32 %v2413_v31, 16  ;;  %v454_v40 = vpack.c.bf16 %v422_v29, %v422_v29  ;;  %v517_v44 = vunpack.c.l.b16 %v453_v33 }
  0x4a   : > { %v818_v42 = vor.u32 %v817_v30, %v813_v18  ;;  %v846_v43 = vrot.slane %v844_v32, 1  ;;  %v604_v49 = vor.u32 %v602_v27, %v601_v37  ;;  %v2422_v51 = vsel %vm2226_vm2, %v601_v37, 0 }
  0x4b   : > { %v841_v47 = vrot.slane %v839_v36, 1  ;;  %v518_v52 = vunpack.c.l.b16 %v454_v40  ;;  %v832_v54 = vshll.u32 %v2422_v51, 16  ;;  %v326_v56 = vmul.f32 %v2254_v10, %v2104_v15 }
  0x4c   : > { %v2425_v53 = vsel %vm739_vm3, %v818_v42, %v822_v20  ;;  %v361_v57 = vadd.f32 %v2262_v17, %v325_v45  ;;  %v2434_v60 = vsel %vm2226_vm2, 0, %v604_v49  ;;  %v2099_v62 = vunpack.c.l.bf16 %v2133_v38 }
  0x4d   : > { %1042 = vrot.lane.b32.xlu0 %v2425_v53, %s2179_s28  ;;  %v842_v58 = vor.u32 %v841_v47, %v837_v35  ;;  %v541_v61 = vpack.c.b16 %v518_v52, %v517_v44  ;;  %v825_v63 = vshrl.u32 %v2434_v60, 16  ;;  %v827_v1 = vshll.u32 %v2434_v60, 16 }
  0x4e   : > { %v834_v6 = vrot.slane %v832_v54, 1  ;;  %v362_v7 = vadd.f32 %v2262_v17, %v326_v56  ;;  %v393_v18 = vmul.f32 0.1, %v361_v57  ;;  %v2100_v21 = vunpack.c.h.bf16 %v2133_v38 }
  0x4f   : > { %v2441_v9 = vsel %vm739_vm3, %v842_v58, %v846_v43  ;;  %v613_v14 = vshrl.u32 %v541_v61, 16  ;;  %v616_v15 = vshll.u32 %v541_v61, 16  ;;  %v829_v19 = vrot.slane %v827_v1, 1  ;;  %v2137_v58 = vld [vmem:[%s2249_s23 + $0x68] sm:$0xff]  }
  0x50   : > { %3404 = vst [vmem:[#allocation3_spill] sm:$0xff] %v2441_v9  ;;  %1046 = vrot.lane.b32.xlu2 %v2441_v9, %s2179_s28  ;;  %v394_v20 = vmul.f32 0.1, %v362_v7  ;;  %v323_v25 = vmul.f32 %v2254_v10, %v2099_v62  ;;  %v425_v29 = vmax.f32 %v361_v57, %v393_v18  ;;  %v2107_v30 = vunpack.c.l.bf16 %v2135_v8 }
  0x51   : > { %v615_v27 = vrot.slane %v613_v14, 7  ;;  %v2108_v32 = vunpack.c.h.bf16 %v2135_v8  ;;  %v830_v33 = vor.u32 %v829_v19, %v825_v63  ;;  %v324_v36 = vmul.f32 %v2254_v10, %v2100_v21 }
  0x52   : > { %v426_v35 = vmax.f32 %v362_v7, %v394_v20  ;;  %v359_v37 = vadd.f32 %v2262_v17, %v323_v25  ;;  %v457_v43 = vpack.c.bf16 %v425_v29, %v425_v29  ;;  %v327_v44 = vmul.f32 %v2254_v10, %v2107_v30 }
  0x53   : > { %v618_v40 = vor.u32 %v616_v15, %v615_v27  ;;  %v2450_v42 = vsel %vm2226_vm2, %v615_v27, 0  ;;  %v2454_v45 = vsel %vm739_vm3, %v830_v33, %v834_v6  ;;  %v360_v49 = vadd.f32 %v2262_v17, %v324_v36  ;;  %v2136_v36 = vld [vmem:[%s2249_s23 + $0x60] sm:$0xff]  }
  0x54   : > { %v856_v38 = vshll.u32 %v2450_v42, 16  ;;  %v458_v47 = vpack.c.bf16 %v426_v35, %v426_v35  ;;  %1044 = vrot.lane.b32.xlu1 %v2454_v45, %s2179_s28  ;;  %v521_v54 = vunpack.c.l.b16 %v457_v43  ;;  %v391_v56 = vmul.f32 0.1, %v359_v37 }
  0x55   : > { %v2462_v52 = vsel %vm2226_vm2, 0, %v618_v40  ;;  %v328_v57 = vmul.f32 %v2254_v10, %v2108_v32  ;;  %v392_v6 = vmul.f32 0.1, %v360_v49  ;;  %v363_v8 = vadd.f32 %v2262_v17, %v327_v44 }
  0x56   : > { %v849_v61 = vshrl.u32 %v2462_v52, 16  ;;  %v851_v62 = vshll.u32 %v2462_v52, 16  ;;  %v858_v63 = vrot.slane %v856_v38, 1  ;;  %v522_v1 = vunpack.c.l.b16 %v458_v47 }
  0x57   : > { %v423_v7 = vmax.f32 %v359_v37, %v391_v56  ;;  %v364_v14 = vadd.f32 %v2262_v17, %v328_v57  ;;  %v2115_v19 = vunpack.c.l.bf16 %v2137_v58  ;;  %v2116_v20 = vunpack.c.h.bf16 %v2137_v58 }
  0x58   : > { %v853_v15 = vrot.slane %v851_v62, 1  ;;  %v543_v18 = vpack.c.b16 %v522_v1, %v521_v54  ;;  %v424_v21 = vmax.f32 %v360_v49, %v392_v6  ;;  %v395_v27 = vmul.f32 0.1, %v363_v8 }
  0x59   : > { %v455_v25 = vpack.c.bf16 %v423_v7, %v423_v7  ;;  %v396_v29 = vmul.f32 0.1, %v364_v14  ;;  %v331_v35 = vmul.f32 %v2254_v10, %v2115_v19  ;;  %v332_v54 = vmul.f32 %v2254_v10, %v2116_v20 }
  0x5a   : > { %v854_v30 = vor.u32 %v853_v15, %v849_v61  ;;  %v627_v32 = vshrl.u32 %v543_v18, 16  ;;  %v630_v33 = vshll.u32 %v543_v18, 16  ;;  %v456_v40 = vpack.c.bf16 %v424_v21, %v424_v21 }
  0x5b   : > { %v519_v37 = vunpack.c.l.b16 %v455_v25  ;;  %v427_v43 = vmax.f32 %v363_v8, %v395_v27  ;;  %v428_v44 = vmax.f32 %v364_v14, %v396_v29  ;;  %v367_v49 = vadd.f32 %v2262_v17, %v331_v35 }
  0x5c   : > { %v2473_v38 = vsel %vm739_vm3, %v854_v30, %v858_v63  ;;  %v629_v47 = vrot.slane %v627_v32, 7  ;;  %v520_v56 = vunpack.c.l.b16 %v456_v40  ;;  %v2111_v61 = vunpack.c.l.bf16 %v2136_v36 }
  0x5d   : > { %1048 = vrot.lane.b32.xlu0 %v2473_v38, %s2179_s28  ;;  %v459_v57 = vpack.c.bf16 %v427_v43, %v427_v43  ;;  %v460_v58 = vpack.c.bf16 %v428_v44, %v428_v44  ;;  %v368_v63 = vadd.f32 %v2262_v17, %v332_v54  ;;  %v399_v6 = vmul.f32 0.1, %v367_v49 }
  0x5e   : > { %v632_v62 = vor.u32 %v630_v33, %v629_v47  ;;  %v2481_v1 = vsel %vm2226_vm2, %v629_v47, 0  ;;  %v542_v8 = vpack.c.b16 %v520_v56, %v519_v37  ;;  %v2112_v21 = vunpack.c.h.bf16 %v2136_v36 }
  0x5f   : > { %v880_v7 = vshll.u32 %v2481_v1, 16  ;;  %v523_v14 = vunpack.c.l.b16 %v459_v57  ;;  %v524_v15 = vunpack.c.l.b16 %v460_v58  ;;  %v400_v19 = vmul.f32 0.1, %v368_v63  ;;  %v2138_v57 = vld [vmem:[%s2249_s23 + $0x70] sm:$0xff]  }
  0x60   : > { %v2487_v18 = vsel %vm2226_vm2, 0, %v632_v62  ;;  %v431_v20 = vmax.f32 %v367_v49, %v399_v6  ;;  %v620_v30 = vshrl.u32 %v542_v8, 16  ;;  %v623_v32 = vshll.u32 %v542_v8, 16 }
  0x61   : > { %v873_v25 = vshrl.u32 %v2487_v18, 16  ;;  %v875_v27 = vshll.u32 %v2487_v18, 16  ;;  %v882_v29 = vrot.slane %v880_v7, 1  ;;  %v544_v33 = vpack.c.b16 %v524_v15, %v523_v14 }
  0x62   : > { %v432_v35 = vmax.f32 %v368_v63, %v400_v19  ;;  %v463_v40 = vpack.c.bf16 %v431_v20, %v431_v20  ;;  %v622_v43 = vrot.slane %v620_v30, 7  ;;  %v329_v44 = vmul.f32 %v2254_v10, %v2111_v61 }
  0x63   : > { %v877_v37 = vrot.slane %v875_v27, 1  ;;  %v330_v47 = vmul.f32 %v2254_v10, %v2112_v21  ;;  %v634_v54 = vshrl.u32 %v544_v33, 16  ;;  %v637_v49 = vshll.u32 %v544_v33, 16 }
  0x64   : > { %v464_v36 = vpack.c.bf16 %v432_v35, %v432_v35  ;;  %v527_v56 = vunpack.c.l.b16 %v463_v40  ;;  %v625_v62 = vor.u32 %v623_v32, %v622_v43  ;;  %v2496_v6 = vsel %vm2226_vm2, %v622_v43, 0 }
  0x65   : > { %v878_v58 = vor.u32 %v877_v37, %v873_v25  ;;  %v365_v63 = vadd.f32 %v2262_v17, %v329_v44  ;;  %v868_v7 = vshll.u32 %v2496_v6, 16  ;;  %v636_v8 = vrot.slane %v634_v54, 7 }
  0x66   : > { %v528_v14 = vunpack.c.l.b16 %v464_v36  ;;  %v366_v61 = vadd.f32 %v2262_v17, %v330_v47  ;;  %v2506_v19 = vsel %vm2226_vm2, 0, %v625_v62  ;;  %v2119_v21 = vunpack.c.l.bf16 %v2138_v57 }
  0x67   : > { %v2502_v15 = vsel %vm739_vm3, %v878_v58, %v882_v29  ;;  %v397_v20 = vmul.f32 0.1, %v365_v63  ;;  %v861_v25 = vshrl.u32 %v2506_v19, 16  ;;  %v863_v27 = vshll.u32 %v2506_v19, 16 }
  0x68   : > { %1052 = vrot.lane.b32.xlu2 %v2502_v15, %s2179_s28  ;;  %v870_v30 = vrot.slane %v868_v7, 1  ;;  %v639_v32 = vor.u32 %v637_v49, %v636_v8  ;;  %v2514_v33 = vsel %vm2226_vm2, %v636_v8, 0  ;;  %v546_v29 = vpack.c.b16 %v528_v14, %v527_v56 }
  0x69   : > { %v398_v35 = vmul.f32 0.1, %v366_v61  ;;  %v429_v40 = vmax.f32 %v365_v63, %v397_v20  ;;  %v865_v37 = vrot.slane %v863_v27, 1  ;;  %v892_v44 = vshll.u32 %v2514_v33, 16 }
  0x6a   : > { %v2518_v43 = vsel %vm2226_vm2, 0, %v639_v32  ;;  %v2120_v47 = vunpack.c.h.bf16 %v2138_v57  ;;  %v648_v49 = vshrl.u32 %v546_v29, 16  ;;  %v651_v58 = vshll.u32 %v546_v29, 16 }
  0x6b   : > { %v885_v54 = vshrl.u32 %v2518_v43, 16  ;;  %v887_v36 = vshll.u32 %v2518_v43, 16  ;;  %v866_v62 = vor.u32 %v865_v37, %v861_v25  ;;  %v894_v7 = vrot.slane %v892_v44, 1 }
  0x6c   : > { %v430_v8 = vmax.f32 %v366_v61, %v398_v35  ;;  %v461_v56 = vpack.c.bf16 %v429_v40, %v429_v40  ;;  %v650_v63 = vrot.slane %v648_v49, 7  ;;  %v333_v20 = vmul.f32 %v2254_v10, %v2119_v21 }
  0x6d   : > { %v889_v14 = vrot.slane %v887_v36, 1  ;;  %v334_v27 = vmul.f32 %v2254_v10, %v2120_v47  ;;  %v2526_v32 = vsel %vm739_vm3, %v866_v62, %v870_v30  ;;  %vm1451_vm11 = vcmask 195584  }
  0x6e   : > { %v462_v57 = vpack.c.bf16 %v430_v8, %v430_v8  ;;  %v525_v24 = vunpack.c.l.b16 %v461_v56  ;;  %1050 = vrot.lane.b32.xlu1 %v2526_v32, %s2179_s28  ;;  %v653_v29 = vor.u32 %v651_v58, %v650_v63  ;;  %v2532_v61 = vsel %vm2226_vm2, %v650_v63, 0 }
  0x6f   : > { %v890_v9 = vor.u32 %v889_v14, %v885_v54  ;;  %v369_v25 = vadd.f32 %v2262_v17, %v333_v20  ;;  %v916_v21 = vshll.u32 %v2532_v61, 16  ;;  %v370_v10 = vadd.f32 %v2262_v17, %v334_v27 }
  0x70   : > { %v526_v35 = vunpack.c.l.b16 %v462_v57  ;;  %v2542_v40 = vsel %vm2226_vm2, 0, %v653_v29  ;;  %vm1484_vm12 = vcmask 228352   ;;  %vm1517_vm13 = vcmask 261120  }
  0x71   : > { %v2538_v30 = vsel %vm739_vm3, %v890_v9, %v894_v7  ;;  %v401_v37 = vmul.f32 0.1, %v369_v25  ;;  %v909_v44 = vshrl.u32 %v2542_v40, 16  ;;  %v911_v47 = vshll.u32 %v2542_v40, 16 }
  0x72   : > { %1054 = vrot.lane.b32.xlu0 %v2538_v30, %s2179_s28  ;;  %v545_v54 = vpack.c.b16 %v526_v35, %v525_v24  ;;  %v402_v36 = vmul.f32 0.1, %v370_v10  ;;  %v918_v17 = vrot.slane %v916_v21, 1  ;;  %v968_v35 = vrot.slane %v2325_v59, 1 }
  0x73   : > { %v433_v49 = vmax.f32 %v369_v25, %v401_v37  ;;  %v913_v58 = vrot.slane %v911_v47, 1  ;;  %vm1570_vm14 = vcmask 293888   ;;  %vm1902_vm15 = vcmask 60416  }
  0x74   : > { %v641_v62 = vshrl.u32 %v545_v54, 16  ;;  %v644_v9 = vshll.u32 %v545_v54, 16  ;;  %v434_v7 = vmax.f32 %v370_v10, %v402_v36  ;;  %v969_v10 = vrot.slane %v2313_v50, 1 }
  0x75   : > { %v465_v8 = vpack.c.bf16 %v433_v49, %v433_v49  ;;  %v914_v56 = vor.u32 %v913_v58, %v909_v44  ;;  %vm1868_vm1 = vcmask 58368  }
  0x76   : > { %v643_v14 = vrot.slane %v641_v62, 7  ;;  %v466_v63 = vpack.c.bf16 %v434_v7, %v434_v7 }
  0x77   : > { %v529_v20 = vunpack.c.l.b16 %v465_v8  ;;  %v2549_v27 = vsel %vm739_vm3, %v914_v56, %v918_v17  ;;  %v2567_v17 = vsel %vm964_vm4, %v968_v35, %v969_v10 }
  0x78   : > { %v646_v57 = vor.u32 %v644_v9, %v643_v14  ;;  %v2553_v29 = vsel %vm2226_vm2, %v643_v14, 0  ;;  %1058 = vrot.lane.b32.xlu2 %v2549_v27, %s2179_s28  ;;  %v530_v25 = vunpack.c.l.b16 %v466_v63  ;;  %v977_v14 = vrot.slane %v2308_v48, 1 }
  0x79   : > { %v904_v24 = vshll.u32 %v2553_v29, 16  ;;  %v978_v63 = vrot.slane %v2299_v41, 1 }
  0x7a   : > { %v2560_v21 = vsel %vm2226_vm2, 0, %v646_v57  ;;  %v547_v47 = vpack.c.b16 %v530_v25, %v529_v20  ;;  %v965_v57 = vrot.slane %v2232_v3, 1 }
  0x7b   : > { %v897_v37 = vshrl.u32 %v2560_v21, 16  ;;  %v899_v44 = vshll.u32 %v2560_v21, 16  ;;  %v906_v36 = vrot.slane %v904_v24, 1  ;;  %v966_v24 = vrot.slane %v2236_v4, 1 }
  0x7c   : > { %v655_v49 = vshrl.u32 %v547_v47, 16  ;;  %v658_v58 = vshll.u32 %v547_v47, 16  ;;  %v986_v4 = vrot.slane %v2434_v60, 1 }
  0x7d   : > { %v901_v54 = vrot.slane %v899_v44, 1  ;;  %v2592_v44 = vsel %vm964_vm4, %v977_v14, %v978_v63  ;;  %v2595_v47 = vsel %vm964_vm4, %v965_v57, %v966_v24  ;;  %v984_v63 = vrot.slane %v2393_v0, 1 }
  0x7e   : > { %v657_v9 = vrot.slane %v655_v49, 7  ;;  %v974_v49 = vrot.slane %v2383_v34, 1  ;;  %v980_v57 = vrot.slane %v2337_v13, 1  ;;  %v981_v24 = vrot.slane %v2332_v5, 1 }
  0x7f   : > { %v902_v62 = vor.u32 %v901_v54, %v897_v37  ;;  %v1004_v0 = vrot.slane %v2560_v21, 1  ;;  %v992_v5 = vrot.slane %v2462_v52, 1 }
  0x80   : > { %v660_v8 = vor.u32 %v658_v58, %v657_v9  ;;  %v2574_v50 = vsel %vm2226_vm2, %v657_v9, 0  ;;  %1064 = vrot.lane.b32.xlu2 %v2567_v17, %s2180_s29  ;;  %v975_v58 = vrot.slane %v2378_v26, 1  ;;  %v972_v9 = vrot.slane %v2304_v46, 1 }
  0x81   : > { %v2570_v7 = vsel %vm739_vm3, %v902_v62, %v906_v36  ;;  %v928_v56 = vshll.u32 %v2574_v50, 16  ;;  %v987_v36 = vrot.slane %v2422_v51, 1  ;;  %v971_v62 = vrot.slane %v2319_v55, 1 }
  0x82   : > { %1056 = vrot.lane.b32.xlu1 %v2570_v7, %s2179_s28  ;;  %v2585_v20 = vsel %vm2226_vm2, 0, %v660_v8  ;;  %v995_v26 = vrot.slane %v2506_v19, 1  ;;  %v996_v51 = vrot.slane %v2496_v6, 1  ;;  %v983_v46 = vrot.slane %v2401_v12, 1 }
  0x83   : > { %v921_v25 = vshrl.u32 %v2585_v20, 16  ;;  %v923_v35 = vshll.u32 %v2585_v20, 16  ;;  %v930_v37 = vrot.slane %v928_v56, 1  ;;  %v2613_v8 = vsel %vm964_vm4, %v986_v4, %v987_v36 }
  0x84   : > { %v2616_v56 = vsel %vm964_vm4, %v974_v49, %v975_v58  ;;  %v973_v14 = vsel %vm964_vm4, %v971_v62, %v972_v9  ;;  %v1005_v6 = vrot.slane %v2553_v29, 1  ;;  %v990_v4 = vrot.slane %v2409_v23, 1 }
  0x85   : > { %v925_v10 = vrot.slane %v923_v35, 1  ;;  %v2634_v35 = vsel %vm964_vm4, %v983_v46, %v984_v63  ;;  %v1001_v23 = vrot.slane %v2518_v43, 1  ;;  %v998_v29 = vrot.slane %v2487_v18, 1 }
  0x86   : > { %v2652_v36 = vsel %vm964_vm4, %v1004_v0, %v1005_v6  ;;  %v999_v62 = vrot.slane %v2481_v1, 1  ;;  %v1008_v1 = vrot.slane %v2532_v61, 1 }
  0x87   : > { %v926_v41 = vor.u32 %v925_v10, %v921_v25  ;;  %v2631_v25 = vsel %vm964_vm4, %v995_v26, %v996_v51  ;;  %v2637_v10 = vsel %vm964_vm4, %v980_v57, %v981_v24  ;;  %v1007_v51 = vrot.slane %v2542_v40, 1 }
  0x88   : > { %1070 = vrot.lane.b32.xlu2 %v2592_v44, %s2180_s29  ;;  %v2674_v26 = vsel %vm964_vm4, %v998_v29, %v999_v62 }
  0x89   : > { %v2600_v54 = vsel %vm739_vm3, %v926_v41, %v930_v37  ;;  %v993_v37 = vrot.slane %v2450_v42, 1  ;;  %v989_v41 = vrot.slane %v2413_v31, 1  ;;  %v1002_v42 = vrot.slane %v2514_v33, 1 }
  0x8a   : > { %1062 = vrot.lane.b32.xlu1 %v2595_v47, %s2180_s29  ;;  %1060 = vrot.lane.b32.xlu0 %v2600_v54, %s2179_s28  ;;  %v1039_v33 = vpop.permute.xlu2 %1038  ;;  %v2685_v46 = vsel %vm964_vm4, %v1007_v51, %v1008_v1 }
  0x8b   : > { %v2655_v49 = vsel %vm964_vm4, %v992_v5, %v993_v37  ;;  %v2658_v58 = vsel %vm964_vm4, %v989_v41, %v990_v4  ;;  %v2671_v9 = vsel %vm964_vm4, %v1001_v23, %v1002_v42  ;;  %v1296_v4 = vsel %vm1286_vm6, %v2308_v48, %v1039_v33 }
  0x90   : > { %1076 = vrot.lane.b32.xlu2 %v2613_v8, %s2180_s29 }
  0x92   : > { %1068 = vrot.lane.b32.xlu1 %v2616_v56, %s2180_s29  ;;  %1066 = vrot.lane.b32.xlu0 %v973_v14, %s2180_s29 }
  0x98   : > { %1082 = vrot.lane.b32.xlu2 %v2631_v25, %s2180_s29 }
  0x9a   : > { %1074 = vrot.lane.b32.xlu1 %v2634_v35, %s2180_s29  ;;  %1072 = vrot.lane.b32.xlu0 %v2637_v10, %s2180_s29 }
  0xa0   : > { %1088 = vrot.lane.b32.xlu2 %v2652_v36, %s2180_s29 }
  0xa2   : > { %1080 = vrot.lane.b32.xlu1 %v2655_v49, %s2180_s29  ;;  %1078 = vrot.lane.b32.xlu0 %v2658_v58, %s2180_s29 }
  0xa3   : > { %v1035_v57 = vpop.permute.xlu1 %1034 }
  0xa8   : > { %1126 = vrot.lane.b32.xlu2 %v2354_v28, %s2181_s30  ;;  %v2693_v28 = vpop.permute.xlu2 %1040 }
  0xaa   : > { %1086 = vrot.lane.b32.xlu1 %v2671_v9, %s2180_s29  ;;  %1084 = vrot.lane.b32.xlu0 %v2674_v26, %s2180_s29 }
  0xb0   : > { %1222 = vrot.lane.b32.xlu2 %v2348_v22, %s2182_s6  ;;  %v2701_v61 = vpop.permute.xlu2 %1046 }
  0xb2   : > { %1094 = vrot.lane.b32.xlu1 %v2325_v59, %s2183_s7  ;;  %1090 = vrot.lane.b32.xlu0 %v2685_v46, %s2180_s29 }
  0xb7   : > { %v1037_v0 = vpop.permute.xlu1 %1036 }
  0xb8   : > { %1102 = vrot.lane.b32.xlu2 %v2337_v13, %s2183_s7 }
  0xba   : > { %1190 = vrot.lane.b32.xlu1 %v2319_v55, %s2184_s8  ;;  %1158 = vrot.lane.b32.xlu0 %v2567_v17, %s2185_s9  ;;  %v2715_v17 = vpop.permute.xlu0 %1030 }
  0xc0   : > { %1160 = vrot.lane.b32.xlu2 %v973_v14, %s2185_s9 }
  0xc2   : > { %1096 = vrot.lane.b32.xlu1 %v2319_v55, %s2183_s7  ;;  %1254 = vrot.lane.b32.xlu0 %v973_v14, %s2186_s10  ;;  %v2709_v63 = vpop.permute.xlu2 %1052  ;;  %v1033_v24 = vpop.permute.xlu0 %1032 }
  0xc6   : > { %v1045_v41 = vpop.permute.xlu1 %1044 }
  0xc7   : > { %v1302_v62 = vsel %vm1286_vm6, %v2434_v60, %v1045_v41 }
  0xc8   : > { %1198 = vrot.lane.b32.xlu2 %v2401_v12, %s2184_s8 }
  0xca   : > { %1134 = vrot.lane.b32.xlu1 %v2365_v39, %s2181_s30  ;;  %1128 = vrot.lane.b32.xlu0 %v2348_v22, %s2181_s30  ;;  %v1290_v22 = vsel %vm1286_vm6, %v2325_v59, %v1033_v24  ;;  %v1043_v37 = vpop.permute.xlu0 %1042 }
  0xd0   : > { %1256 = vrot.lane.b32.xlu2 %v2616_v56, %s2186_s10 }
  0xd2   : > { %1192 = vrot.lane.b32.xlu1 %v2383_v34, %s2184_s8  ;;  %1166 = vrot.lane.b32.xlu0 %v2637_v10, %s2185_s9  ;;  %v2723_v14 = vpop.permute.xlu2 %1058  ;;  %v1049_v42 = vpop.permute.xlu0 %1048 }
  0xd8   : > { %1142 = vrot.lane.b32.xlu2 %v2473_v38, %s2181_s30 }
  0xda   : > { %1230 = vrot.lane.b32.xlu1 %v2425_v53, %s2182_s6  ;;  %1224 = vrot.lane.b32.xlu0 %v2397_v11, %s2182_s6  ;;  %v1065_v6 = vpop.permute.xlu2 %1064 }
  0xdb   : > { %v2734_v5 = vsel %vm1319_vm5, %v1290_v22, %v1065_v6 }
  0xe0   : > { %1238 = vrot.lane.b32.xlu2 %v2526_v32, %s2182_s6  ;;  %v1051_v29 = vpop.permute.xlu1 %1050 }
  0xe1   : > { %v1308_v1 = vsel %vm1286_vm6, %v2506_v19, %v1051_v29 }
  0xe2   : > { %1110 = vrot.lane.b32.xlu1 %v2462_v52, %s2183_s7  ;;  %1262 = vrot.lane.b32.xlu0 %v2634_v35, %s2186_s10  ;;  %v1071_v23 = vpop.permute.xlu2 %1070 }
  0xe3   : > { %v2745_v59 = vsel %vm1319_vm5, %v1296_v4, %v1071_v23 }
  0xe4   : > { %v2766_v24 = vpop.permute.xlu0 %1054 }
  0xe8   : > { %1104 = vrot.lane.b32.xlu2 %v2401_v12, %s2183_s7 }
  0xea   : > { %1206 = vrot.lane.b32.xlu1 %v2506_v19, %s2184_s8  ;;  %1174 = vrot.lane.b32.xlu0 %v2655_v49, %s2185_s9  ;;  %v1077_v33 = vpop.permute.xlu2 %1076 }
  0xeb   : > { %v2756_v51 = vsel %vm1319_vm5, %v1302_v62, %v1077_v33 }
  0xf0   : > { %1162 = vrot.lane.b32.xlu2 %v2616_v56, %s2185_s9 }
  0xf2   : > { %1098 = vrot.lane.b32.xlu1 %v2383_v34, %s2183_s7  ;;  %1270 = vrot.lane.b32.xlu0 %v2631_v25, %s2186_s10  ;;  %v1083_v22 = vpop.permute.xlu2 %1082 }
  0xf3   : > { %v2769_v41 = vsel %vm1319_vm5, %v1308_v1, %v1083_v22  ;;  %v1292_v1 = vsel %vm1286_vm6, %v2319_v55, %v1035_v57  ;;  %v1300_v57 = vsel %vm1286_vm6, %v2401_v12, %v1043_v37  ;;  %v1306_v37 = vsel %vm1286_vm6, %v2462_v52, %v1049_v42 }
  0xf4   : > { %v1057_v6 = vpop.permute.xlu1 %1056  ;;  %v1312_v42 = vsel %vm1286_vm6, %v2518_v43, %v2766_v24 }
  0xf5   : > { %v1314_v56 = vsel %vm1286_vm6, %v2560_v21, %v1057_v6 }
  0xf8   : > { %1200 = vrot.lane.b32.xlu2 %v2434_v60, %s2184_s8 }
  0xfa   : > { %1136 = vrot.lane.b32.xlu1 %v2425_v53, %s2181_s30  ;;  %1130 = vrot.lane.b32.xlu0 %v2397_v11, %s2181_s30  ;;  %v1089_v4 = vpop.permute.xlu2 %1088  ;;  %v1294_v53 = vsel %vm1286_vm6, %v2383_v34, %v1037_v0 }
  0xfb   : > { %v2782_v29 = vsel %vm1319_vm5, %v1314_v56, %v1089_v4 }
  0xfc   : > { %v2779_v23 = vpop.permute.xlu1 %1062  ;;  %v2784_v62 = vpop.permute.xlu0 %1060 }
 0x100   : > { %1258 = vrot.lane.b32.xlu2 %v2592_v44, %s2186_s10 }
 0x102   : > { %1194 = vrot.lane.b32.xlu1 %v2308_v48, %s2184_s8  ;;  %1168 = vrot.lane.b32.xlu0 %v2634_v35, %s2185_s9  ;;  %v2792_v11 = vpop.permute.xlu2 %1126  ;;  %v1554_v35 = vld [vmem:[%s3395_s3 + $0x10] sm:$0x3] }
 0x103   : > { %v1564_v4 = vunpack.c.l.b16 %v1554_v35 }
 0x104   : > { %v1069_v33 = vpop.permute.xlu1 %1068  ;;  %v1067_v22 = vpop.permute.xlu0 %1066 }
 0x105   : > { %v2799_v6 = vsel %vm1319_vm5, %v1294_v53, %v1069_v33  ;;  %v2802_v56 = vsel %vm1319_vm5, %v1292_v1, %v1067_v22  ;;  %v1567_v34 = vpack.c.b16 %v1564_v4, %v1564_v4  ;;  %v1298_v53 = vsel %vm1286_vm6, %v2337_v13, %v2693_v28  ;;  %v2060_v4 = vld [vmem:[%s3395_s3 + $0x8] sm:$0xff]  ;;  %v2059_v28 = vld [vmem:[%s3395_s3] sm:$0xff] }
 0x107   : > { %v1605_v22 = vsel %vm1603_vm7, %v1567_v34, 0 }
 0x108   : > { %1118 = vrot.lane.b32.xlu2 %v2560_v21, %s2183_s7  ;;  %1612 = vmatpush.bf16.msra.mxu0 %v1605_v22 }
 0x109   : > { %2140 = vmatpush.bf16.msra.mxu1 %v1605_v22  ;;  %2141 = vmatpush.bf16.msra.mxu2 %v1605_v22 }
 0x10a   : > { %1232 = vrot.lane.b32.xlu1 %v2454_v45, %s2182_s6  ;;  %1226 = vrot.lane.b32.xlu0 %v2340_v16, %s2182_s6  ;;  %v2813_v55 = vpop.permute.xlu2 %1222 }
 0x10b   : > { %2142 = vmatpush.bf16.msra.mxu3 %v1605_v22 }
 0x10c   : > { %v1075_v0 = vpop.permute.xlu1 %1074  ;;  %v1073_v33 = vpop.permute.xlu0 %1072  ;;  %1613 = vmatpush.bf16.msra.mxu0 %v2060_v4 }
 0x10d   : > { %v2821_v1 = vsel %vm1319_vm5, %v1300_v57, %v1075_v0  ;;  %v2824_v35 = vsel %vm1319_vm5, %v1298_v53, %v1073_v33  ;;  %2143 = vmatpush.bf16.msra.mxu1 %v2060_v4  ;;  %2144 = vmatpush.bf16.msra.mxu2 %v2060_v4  ;;  %v1310_v33 = vsel %vm1286_vm6, %v2487_v18, %v2709_v63 }
 0x10e   : > { %v1316_v63 = vsel %vm1286_vm6, %v2542_v40, %v2723_v14 }
 0x10f   : > { %2145 = vmatpush.bf16.msra.mxu3 %v2060_v4 }
 0x110   : > { %1176 = vrot.lane.b32.xlu2 %v2631_v25, %s2185_s9  ;;  %1614 = vmatpush.bf16.msra.mxu0 %v2059_v28 }
 0x111   : > { %2146 = vmatpush.bf16.msra.mxu1 %v2059_v28  ;;  %2147 = vmatpush.bf16.msra.mxu2 %v2059_v28 }
 0x112   : > { %1112 = vrot.lane.b32.xlu1 %v2506_v19, %s2183_s7  ;;  %1264 = vrot.lane.b32.xlu0 %v2613_v8, %s2186_s10  ;;  %v2835_v12 = vpop.permute.xlu2 %1102  ;;  %v1304_v19 = vsel %vm1286_vm6, %v2413_v31, %v2701_v61 }
 0x113   : > { %2148 = vmatpush.bf16.msra.mxu3 %v2059_v28 }
 0x114   : > { %v1081_v34 = vpop.permute.xlu1 %1080  ;;  %v1079_v25 = vpop.permute.xlu0 %1078 }
 0x115   : > { %v2846_v57 = vsel %vm1319_vm5, %v1306_v37, %v1081_v34  ;;  %v2849_v0 = vsel %vm1319_vm5, %v1304_v19, %v1079_v25  ;;  %v1288_v19 = vsel %vm1286_vm6, %v2232_v3, %v2715_v17 }
 0x116   : > { %v1321_v25 = vsel %vm1319_vm5, %v1288_v19, %v2779_v23 }
 0x118   : > { %1214 = vrot.lane.b32.xlu2 %v2542_v40, %s2184_s8 }
 0x11a   : > { %1150 = vrot.lane.b32.xlu1 %v2570_v7, %s2181_s30  ;;  %1144 = vrot.lane.b32.xlu0 %v2526_v32, %s2181_s30  ;;  %v1161_v61 = vpop.permute.xlu2 %1160 }
 0x11c   : > { %v1087_v53 = vpop.permute.xlu1 %1086  ;;  %v1085_v22 = vpop.permute.xlu0 %1084 }
 0x11d   : > { %v2864_v4 = vsel %vm1319_vm5, %v1312_v42, %v1087_v53  ;;  %v2867_v28 = vsel %vm1319_vm5, %v1310_v33, %v1085_v22 }
 0x120   : > { %1272 = vrot.lane.b32.xlu2 %v2674_v26, %s2186_s10 }
 0x122   : > { %1208 = vrot.lane.b32.xlu1 %v2487_v18, %s2184_s8  ;;  %1182 = vrot.lane.b32.xlu0 %v2652_v36, %s2185_s9  ;;  %v2875_v32 = vpop.permute.xlu2 %1198 }
 0x124   : > { %v1095_v24 = vpop.permute.xlu1 %1094  ;;  %v1091_v37 = vpop.permute.xlu0 %1090 }
 0x125   : > { %v2881_v34 = vsel %vm1319_vm5, %v1316_v63, %v1091_v37  ;;  %v1354_v42 = vsel %vm1352_vm8, %v1321_v25, %v1095_v24 }
 0x126   : > { %v1387_v17 = vsel %vm1385_vm9, %v1354_v42, %v2792_v11 }
 0x128   : > { %1106 = vrot.lane.b32.xlu2 %v2434_v60, %s2183_s7 }
 0x12a   : > { %1246 = vrot.lane.b32.xlu1 %v2549_v27, %s2182_s6  ;;  %1240 = vrot.lane.b32.xlu0 %v2502_v15, %s2182_s6  ;;  %v1257_v14 = vpop.permute.xlu2 %1256 }
 0x12c   : > { %v1191_v53 = vpop.permute.xlu1 %1190  ;;  %v1159_v23 = vpop.permute.xlu0 %1158 }
 0x12d   : > { %v1420_v33 = vsel %vm1418_vm10, %v1387_v17, %v1159_v23  ;;  %v3405_v17 = vld [vmem:[#allocation3_spill] sm:$0xff] }
 0x12e   : > { %v1453_v22 = vsel %vm1451_vm11, %v1420_v33, %v1191_v53 }
 0x12f   : > { %v1486_v60 = vsel %vm1484_vm12, %v1453_v22, %v2813_v55 }
 0x130   : > { %1164 = vrot.lane.b32.xlu2 %v2592_v44, %s2185_s9 }
 0x132   : > { %1100 = vrot.lane.b32.xlu1 %v2308_v48, %s2183_s7  ;;  %1278 = vrot.lane.b32.xlu0 %v2685_v46, %s2186_s10  ;;  %v1143_v11 = vpop.permute.xlu2 %1142 }
 0x134   : > { %v1097_v24 = vpop.permute.xlu1 %1096  ;;  %v1255_v63 = vpop.permute.xlu0 %1254 }
 0x135   : > { %v1519_v37 = vsel %vm1517_vm13, %v1486_v60, %v1255_v63 }
 0x136   : > { %2039 = vmatmul.msk.bf16.vlgmr.msra.gmra.mxu0 %vm1570_vm14, %v1519_v37 }
 0x138   : > { %1202 = vrot.lane.b32.xlu2 %v2413_v31, %s2184_s8 }
 0x13a   : > { %1138 = vrot.lane.b32.xlu1 %v2454_v45, %s2181_s30  ;;  %1132 = vrot.lane.b32.xlu0 %v2340_v16, %s2181_s30  ;;  %v1239_v48 = vpop.permute.xlu2 %1238  ;;  %v1356_v45 = vsel %vm1352_vm8, %v2734_v5, %v1097_v24 }
 0x13c   : > { %v1135_v44 = vpop.permute.xlu1 %1134  ;;  %v1129_v55 = vpop.permute.xlu0 %1128 }
 0x13d   : > { %v1389_v16 = vsel %vm1385_vm9, %v1356_v45, %v1129_v55  ;;  %v2139_v55 = vld [vmem:[%s2249_s23 + $0x78] sm:$0xff]  }
 0x140   : > { %1260 = vrot.lane.b32.xlu2 %v2637_v10, %s2186_s10  ;;  %v1422_v10 = vsel %vm1418_vm10, %v1389_v16, %v1161_v61 }
 0x142   : > { %1196 = vrot.lane.b32.xlu1 %v2337_v13, %s2184_s8  ;;  %1170 = vrot.lane.b32.xlu0 %v2613_v8, %s2185_s9  ;;  %v2921_v19 = vpop.permute.xlu2 %1104  ;;  %v1362_v13 = vsel %vm1352_vm8, %v2745_v59, %v2835_v12 }
 0x143   : > { %v1395_v53 = vsel %vm1385_vm9, %v1362_v13, %v1135_v44 }
 0x144   : > { %v1193_v25 = vpop.permute.xlu1 %1192  ;;  %v1167_v42 = vpop.permute.xlu0 %1166 }
 0x145   : > { %v1455_v8 = vsel %vm1451_vm11, %v1422_v10, %v1193_v25  ;;  %v1428_v33 = vsel %vm1418_vm10, %v1395_v53, %v1167_v42  ;;  %v2123_v25 = vunpack.c.l.bf16 %v2139_v55  ;;  %v2124_v42 = vunpack.c.h.bf16 %v2139_v55  ;;  %v2168_v10 = vld [vmem:[%s3393_s1] ss:$0 sm:$0xff] }
 0x147   : > { %v335_v13 = vmul.f32 %v2168_v10, %v2123_v25 }
 0x148   : > { %1120 = vrot.lane.b32.xlu2 %v2542_v40, %s2183_s7 }
 0x14a   : > { %1234 = vrot.lane.b32.xlu1 %v3405_v17, %s2182_s6  ;;  %1228 = vrot.lane.b32.xlu0 %v2365_v39, %s2182_s6  ;;  %v2937_v5 = vpop.permute.xlu2 %1162  ;;  %v1461_v39 = vsel %vm1451_vm11, %v1428_v33, %v2875_v32  ;;  %v1011_v33 = vrot.slane %v2574_v50, 1 }
 0x14c   : > { %v1231_v23 = vpop.permute.xlu1 %1230  ;;  %v1225_v40 = vpop.permute.xlu0 %1224 }
 0x14d   : > { %v1488_v61 = vsel %vm1484_vm12, %v1455_v8, %v1225_v40  ;;  %v1494_v59 = vsel %vm1484_vm12, %v1461_v39, %v1231_v23  ;;  %v336_v8 = vmul.f32 %v2168_v10, %v2124_v42 }
 0x14e   : > { %v1521_v22 = vsel %vm1517_vm13, %v1488_v61, %v1257_v14  ;;  %v1010_v61 = vrot.slane %v2585_v20, 1 }
 0x14f   : > { %2040 = vmatmul.msk.bf16.gmra.mxu0 %vm1570_vm14, %v1521_v22 }
 0x150   : > { %1178 = vrot.lane.b32.xlu2 %v2674_v26, %s2185_s9 }
 0x152   : > { %1114 = vrot.lane.b32.xlu1 %v2487_v18, %s2183_s7  ;;  %1266 = vrot.lane.b32.xlu0 %v2658_v58, %s2186_s10  ;;  %v2953_v12 = vpop.permute.xlu2 %1200 }
 0x154   : > { %v1111_v60 = vpop.permute.xlu1 %1110  ;;  %v1263_v14 = vpop.permute.xlu0 %1262 }
 0x155   : > { %v1527_v24 = vsel %vm1517_vm13, %v1494_v59, %v1263_v14  ;;  %v1370_v26 = vsel %vm1352_vm8, %v2849_v0, %v1111_v60  ;;  %v2999_v14 = vsel %vm964_vm4, %v1010_v61, %v1011_v33 }
 0x156   : > { %2043 = vmatmul.msk.bf16.vlgmr.msra.gmra.mxu1 %vm1570_vm14, %v1527_v24  ;;  %v1403_v32 = vsel %vm1385_vm9, %v1370_v26, %v1143_v11 }
 0x158   : > { %1216 = vrot.lane.b32.xlu2 %v2585_v20, %s2184_s8 }
 0x15a   : > { %1152 = vrot.lane.b32.xlu1 %v2549_v27, %s2181_s30  ;;  %1146 = vrot.lane.b32.xlu0 %v2502_v15, %s2181_s30  ;;  %v2965_v18 = vpop.permute.xlu2 %1258 }
 0x15c   : > { %v1207_v63 = vpop.permute.xlu1 %1206  ;;  %v1175_v37 = vpop.permute.xlu0 %1174 }
 0x15d   : > { %v1436_v44 = vsel %vm1418_vm10, %v1403_v32, %v1175_v37 }
 0x15e   : > { %v1469_v0 = vsel %vm1451_vm11, %v1436_v44, %v1207_v63 }
 0x15f   : > { %v1502_v15 = vsel %vm1484_vm12, %v1469_v0, %v1239_v48 }
 0x160   : > { %1274 = vrot.lane.b32.xlu2 %v2671_v9, %s2186_s10 }
 0x162   : > { %1210 = vrot.lane.b32.xlu1 %v2518_v43, %s2184_s8  ;;  %1184 = vrot.lane.b32.xlu0 %v2685_v46, %s2185_s9  ;;  %v2977_v27 = vpop.permute.xlu2 %1118  ;;  %v2169_v46 = vld [vmem:[%s3394_s2] ss:$0 sm:$0xff] }
 0x163   : > { %v371_v48 = vadd.f32 %v2169_v46, %v335_v13  ;;  %v372_v53 = vadd.f32 %v2169_v46, %v336_v8 }
 0x164   : > { %v1099_v11 = vpop.permute.xlu1 %1098  ;;  %v1271_v45 = vpop.permute.xlu0 %1270 }
 0x165   : > { %v1535_v16 = vsel %vm1517_vm13, %v1502_v15, %v1271_v45  ;;  %v403_v23 = vmul.f32 0.1, %v371_v48  ;;  %v404_v40 = vmul.f32 0.1, %v372_v53  ;;  %v1358_v50 = vsel %vm1352_vm8, %v2802_v56, %v1099_v11 }
 0x166   : > { %2047 = vmatmul.msk.bf16.vlgmr.msra.gmra.mxu2 %vm1570_vm14, %v1535_v16 }
 0x167   : > { %v435_v59 = vmax.f32 %v371_v48, %v403_v23  ;;  %v436_v60 = vmax.f32 %v372_v53, %v404_v40 }
 0x168   : > { %1140 = vrot.lane.b32.xlu2 %v3405_v17, %s2181_s30 }
 0x169   : > { %v467_v24 = vpack.c.bf16 %v435_v59, %v435_v59  ;;  %v468_v26 = vpack.c.bf16 %v436_v60, %v436_v60 }
 0x16a   : > { %1248 = vrot.lane.b32.xlu1 %v2600_v54, %s2182_s6  ;;  %1242 = vrot.lane.b32.xlu0 %v2538_v30, %s2182_s6  ;;  %v2996_v39 = vpop.permute.xlu2 %1176 }
 0x16b   : > { %v531_v63 = vunpack.c.l.b16 %v467_v24  ;;  %v532_v37 = vunpack.c.l.b16 %v468_v26 }
 0x16c   : > { %v1137_v22 = vpop.permute.xlu1 %1136  ;;  %v1131_v17 = vpop.permute.xlu0 %1130 }
 0x16d   : > { %v1391_v0 = vsel %vm1385_vm9, %v1358_v50, %v1131_v17  ;;  %v548_v55 = vpack.c.b16 %v532_v37, %v531_v63 }
 0x16f   : > { %v662_v25 = vshrl.u32 %v548_v55, 16 }
 0x170   : > { %1236 = vrot.lane.b32.xlu2 %v2473_v38, %s2182_s6  ;;  %v1364_v38 = vsel %vm1352_vm8, %v2824_v35, %v2921_v19  ;;  %v665_v19 = vshll.u32 %v548_v55, 16 }
 0x171   : > { %v1397_v11 = vsel %vm1385_vm9, %v1364_v38, %v1137_v22  ;;  %v664_v35 = vrot.slane %v662_v25, 7 }
 0x172   : > { %1108 = vrot.lane.b32.xlu1 %v2413_v31, %s2183_s7  ;;  %1280 = vrot.lane.b32.xlu0 %v2999_v14, %s2186_s10  ;;  %v3010_v15 = vpop.permute.xlu2 %1214  ;;  %v1424_v31 = vsel %vm1418_vm10, %v1391_v0, %v2937_v5 }
 0x173   : > { %v667_v8 = vor.u32 %v665_v19, %v664_v35  ;;  %v738_v53 = vsel %vm2226_vm2, %v664_v35, 0 }
 0x174   : > { %v1195_v32 = vpop.permute.xlu1 %1194  ;;  %v1169_v44 = vpop.permute.xlu0 %1168  ;;  %v1021_v33 = vshll.u32 %v738_v53, 16 }
 0x175   : > { %v1457_v56 = vsel %vm1451_vm11, %v1424_v31, %v1195_v32  ;;  %v1430_v5 = vsel %vm1418_vm10, %v1397_v11, %v1169_v44  ;;  %v1028_v32 = vrot.slane %v738_v53, 1 }
 0x178   : > { %1122 = vrot.lane.b32.xlu2 %v2585_v20, %s2183_s7 }
 0x17a   : > { %1204 = vrot.lane.b32.xlu1 %v2462_v52, %s2184_s8  ;;  %1172 = vrot.lane.b32.xlu0 %v2658_v58, %s2185_s9  ;;  %v1273_v10 = vpop.permute.xlu2 %1272  ;;  %v1463_v58 = vsel %vm1451_vm11, %v1430_v5, %v2953_v12 }
 0x17c   : > { %v1233_v45 = vpop.permute.xlu1 %1232  ;;  %v1227_v42 = vpop.permute.xlu0 %1226 }
 0x17d   : > { %v1490_v16 = vsel %vm1484_vm12, %v1457_v56, %v1227_v42  ;;  %v1496_v13 = vsel %vm1484_vm12, %v1463_v58, %v1233_v45  ;;  %v3406_v45 = vld [vmem:[#allocation2_spill] sm:$0xff] }
 0x17e   : > { %v1523_v52 = vsel %vm1517_vm13, %v1490_v16, %v2965_v18 }
 0x17f   : > { %2041 = vmatmul.msk.bf16.gmra.mxu0 %vm1570_vm14, %v1523_v52 }
 0x180   : > { %1180 = vrot.lane.b32.xlu2 %v2671_v9, %s2185_s9  ;;  %v721_v9 = vsel %vm2226_vm2, 0, %v667_v8 }
 0x181   : > { %v1014_v40 = vshrl.u32 %v721_v9, 16  ;;  %v1027_v50 = vrot.slane %v721_v9, 1 }
 0x182   : > { %1116 = vrot.lane.b32.xlu1 %v2518_v43, %s2183_s7  ;;  %1268 = vrot.lane.b32.xlu0 %v2655_v49, %s2186_s10  ;;  %v3048_v43 = vpop.permute.xlu2 %1106  ;;  %v1016_v49 = vshll.u32 %v721_v9, 16 }
 0x183   : > { %v1366_v19 = vsel %vm1352_vm8, %v2821_v1, %v3048_v43 }
 0x184   : > { %v1113_v18 = vpop.permute.xlu1 %1112  ;;  %v1265_v46 = vpop.permute.xlu0 %1264  ;;  %v1018_v61 = vrot.slane %v1016_v49, 1 }
 0x185   : > { %v1529_v48 = vsel %vm1517_vm13, %v1496_v13, %v1265_v46  ;;  %v1372_v22 = vsel %vm1352_vm8, %v2846_v57, %v1113_v18 }
 0x186   : > { %2044 = vmatmul.msk.bf16.gmra.mxu1 %vm1570_vm14, %v1529_v48 }
 0x188   : > { %1218 = vrot.lane.b32.xlu2 %v721_v9, %s2184_s8 }
 0x18a   : > { %1154 = vrot.lane.b32.xlu1 %v2600_v54, %s2181_s30  ;;  %1148 = vrot.lane.b32.xlu0 %v2538_v30, %s2181_s30  ;;  %v1019_v30 = vor.u32 %v1018_v61, %v1014_v40  ;;  %v1023_v54 = vrot.slane %v1021_v33, 1  ;;  %v1165_v59 = vpop.permute.xlu2 %1164 }
 0x18c   : > { %v1151_v12 = vpop.permute.xlu1 %1150  ;;  %v1145_v23 = vpop.permute.xlu0 %1144  ;;  %v1024_v24 = vsel %vm739_vm3, %v1019_v30, %v1023_v54 }
 0x18d   : > { %v1405_v60 = vsel %vm1385_vm9, %v1372_v22, %v1145_v23 }
 0x190   : > { %1276 = vrot.lane.b32.xlu2 %v2652_v36, %s2186_s10  ;;  %v1378_v36 = vsel %vm1352_vm8, %v2864_v4, %v2977_v27  ;;  %v1029_v4 = vsel %vm964_vm4, %v1027_v50, %v1028_v32 }
 0x191   : > { %v1411_v26 = vsel %vm1385_vm9, %v1378_v36, %v1151_v12 }
 0x192   : > { %1212 = vrot.lane.b32.xlu1 %v2560_v21, %s2184_s8  ;;  %1186 = vrot.lane.b32.xlu0 %v2999_v14, %s2185_s9  ;;  %v1438_v21 = vsel %vm1418_vm10, %v1405_v60, %v2996_v39  ;;  %v1203_v55 = vpop.permute.xlu2 %1202 }
 0x194   : > { %v1209_v2 = vpop.permute.xlu1 %1208  ;;  %v1183_v17 = vpop.permute.xlu0 %1182 }
 0x195   : > { %v1471_v57 = vsel %vm1451_vm11, %v1438_v21, %v1209_v2  ;;  %v1444_v39 = vsel %vm1418_vm10, %v1411_v26, %v1183_v17 }
 0x198   : > { %1124 = vrot.lane.b32.xlu2 %v721_v9, %s2183_s7 }
 0x19a   : > { %1250 = vrot.lane.b32.xlu1 %v1024_v24, %s2182_s6  ;;  %1244 = vrot.lane.b32.xlu0 %v2570_v7, %s2182_s6  ;;  %v1477_v7 = vsel %vm1451_vm11, %v1444_v39, %v3010_v15  ;;  %v1261_v11 = vpop.permute.xlu2 %1260 }
 0x19c   : > { %v1247_v63 = vpop.permute.xlu1 %1246  ;;  %v1241_v37 = vpop.permute.xlu0 %1240 }
 0x19d   : > { %v1504_v44 = vsel %vm1484_vm12, %v1471_v57, %v1241_v37  ;;  %v1510_v27 = vsel %vm1484_vm12, %v1477_v7, %v1247_v63 }
 0x19e   : > { %v1537_v0 = vsel %vm1517_vm13, %v1504_v44, %v1273_v10 }
 0x19f   : > { %2048 = vmatmul.msk.bf16.gmra.mxu2 %vm1570_vm14, %v1537_v0 }
 0x1a0   : > { %1220 = vrot.lane.b32.xlu2 %v2232_v3, %s2184_s8 }
 0x1a2   : > { %1092 = vrot.lane.b32.xlu1 %v2999_v14, %s2180_s29  ;;  %1282 = vrot.lane.b32.xlu0 %v1029_v4, %s2186_s10  ;;  %v3092_v14 = vpop.permute.xlu2 %1120  ;;  %s235_s29 = scalar_lea.vmem %s3397_s5, %s2030_s20 }
 0x1a4   : > { %v1101_v31 = vpop.permute.xlu1 %1100  ;;  %v1279_v38 = vpop.permute.xlu0 %1278 }
 0x1a5   : > { %v1543_v56 = vsel %vm1517_vm13, %v1510_v27, %v1279_v38  ;;  %v1360_v25 = vsel %vm1352_vm8, %v2799_v6, %v1101_v31 }
 0x1a6   : > { %2051 = vmatmul.msk.bf16.vlgmr.msra.gmra.mxu3 %vm1570_vm14, %v1543_v56 }
 0x1aa   : > { %1188 = vrot.lane.b32.xlu1 %v1029_v4, %s2185_s9  ;;  %1156 = vrot.lane.b32.xlu0 %v1024_v24, %s2181_s30  ;;  %v1179_v46 = vpop.permute.xlu2 %1178 }
 0x1ac   : > { %v1139_v3 = vpop.permute.xlu1 %1138  ;;  %v1133_v15 = vpop.permute.xlu0 %1132 }
 0x1ad   : > { %v1393_v52 = vsel %vm1385_vm9, %v1360_v25, %v1133_v15  ;;  %v1399_v6 = vsel %vm1385_vm9, %v1366_v19, %v1139_v3 }
 0x1ae   : > { %v1426_v35 = vsel %vm1418_vm10, %v1393_v52, %v1165_v59 }
 0x1b2   : > { %1284 = vrot.lane.b32.xlu1 %v2595_v47, %s2186_s10  ;;  %1252 = vrot.lane.b32.xlu0 %v3406_v45, %s2182_s6  ;;  %v1217_v59 = vpop.permute.xlu2 %1216  ;;  %v1380_v45 = vsel %vm1352_vm8, %v2782_v29, %v3092_v14 }
 0x1b3   : > { %v1616_v42 = vpop.f32.mrf.mxu0 }
 0x1b4   : > { %v1197_v16 = vpop.permute.xlu1 %1196  ;;  %v1870_v5 = vpack.c.bf16 %v1616_v42, %v1616_v42  ;;  %v1171_v47 = vpop.permute.xlu0 %1170  ;;  %v1765_v10 = vmul.f32 %v1616_v42, %v1616_v42  ;;  %v1696_v8 = vsel %vm1319_vm5, %v1616_v42, 0.0 }
 0x1b5   : > { %v1459_v58 = vsel %vm1451_vm11, %v1426_v35, %v1197_v16  ;;  %v1432_v43 = vsel %vm1418_vm10, %v1399_v6, %v1171_v47 }
 0x1b6   : > { %1903 = vst.msk [vmem:[%s3101_s26] sm:$0xf] %vm1902_vm15, %v1870_v5  ;;  %v1797_v1 = vsel %vm1319_vm5, %v1765_v10, 0.0  ;;  %v1465_v30 = vsel %vm1451_vm11, %v1432_v43, %v1203_v55 }
 0x1ba   : > { %v1275_v63 = vpop.permute.xlu2 %1274 }
 0x1bb   : > { %v1618_v13 = vpop.f32.mrf.mxu0 }
 0x1bc   : > { %v1235_v18 = vpop.permute.xlu1 %1234  ;;  %v1697_v48 = vsel %vm1319_vm5, %v1618_v13, 0.0  ;;  %v1766_v9 = vmul.f32 %v1618_v13, %v1618_v13  ;;  %v1871_v49 = vpack.c.bf16 %v1618_v13, %v1618_v13  ;;  %v1229_v12 = vpop.permute.xlu0 %1228 }
 0x1bd   : > { %v1698_v53 = vadd.f32 %v1697_v48, %v1696_v8  ;;  %v1492_v23 = vsel %vm1484_vm12, %v1459_v58, %v1229_v12  ;;  %v1498_v54 = vsel %vm1484_vm12, %v1465_v30, %v1235_v18 }
 0x1be   : > { %v1798_v40 = vsel %vm1319_vm5, %v1766_v9, 0.0  ;;  %1904 = vst.msk [vmem:[%s3101_s26 + $0x4] sm:$0xf] %vm1902_vm15, %v1871_v49  ;;  %v1525_v61 = vsel %vm1517_vm13, %v1492_v23, %v1261_v11 }
 0x1bf   : > { %v1799_v33 = vadd.f32 %v1798_v40, %v1797_v1  ;;  %2042 = vmatmul.msk.bf16.gmra.mxu0 %vm1570_vm14, %v1525_v61 }
 0x1c2   : > { %v1141_v25 = vpop.permute.xlu2 %1140 }
 0x1c4   : > { %v1115_v22 = vpop.permute.xlu1 %1114  ;;  %v1267_v2 = vpop.permute.xlu0 %1266 }
 0x1c5   : > { %v1531_v17 = vsel %vm1517_vm13, %v1498_v54, %v1267_v2  ;;  %v1374_v44 = vsel %vm1352_vm8, %v2769_v41, %v1115_v22 }
 0x1c6   : > { %2045 = vmatmul.msk.bf16.gmra.mxu1 %vm1570_vm14, %v1531_v17 }
 0x1ca   : > { %v1237_v13 = vpop.permute.xlu2 %1236 }
 0x1cc   : > { %v1153_v60 = vpop.permute.xlu1 %1152  ;;  %v1621_v24 = vpop.f32.mrf.mxu0 }
 0x1cd   : > { %v1147_v21 = vpop.permute.xlu0 %1146  ;;  %v1699_v36 = vsel %vm1319_vm5, %v1621_v24, 0.0  ;;  %v1767_v57 = vmul.f32 %v1621_v24, %v1621_v24  ;;  %v1872_v26 = vpack.c.bf16 %v1621_v24, %v1621_v24  ;;  %v1413_v16 = vsel %vm1385_vm9, %v1380_v45, %v1153_v60 }
 0x1ce   : > { %v1700_v50 = vadd.f32 %v1699_v36, %v1698_v53  ;;  %v1407_v56 = vsel %vm1385_vm9, %v1374_v44, %v1147_v21 }
 0x1cf   : > { %v1800_v32 = vsel %vm1319_vm5, %v1767_v57, 0.0  ;;  %1905 = vst.msk [vmem:[%s3101_s26 + $0x8] sm:$0xf] %vm1902_vm15, %v1872_v26  ;;  %v1440_v15 = vsel %vm1418_vm10, %v1407_v56, %v1179_v46 }
 0x1d0   : > { %v1801_v37 = vadd.f32 %v1800_v32, %v1799_v33 }
 0x1d2   : > { %v1123_v23 = vpop.permute.xlu2 %1122 }
 0x1d3   : > { %v3134_v39 = vpop.f32.mrf.mxu1 }
 0x1d4   : > { %v1211_v0 = vpop.permute.xlu1 %1210  ;;  %v1878_v55 = vpack.c.bf16 %v3134_v39, %v3134_v39  ;;  %v1623_v4 = vpop.f32.mrf.mxu0 }
 0x1d5   : > { %v1185_v7 = vpop.permute.xlu0 %1184  ;;  %v1701_v27 = vsel %vm1319_vm5, %v1623_v4, 0.0  ;;  %v1768_v31 = vmul.f32 %v1623_v4, %v1623_v4  ;;  %v1873_v38 = vpack.c.bf16 %v1623_v4, %v1623_v4  ;;  %v1473_v42 = vsel %vm1451_vm11, %v1440_v15, %v1211_v0 }
 0x1d6   : > { %1911 = vst.msk [vmem:[%s3101_s26 + $0x20] sm:$0xf] %vm1902_vm15, %v1878_v55  ;;  %v1702_v11 = vadd.f32 %v1701_v27, %v1700_v50  ;;  %v1446_v10 = vsel %vm1418_vm10, %v1413_v16, %v1185_v7 }
 0x1d7   : > { %v1802_v41 = vsel %vm1319_vm5, %v1768_v31, 0.0  ;;  %1906 = vst.msk [vmem:[%s3101_s26 + $0xc] sm:$0xf] %vm1902_vm15, %v1873_v38  ;;  %v1479_v14 = vsel %vm1451_vm11, %v1446_v10, %v1217_v59 }
 0x1d8   : > { %v1803_v3 = vadd.f32 %v1802_v41, %v1801_v37  ;;  %v1382_v41 = vsel %vm1352_vm8, %v2881_v34, %v1123_v23 }
 0x1da   : > { %v1181_v22 = vpop.permute.xlu2 %1180 }
 0x1db   : > { %v3151_v5 = vpop.f32.mrf.mxu1 }
 0x1dc   : > { %v1249_v47 = vpop.permute.xlu1 %1248  ;;  %v1879_v52 = vpack.c.bf16 %v3151_v5, %v3151_v5 }
 0x1dd   : > { %v1243_v35 = vpop.permute.xlu0 %1242  ;;  %v1512_v58 = vsel %vm1484_vm12, %v1479_v14, %v1249_v47 }
 0x1de   : > { %v1506_v19 = vsel %vm1484_vm12, %v1473_v42, %v1243_v35  ;;  %1912 = vst.msk [vmem:[%s3101_s26 + $0x24] sm:$0xf] %vm1902_vm15, %v1879_v52 }
 0x1df   : > { %v1539_v29 = vsel %vm1517_vm13, %v1506_v19, %v1275_v63 }
 0x1e0   : > { %2049 = vmatmul.msk.bf16.gmra.mxu2 %vm1570_vm14, %v1539_v29 }
 0x1e2   : > { %v1219_v50 = vpop.permute.xlu2 %1218 }
 0x1e4   : > { %v1109_v6 = vpop.permute.xlu1 %1108 }
 0x1e5   : > { %v1281_v18 = vpop.permute.xlu0 %1280  ;;  %v1368_v46 = vsel %vm1352_vm8, %v2756_v51, %v1109_v6 }
 0x1e6   : > { %v1545_v8 = vsel %vm1517_vm13, %v1512_v58, %v1281_v18  ;;  %v1401_v49 = vsel %vm1385_vm9, %v1368_v46, %v1141_v25 }
 0x1e7   : > { %2052 = vmatmul.msk.bf16.gmra.mxu3 %vm1570_vm14, %v1545_v8 }
 0x1e9   : > { %v3167_v48 = vpop.f32.mrf.mxu2 }
 0x1ea   : > { %v1886_v9 = vpack.c.bf16 %v3167_v48, %v3167_v48  ;;  %v1277_v15 = vpop.permute.xlu2 %1276 }
 0x1ec   : > { %v1205_v12 = vpop.permute.xlu1 %1204  ;;  %1919 = vst.msk [vmem:[%s3101_s26 + $0x40] sm:$0xf] %vm1902_vm15, %v1886_v9 }
 0x1ed   : > { %v1173_v53 = vpop.permute.xlu0 %1172 }
 0x1ee   : > { %v1434_v1 = vsel %vm1418_vm10, %v1401_v49, %v1173_v53 }
 0x1ef   : > { %v1467_v43 = vsel %vm1451_vm11, %v1434_v1, %v1205_v12 }
 0x1f0   : > { %v1500_v61 = vsel %vm1484_vm12, %v1467_v43, %v1237_v13  ;;  %v1318_v13 = vsel %vm1286_vm6, %v2585_v20, %v2784_v62 }
 0x1f1   : > { %v3176_v40 = vpop.f32.mrf.mxu2 }
 0x1f2   : > { %v1887_v51 = vpack.c.bf16 %v3176_v40, %v3176_v40  ;;  %v1125_v6 = vpop.permute.xlu2 %1124 }
 0x1f4   : > { %v1117_v33 = vpop.permute.xlu1 %1116  ;;  %1920 = vst.msk [vmem:[%s3101_s26 + $0x44] sm:$0xf] %vm1902_vm15, %v1887_v51 }
 0x1f5   : > { %v1269_v30 = vpop.permute.xlu0 %1268  ;;  %v1376_v32 = vsel %vm1352_vm8, %v2867_v28, %v1117_v33 }
 0x1f6   : > { %v1533_v54 = vsel %vm1517_vm13, %v1500_v61, %v1269_v30 }
 0x1f7   : > { %2046 = vmatmul.msk.bf16.gmra.mxu1 %vm1570_vm14, %v1533_v54 }
 0x1fa   : > { %v1221_v53 = vpop.permute.xlu2 %1220 }
 0x1fc   : > { %v1155_v2 = vpop.permute.xlu1 %1154  ;;  %v1626_v17 = vpop.f32.mrf.mxu0 }
 0x1fd   : > { %v1149_v59 = vpop.permute.xlu0 %1148  ;;  %v1703_v60 = vsel %vm1319_vm5, %v1626_v17, 0.0  ;;  %v1769_v24 = vmul.f32 %v1626_v17, %v1626_v17  ;;  %v1874_v21 = vpack.c.bf16 %v1626_v17, %v1626_v17  ;;  %v1415_v45 = vsel %vm1385_vm9, %v1382_v41, %v1155_v2 }
 0x1fe   : > { %v1704_v36 = vadd.f32 %v1703_v60, %v1702_v11  ;;  %v1409_v31 = vsel %vm1385_vm9, %v1376_v32, %v1149_v59  ;;  %v1713_v41 = vsel %vm1319_vm5, %v3151_v5, 0.0 }
 0x1ff   : > { %v1804_v57 = vsel %vm1319_vm5, %v1769_v24, 0.0  ;;  %1907 = vst.msk [vmem:[%s3101_s26 + $0x10] sm:$0xf] %vm1902_vm15, %v1874_v21  ;;  %v1442_v11 = vsel %vm1418_vm10, %v1409_v31, %v1181_v22  ;;  %v1774_v31 = vmul.f32 %v3151_v5, %v3151_v5 }
 0x200   : > { %v1805_v26 = vadd.f32 %v1804_v57, %v1803_v3 }
 0x203   : > { %v3191_v63 = vpop.f32.mrf.mxu1 }
 0x204   : > { %v1213_v37 = vpop.permute.xlu1 %1212  ;;  %v1880_v44 = vpack.c.bf16 %v3191_v63, %v3191_v63  ;;  %v1628_v0 = vpop.f32.mrf.mxu0 }
 0x205   : > { %v1187_v55 = vpop.permute.xlu0 %1186  ;;  %v1705_v4 = vsel %vm1319_vm5, %v1628_v0, 0.0  ;;  %v1770_v7 = vmul.f32 %v1628_v0, %v1628_v0  ;;  %v1875_v27 = vpack.c.bf16 %v1628_v0, %v1628_v0  ;;  %v1475_v3 = vsel %vm1451_vm11, %v1442_v11, %v1213_v37 }
 0x206   : > { %1913 = vst.msk [vmem:[%s3101_s26 + $0x28] sm:$0xf] %vm1902_vm15, %v1880_v44  ;;  %v1706_v38 = vadd.f32 %v1705_v4, %v1704_v36  ;;  %v1448_v35 = vsel %vm1418_vm10, %v1415_v45, %v1187_v55  ;;  %v1773_v44 = vmul.f32 %v3134_v39, %v3134_v39 }
 0x207   : > { %v1806_v28 = vsel %vm1319_vm5, %v1770_v7, 0.0  ;;  %1908 = vst.msk [vmem:[%s3101_s26 + $0x14] sm:$0xf] %vm1902_vm15, %v1875_v27  ;;  %v1481_v19 = vsel %vm1451_vm11, %v1448_v35, %v1219_v50  ;;  %v1711_v27 = vsel %vm1319_vm5, %v3134_v39, 0.0  ;;  %v1814_v39 = vsel %vm1319_vm5, %v1774_v31, 0.0 }
 0x208   : > { %v1807_v56 = vadd.f32 %v1806_v28, %v1805_v26  ;;  %v1812_v11 = vsel %vm1319_vm5, %v1773_v44, 0.0 }
 0x20b   : > { %v3207_v25 = vpop.f32.mrf.mxu1 }
 0x20c   : > { %v1251_v42 = vpop.permute.xlu1 %1250  ;;  %v1881_v16 = vpack.c.bf16 %v3207_v25, %v3207_v25  ;;  %v1717_v5 = vsel %vm1319_vm5, %v3207_v25, 0.0 }
 0x20d   : > { %v1245_v47 = vpop.permute.xlu0 %1244  ;;  %v1514_v10 = vsel %vm1484_vm12, %v1481_v19, %v1251_v42  ;;  %v1715_v42 = vsel %vm1319_vm5, %v3191_v63, 0.0 }
 0x20e   : > { %v1508_v52 = vsel %vm1484_vm12, %v1475_v3, %v1245_v47  ;;  %1914 = vst.msk [vmem:[%s3101_s26 + $0x2c] sm:$0xf] %vm1902_vm15, %v1881_v16  ;;  %v1775_v3 = vmul.f32 %v3191_v63, %v3191_v63  ;;  %v1776_v16 = vmul.f32 %v3207_v25, %v3207_v25 }
 0x20f   : > { %v1541_v34 = vsel %vm1517_vm13, %v1508_v52, %v1277_v15 }
 0x210   : > { %2050 = vmatmul.msk.bf16.gmra.mxu2 %vm1570_vm14, %v1541_v34  ;;  %v1816_v34 = vsel %vm1319_vm5, %v1775_v3, 0.0 }
 0x214   : > { %v1093_v29 = vpop.permute.xlu1 %1092 }
 0x215   : > { %v1283_v14 = vpop.permute.xlu0 %1282  ;;  %v1351_v18 = vsel %vm1319_vm5, %v1318_v13, %v1093_v29 }
 0x216   : > { %v1547_v58 = vsel %vm1517_vm13, %v1514_v10, %v1283_v14  ;;  %v1384_v8 = vsel %vm1352_vm8, %v1351_v18, %v1125_v6 }
 0x217   : > { %2053 = vmatmul.msk.bf16.gmra.mxu3 %vm1570_vm14, %v1547_v58  ;;  %v1818_v58 = vsel %vm1319_vm5, %v1776_v16, 0.0 }
 0x21c   : > { %v1189_v46 = vpop.permute.xlu1 %1188 }
 0x21d   : > { %v1157_v9 = vpop.permute.xlu0 %1156 }
 0x21e   : > { %v1417_v49 = vsel %vm1385_vm9, %v1384_v8, %v1157_v9 }
 0x21f   : > { %v1450_v12 = vsel %vm1418_vm10, %v1417_v49, %v1189_v46 }
 0x220   : > { %v1483_v1 = vsel %vm1451_vm11, %v1450_v12, %v1221_v53 }
 0x222   : > { %v3228_v23 = vpop.f32.mrf.mxu2 }
 0x223   : > { %v1888_v20 = vpack.c.bf16 %v3228_v23, %v3228_v23 }
 0x224   : > { %v1285_v62 = vpop.permute.xlu1 %1284 }
 0x225   : > { %v1253_v43 = vpop.permute.xlu0 %1252  ;;  %1921 = vst.msk [vmem:[%s3101_s26 + $0x48] sm:$0xf] %vm1902_vm15, %v1888_v20 }
 0x226   : > { %v1516_v51 = vsel %vm1484_vm12, %v1483_v1, %v1253_v43 }
 0x227   : > { %v1549_v61 = vsel %vm1517_vm13, %v1516_v51, %v1285_v62 }
 0x228   : > { %2054 = vmatmul.msk.bf16.gmra.mxu3 %vm1570_vm14, %v1549_v61 }
 0x229   : > { %v3238_v33 = vpop.f32.mrf.mxu3 }
 0x22a   : > { %v1894_v30 = vpack.c.bf16 %v3238_v33, %v3238_v33  ;;  %v3242_v54 = vpop.f32.mrf.mxu2 }
 0x22b   : > { %v1889_v22 = vpack.c.bf16 %v3242_v54, %v3242_v54  ;;  %v1784_v3 = vmul.f32 %v3242_v54, %v3242_v54 }
 0x22c   : > { %1927 = vst.msk [vmem:[%s3101_s26 + $0x60] sm:$0xf] %vm1902_vm15, %v1894_v30 }
 0x22d   : > { %1922 = vst.msk [vmem:[%s3101_s26 + $0x4c] sm:$0xf] %vm1902_vm15, %v1889_v22 }
 0x231   : > { %v3250_v2 = vpop.f32.mrf.mxu3 }
 0x232   : > { %v1895_v17 = vpack.c.bf16 %v3250_v2, %v3250_v2 }
 0x234   : > { %1928 = vst.msk [vmem:[%s3101_s26 + $0x64] sm:$0xf] %vm1902_vm15, %v1895_v17 }
 0x23c   : > { %v1631_v59 = vpop.f32.mrf.mxu0 }
 0x23d   : > { %v1707_v60 = vsel %vm1319_vm5, %v1631_v59, 0.0  ;;  %v1771_v24 = vmul.f32 %v1631_v59, %v1631_v59  ;;  %v1876_v21 = vpack.c.bf16 %v1631_v59, %v1631_v59 }
 0x23e   : > { %v1708_v36 = vadd.f32 %v1707_v60, %v1706_v38 }
 0x23f   : > { %v1808_v57 = vsel %vm1319_vm5, %v1771_v24, 0.0  ;;  %1909 = vst.msk [vmem:[%s3101_s26 + $0x18] sm:$0xf] %vm1902_vm15, %v1876_v21 }
 0x240   : > { %v1809_v26 = vadd.f32 %v1808_v57, %v1807_v56  ;;  %v1781_v57 = vmul.f32 %v3167_v48, %v3167_v48 }
 0x242   : > { %v1828_v31 = vsel %vm1319_vm5, %v1781_v57, 0.0 }
 0x243   : > { %v1646_v50 = vpop.f32.mrf.mxu1 }
 0x244   : > { %v1882_v32 = vpack.c.bf16 %v1646_v50, %v1646_v50  ;;  %v1633_v37 = vpop.f32.mrf.mxu0  ;;  %v1777_v19 = vmul.f32 %v1646_v50, %v1646_v50  ;;  %v1719_v63 = vsel %vm1319_vm5, %v1646_v50, 0.0 }
 0x245   : > { %v1709_v0 = vsel %vm1319_vm5, %v1633_v37, 0.0  ;;  %v1772_v55 = vmul.f32 %v1633_v37, %v1633_v37  ;;  %v1877_v4 = vpack.c.bf16 %v1633_v37, %v1633_v37 }
 0x246   : > { %1915 = vst.msk [vmem:[%s3101_s26 + $0x30] sm:$0xf] %vm1902_vm15, %v1882_v32  ;;  %v1710_v7 = vadd.f32 %v1709_v0, %v1708_v36  ;;  %v1820_v8 = vsel %vm1319_vm5, %v1777_v19, 0.0  ;;  %v1727_v0 = vsel %vm1319_vm5, %v3167_v48, 0.0 }
 0x247   : > { %v1810_v38 = vsel %vm1319_vm5, %v1772_v55, 0.0  ;;  %1910 = vst.msk [vmem:[%s3101_s26 + $0x1c] sm:$0xf] %vm1902_vm15, %v1877_v4  ;;  %v1782_v55 = vmul.f32 %v3176_v40, %v3176_v40 }
 0x248   : > { %v1712_v28 = vadd.f32 %v1711_v27, %v1710_v7  ;;  %v1811_v56 = vadd.f32 %v1810_v38, %v1809_v26  ;;  %v1729_v38 = vsel %vm1319_vm5, %v3176_v40, 0.0  ;;  %v1733_v40 = vsel %vm1319_vm5, %v3242_v54, 0.0 }
 0x249   : > { %v1830_v48 = vsel %vm1319_vm5, %v1782_v55, 0.0 }
 0x24a   : > { %v1714_v15 = vadd.f32 %v1713_v41, %v1712_v28  ;;  %v1813_v45 = vadd.f32 %v1812_v11, %v1811_v56  ;;  %v1783_v28 = vmul.f32 %v3228_v23, %v3228_v23  ;;  %v1731_v41 = vsel %vm1319_vm5, %v3228_v23, 0.0 }
 0x24b   : > { %v1648_v47 = vpop.f32.mrf.mxu1 }
 0x24c   : > { %v1716_v52 = vadd.f32 %v1715_v42, %v1714_v15  ;;  %v1815_v35 = vadd.f32 %v1814_v39, %v1813_v45  ;;  %v1883_v10 = vpack.c.bf16 %v1648_v47, %v1648_v47  ;;  %v1778_v6 = vmul.f32 %v1648_v47, %v1648_v47 }
 0x24d   : > { %v1721_v25 = vsel %vm1319_vm5, %v1648_v47, 0.0  ;;  %v1832_v39 = vsel %vm1319_vm5, %v1783_v28, 0.0  ;;  %v1834_v47 = vsel %vm1319_vm5, %v1784_v3, 0.0 }
 0x24e   : > { %v1817_v29 = vadd.f32 %v1816_v34, %v1815_v35  ;;  %v1718_v14 = vadd.f32 %v1717_v5, %v1716_v52  ;;  %1916 = vst.msk [vmem:[%s3101_s26 + $0x34] sm:$0xf] %vm1902_vm15, %v1883_v10  ;;  %v1822_v49 = vsel %vm1319_vm5, %v1778_v6, 0.0 }
 0x250   : > { %v1720_v13 = vadd.f32 %v1719_v63, %v1718_v14  ;;  %v1819_v18 = vadd.f32 %v1818_v58, %v1817_v29 }
 0x252   : > { %v1722_v46 = vadd.f32 %v1721_v25, %v1720_v13  ;;  %v1821_v9 = vadd.f32 %v1820_v8, %v1819_v18 }
 0x254   : > { %v1823_v12 = vadd.f32 %v1822_v49, %v1821_v9 }
 0x263   : > { %v1666_v53 = vpop.f32.mrf.mxu2 }
 0x264   : > { %v1890_v1 = vpack.c.bf16 %v1666_v53, %v1666_v53  ;;  %v1785_v35 = vmul.f32 %v1666_v53, %v1666_v53  ;;  %v1735_v23 = vsel %vm1319_vm5, %v1666_v53, 0.0 }
 0x266   : > { %1923 = vst.msk [vmem:[%s3101_s26 + $0x50] sm:$0xf] %vm1902_vm15, %v1890_v1  ;;  %v1836_v10 = vsel %vm1319_vm5, %v1785_v35, 0.0 }
 0x26a   : > { %v3294_v20 = vpop.f32.mrf.mxu3 }
 0x26b   : > { %v1896_v62 = vpack.c.bf16 %v3294_v20, %v3294_v20  ;;  %v1668_v43 = vpop.f32.mrf.mxu2 }
 0x26c   : > { %v1891_v51 = vpack.c.bf16 %v1668_v43, %v1668_v43  ;;  %v1786_v29 = vmul.f32 %v1668_v43, %v1668_v43  ;;  %v1737_v54 = vsel %vm1319_vm5, %v1668_v43, 0.0 }
 0x26d   : > { %1929 = vst.msk [vmem:[%s3101_s26 + $0x68] sm:$0xf] %vm1902_vm15, %v1896_v62 }
 0x26e   : > { %1924 = vst.msk [vmem:[%s3101_s26 + $0x54] sm:$0xf] %vm1902_vm15, %v1891_v51  ;;  %v1838_v13 = vsel %vm1319_vm5, %v1786_v29, 0.0 }
 0x272   : > { %v3302_v61 = vpop.f32.mrf.mxu3 }
 0x273   : > { %v1897_v30 = vpack.c.bf16 %v3302_v61, %v3302_v61 }
 0x274   : > { %v1651_v22 = vpop.f32.mrf.mxu1 }
 0x275   : > { %1930 = vst.msk [vmem:[%s3101_s26 + $0x6c] sm:$0xf] %vm1902_vm15, %v1897_v30  ;;  %v1884_v17 = vpack.c.bf16 %v1651_v22, %v1651_v22  ;;  %v1779_v59 = vmul.f32 %v1651_v22, %v1651_v22  ;;  %v1723_v60 = vsel %vm1319_vm5, %v1651_v22, 0.0  ;;  %v1743_v30 = vsel %vm1319_vm5, %v3238_v33, 0.0 }
 0x276   : > { %v1724_v21 = vadd.f32 %v1723_v60, %v1722_v46  ;;  %v1790_v22 = vmul.f32 %v3250_v2, %v3250_v2 }
 0x277   : > { %1917 = vst.msk [vmem:[%s3101_s26 + $0x38] sm:$0xf] %vm1902_vm15, %v1884_v17  ;;  %v1824_v24 = vsel %vm1319_vm5, %v1779_v59, 0.0 }
 0x278   : > { %v1825_v37 = vadd.f32 %v1824_v24, %v1823_v12  ;;  %v1789_v12 = vmul.f32 %v3238_v33, %v3238_v33  ;;  %v1747_v33 = vsel %vm1319_vm5, %v3294_v20, 0.0 }
 0x27a   : > { %v1844_v24 = vsel %vm1319_vm5, %v1789_v12, 0.0 }
 0x27c   : > { %v1653_v36 = vpop.f32.mrf.mxu1 }
 0x27d   : > { %v1725_v26 = vsel %vm1319_vm5, %v1653_v36, 0.0  ;;  %v1780_v50 = vmul.f32 %v1653_v36, %v1653_v36  ;;  %v1885_v32 = vpack.c.bf16 %v1653_v36, %v1653_v36 }
 0x27e   : > { %v1726_v44 = vadd.f32 %v1725_v26, %v1724_v21  ;;  %v1745_v21 = vsel %vm1319_vm5, %v3250_v2, 0.0  ;;  %v1846_v26 = vsel %vm1319_vm5, %v1790_v22, 0.0  ;;  %v1792_v2 = vmul.f32 %v3302_v61, %v3302_v61 }
 0x27f   : > { %v1826_v4 = vsel %vm1319_vm5, %v1780_v50, 0.0  ;;  %1918 = vst.msk [vmem:[%s3101_s26 + $0x3c] sm:$0xf] %vm1902_vm15, %v1885_v32  ;;  %v1791_v50 = vmul.f32 %v3294_v20, %v3294_v20 }
 0x280   : > { %v1728_v7 = vadd.f32 %v1727_v0, %v1726_v44  ;;  %v1827_v27 = vadd.f32 %v1826_v4, %v1825_v37 }
 0x281   : > { %v1848_v55 = vsel %vm1319_vm5, %v1791_v50, 0.0 }
 0x282   : > { %v1730_v56 = vadd.f32 %v1729_v38, %v1728_v7  ;;  %v1829_v11 = vadd.f32 %v1828_v31, %v1827_v27  ;;  %v1749_v7 = vsel %vm1319_vm5, %v3302_v61, 0.0  ;;  %v1850_v31 = vsel %vm1319_vm5, %v1792_v2, 0.0 }
 0x284   : > { %v1732_v15 = vadd.f32 %v1731_v41, %v1730_v56  ;;  %v1831_v45 = vadd.f32 %v1830_v48, %v1829_v11 }
 0x286   : > { %v1833_v42 = vadd.f32 %v1832_v39, %v1831_v45  ;;  %v1734_v16 = vadd.f32 %v1733_v40, %v1732_v15 }
 0x288   : > { %v1835_v52 = vadd.f32 %v1834_v47, %v1833_v42  ;;  %v1736_v19 = vadd.f32 %v1735_v23, %v1734_v16 }
 0x28a   : > { %v1837_v58 = vadd.f32 %v1836_v10, %v1835_v52  ;;  %v1738_v6 = vadd.f32 %v1737_v54, %v1736_v19 }
 0x28c   : > { %v1839_v46 = vadd.f32 %v1838_v13, %v1837_v58 }
 0x293   : > { %v1671_v34 = vpop.f32.mrf.mxu2 }
 0x294   : > { %v1892_v5 = vpack.c.bf16 %v1671_v34, %v1671_v34  ;;  %v1787_v14 = vmul.f32 %v1671_v34, %v1671_v34  ;;  %v1739_v63 = vsel %vm1319_vm5, %v1671_v34, 0.0 }
 0x295   : > { %v1740_v25 = vadd.f32 %v1739_v63, %v1738_v6 }
 0x296   : > { %1925 = vst.msk [vmem:[%s3101_s26 + $0x58] sm:$0xf] %vm1902_vm15, %v1892_v5  ;;  %v1840_v18 = vsel %vm1319_vm5, %v1787_v14, 0.0 }
 0x297   : > { %v1841_v43 = vadd.f32 %v1840_v18, %v1839_v46 }
 0x29a   : > { %v1686_v8 = vpop.f32.mrf.mxu3 }
 0x29b   : > { %v1898_v9 = vpack.c.bf16 %v1686_v8, %v1686_v8  ;;  %v1673_v49 = vpop.f32.mrf.mxu2  ;;  %v1793_v20 = vmul.f32 %v1686_v8, %v1686_v8  ;;  %v1751_v56 = vsel %vm1319_vm5, %v1686_v8, 0.0 }
 0x29c   : > { %v1741_v53 = vsel %vm1319_vm5, %v1673_v49, 0.0  ;;  %v1788_v1 = vmul.f32 %v1673_v49, %v1673_v49  ;;  %v1893_v62 = vpack.c.bf16 %v1673_v49, %v1673_v49 }
 0x29d   : > { %1931 = vst.msk [vmem:[%s3101_s26 + $0x70] sm:$0xf] %vm1902_vm15, %v1898_v9  ;;  %v1742_v51 = vadd.f32 %v1741_v53, %v1740_v25  ;;  %v1852_v41 = vsel %vm1319_vm5, %v1793_v20, 0.0 }
 0x29e   : > { %v1842_v17 = vsel %vm1319_vm5, %v1788_v1, 0.0  ;;  %1926 = vst.msk [vmem:[%s3101_s26 + $0x5c] sm:$0xf] %vm1902_vm15, %v1893_v62 }
 0x29f   : > { %v1744_v59 = vadd.f32 %v1743_v30, %v1742_v51  ;;  %v1843_v60 = vadd.f32 %v1842_v17, %v1841_v43 }
 0x2a1   : > { %v1746_v36 = vadd.f32 %v1745_v21, %v1744_v59  ;;  %v1845_v57 = vadd.f32 %v1844_v24, %v1843_v60 }
 0x2a2   : > { %v1688_v32 = vpop.f32.mrf.mxu3 }
 0x2a3   : > { %v1748_v37 = vadd.f32 %v1747_v33, %v1746_v36  ;;  %v1847_v44 = vadd.f32 %v1846_v26, %v1845_v57  ;;  %v1899_v0 = vpack.c.bf16 %v1688_v32, %v1688_v32  ;;  %v1794_v3 = vmul.f32 %v1688_v32, %v1688_v32 }
 0x2a4   : > { %v1753_v61 = vsel %vm1319_vm5, %v1688_v32, 0.0 }
 0x2a5   : > { %1932 = vst.msk [vmem:[%s3101_s26 + $0x74] sm:$0xf] %vm1902_vm15, %v1899_v0  ;;  %v1849_v4 = vadd.f32 %v1848_v55, %v1847_v44  ;;  %v1750_v27 = vadd.f32 %v1749_v7, %v1748_v37  ;;  %v1854_v42 = vsel %vm1319_vm5, %v1794_v3, 0.0 }
 0x2a7   : > { %v1851_v38 = vadd.f32 %v1850_v31, %v1849_v4  ;;  %v1752_v48 = vadd.f32 %v1751_v56, %v1750_v27 }
 0x2a9   : > { %v1853_v45 = vadd.f32 %v1852_v41, %v1851_v38  ;;  %v1754_v40 = vadd.f32 %v1753_v61, %v1752_v48 }
 0x2ab   : > { %v1691_v28 = vpop.f32.mrf.mxu3  ;;  %v1855_v47 = vadd.f32 %v1854_v42, %v1853_v45 }
 0x2ac   : > { %v1900_v11 = vpack.c.bf16 %v1691_v28, %v1691_v28  ;;  %v1795_v15 = vmul.f32 %v1691_v28, %v1691_v28  ;;  %v1755_v39 = vsel %vm1319_vm5, %v1691_v28, 0.0 }
 0x2ad   : > { %v1756_v52 = vadd.f32 %v1755_v39, %v1754_v40 }
 0x2ae   : > { %1933 = vst.msk [vmem:[%s3101_s26 + $0x78] sm:$0xf] %vm1902_vm15, %v1900_v11  ;;  %v1856_v16 = vsel %vm1319_vm5, %v1795_v15, 0.0 }
 0x2af   : > { %v1857_v19 = vadd.f32 %v1856_v16, %v1855_v47 }
 0x2b3   : > { %v1693_v35 = vpop.f32.mrf.mxu3 }
 0x2b4   : > { %v1757_v34 = vsel %vm1319_vm5, %v1693_v35, 0.0  ;;  %v1796_v23 = vmul.f32 %v1693_v35, %v1693_v35  ;;  %v1901_v5 = vpack.c.bf16 %v1693_v35, %v1693_v35 }
 0x2b5   : > { %v1758_v10 = vadd.f32 %v1757_v34, %v1756_v52 }
 0x2b6   : > { %v1858_v29 = vsel %vm1319_vm5, %v1796_v23, 0.0  ;;  %1934 = vst.msk [vmem:[%s3101_s26 + $0x7c] sm:$0xf] %vm1902_vm15, %v1901_v5 }
 0x2b7   : > { %v1759_v14 = vrot.slane %v1758_v10, 4  ;;  %v1859_v58 = vadd.f32 %v1858_v29, %v1857_v19 }
 0x2b9   : > { %v1760_v54 = vadd.f32 %v1759_v14, %v1758_v10  ;;  %v1860_v63 = vrot.slane %v1859_v58, 4 }
 0x2bb   : > { %v1761_v6 = vrot.slane %v1760_v54, 2  ;;  %v1861_v13 = vadd.f32 %v1860_v63, %v1859_v58 }
 0x2bd   : > { %v1762_v18 = vadd.f32 %v1761_v6, %v1760_v54  ;;  %v1862_v8 = vrot.slane %v1861_v13, 2 }
 0x2bf   : > { %v1763_v25 = vrot.slane %v1762_v18, 1  ;;  %v1863_v46 = vadd.f32 %v1862_v8, %v1861_v13 }
 0x2c1   : > { %v1864_v9 = vrot.slane %v1863_v46, 1  ;;  %v1764_v49 = vadd.f32 %v1763_v25, %v1762_v18 }
 0x2c3   : > { %v1865_v12 = vadd.f32 %v1864_v9, %v1863_v46 }
 0x2c5   : > { %v1867_v53 = vsel %vm702_vm0, %v1764_v49, %v1865_v12 }
 0x2c6   : > { %1869 = vst.msk [vmem:[%s235_s29] sm:$0x3] %vm1868_vm1, %v1867_v53 }
 0x2c7 PF: > { %s16_s18 = sadd.s32 1, %s2176_s18  }
 0x2c8   : > { %p13_p4 = scmp.ge.s32.totalorder %s16_s18, 4  }
 0x2ca   :  { %15 = sbr.rel (!%p13_p4) target bundleno = 1 (0x1), region = 78 }

</bundles_post_ra>
